<compile_context>
chip_gen: v5e
topology: v5e:2x2
jax: 0.10.0
libtpu: 0.0.40
codegen_flags: <defaults>
</compile_context>

<pallas_src>
import jax
import jax.numpy as jnp
from jax.experimental import pallas as pl
from jax.experimental.pallas import tpu as pltpu


def _round_up(x, m):
    return ((x + m - 1) // m) * m


def anet4_kernel(x_ref,
                 w1_ref, b1_ref,
                 w2_ref, b2_ref,
                 w3_ref, b3_ref,
                 w4_ref, b4_ref,
                 o_ref):
    tile_b = x_ref.shape[0]
    half = tile_b // 2

    # In-kernel bf16 cast of the batch tile (no separate HBM cast pass).
    x = x_ref[...].astype(jnp.bfloat16)
    xa, xb = x[:half], x[half:]

    w1 = w1_ref[...]
    b1 = b1_ref[...]
    w2 = w2_ref[...]
    b2 = b2_ref[...]
    w3 = w3_ref[...]
    b3 = b3_ref[...]
    w4 = w4_ref[...]
    b4 = b4_ref[...]

    # Two independent M sub-tiles per layer: MXU matmul of one sub-tile can
    # overlap the VPU bias+ReLU+cast epilogue of the other.

    # Layer 1: [half, F] @ [F, 1024]  (bf16 MXU, f32 accumulate)
    ha = jnp.dot(xa, w1, preferred_element_type=jnp.float32)
    hb = jnp.dot(xb, w1, preferred_element_type=jnp.float32)
    ha = jnp.maximum(ha + b1, 0.0).astype(jnp.bfloat16)   # ReLU (Dropout -> id)
    hb = jnp.maximum(hb + b1, 0.0).astype(jnp.bfloat16)

    # Layer 2: [half, 1024] @ [1024, 512] -- dominates FLOPs
    ga = jnp.dot(ha, w2, preferred_element_type=jnp.float32)
    gb = jnp.dot(hb, w2, preferred_element_type=jnp.float32)
    ga = jnp.maximum(ga + b2, 0.0).astype(jnp.bfloat16)   # ReLU
    gb = jnp.maximum(gb + b2, 0.0).astype(jnp.bfloat16)

    # Layer 3: [half, 512] @ [512, 256]
    fa = jnp.dot(ga, w3, preferred_element_type=jnp.float32)
    fb = jnp.dot(gb, w3, preferred_element_type=jnp.float32)
    fa = jnp.maximum(fa + b3, 0.0)                         # ReLU (Dropout -> id), f32
    fb = jnp.maximum(fb + b3, 0.0)

    # Layer 4 (N=1 head): contract w4 [1, 256] against h [half, 256] on the
    # last dim so the result is lane-dense (1, half) -> unmasked stores.
    dn = (((1,), (1,)), ((), ()))
    za = jax.lax.dot_general(w4, fa, dn, preferred_element_type=jnp.float32)
    zb = jax.lax.dot_general(w4, fb, dn, preferred_element_type=jnp.float32)
    o_ref[:, :half] = jax.nn.sigmoid(za + b4)              # Sigmoid
    o_ref[:, half:] = jax.nn.sigmoid(zb + b4)


def _vmem_estimate(tile_b, feature_dim, weight_bytes):
    # f32 accumulators + bf16 copies per layer, plus the in-kernel bf16 x copy.
    act_bytes = tile_b * (1024 + 512 + 256) * (4 + 2) + tile_b * feature_dim * 2
    # Double-buffered f32 x tile and (1, tile_b) f32 output tile.
    io_bytes = 2 * tile_b * feature_dim * 4 + 2 * tile_b * 4
    # Resident weights still get two pipeline buffers allocated.
    return 2 * weight_bytes + act_bytes + io_bytes + (4 << 20)


def _pick_tile_b(B, feature_dim, weight_bytes):
    if B <= 256:
        tile_b = max(16, _round_up(B, 16))
    else:
        # Largest tile that still leaves >= 2 grid steps (amortizes the
        # per-step pipeline overhead; keeps both v7x TensorCores busy).
        tile_b = 256
        for cand in (2048, 1024, 512):
            if B >= 2 * cand:
                tile_b = cand
                break
    # Clamp so the per-step VMEM footprint stays well under v7x's 64 MiB.
    while tile_b > 256 and _vmem_estimate(tile_b, feature_dim, weight_bytes) > (48 << 20):
        tile_b //= 2
    return tile_b


def anet4_forward(x, params, *, tile_b=None):
    """x: [B, feature_dim] float32.  params: dict of (w1,b1,...,w4,b4) in f32."""
    B, feature_dim = x.shape

    # bf16 weights for the MXU layers (f32 accumulation in-kernel); biases and
    # the tiny output head stay f32.
    w1 = params["w1"].astype(jnp.bfloat16)                  # [F, 1024]
    w2 = params["w2"].astype(jnp.bfloat16)                  # [1024, 512]
    w3 = params["w3"].astype(jnp.bfloat16)                  # [512, 256]
    w4 = params["w4"].reshape(1, -1).astype(jnp.float32)    # [1, 256] row layout
    b1 = params["b1"].astype(jnp.float32)                   # [1, 1024]
    b2 = params["b2"].astype(jnp.float32)                   # [1, 512]
    b3 = params["b3"].astype(jnp.float32)                   # [1, 256]
    b4 = params["b4"].reshape(1, -1).astype(jnp.float32)    # [1, 1]

    weight_bytes = sum(int(a.size) * a.dtype.itemsize
                       for a in (w1, w2, w3, w4, b1, b2, b3, b4))

    if tile_b is None:
        tile_b = _pick_tile_b(B, feature_dim, weight_bytes)
    # Multiple of 16 so bf16 sublane packing is full and the half-split is
    # 8-aligned.
    tile_b = max(16, _round_up(tile_b, 16))

    B_pad = _round_up(B, tile_b)
    if B_pad != B:
        x = jnp.pad(x, ((0, B_pad - B), (0, 0)))

    num_tiles = B_pad // tile_b
    grid = (num_tiles,)

    def resident_spec(arr):
        # Constant index map: block never changes across the grid, so the
        # pipeliner DMAs it into VMEM once and re-uses it every step.
        return pl.BlockSpec(arr.shape, lambda i: (0, 0))

    vmem_limit = min(max(_vmem_estimate(tile_b, feature_dim, weight_bytes), 32 << 20),
                     128 << 20)

    flops = 2 * B_pad * (feature_dim * 1024 + 1024 * 512 + 512 * 256 + 256)
    bytes_accessed = B_pad * feature_dim * 4 + weight_bytes + B_pad * 4
    cost = pl.CostEstimate(flops=int(flops),
                           transcendentals=int(B_pad),
                           bytes_accessed=int(bytes_accessed))

    out = pl.pallas_call(
        anet4_kernel,
        out_shape=jax.ShapeDtypeStruct((num_tiles, tile_b), jnp.float32),
        grid_spec=pltpu.PrefetchScalarGridSpec(
            num_scalar_prefetch=0,
            grid=grid,
            in_specs=[
                pl.BlockSpec((tile_b, feature_dim), lambda i: (i, 0)),
                resident_spec(w1), resident_spec(b1),
                resident_spec(w2), resident_spec(b2),
                resident_spec(w3), resident_spec(b3),
                resident_spec(w4), resident_spec(b4),
            ],
            out_specs=pl.BlockSpec((1, tile_b), lambda i: (i, 0)),
        ),
        compiler_params=pltpu.CompilerParams(
            dimension_semantics=("parallel",),
            vmem_limit_bytes=int(vmem_limit)),
        cost_estimate=cost,
    )(x, w1, b1, w2, b2, w3, b3, w4, b4)

    return out.reshape(B_pad, 1)[:B]


def init_params(key, feature_dim):
    """Deterministic init matching the layer shapes of ANet4."""
    dims = [(feature_dim, 1024), (1024, 512), (512, 256), (256, 1)]
    params = {}
    for idx, (fan_in, fan_out) in enumerate(dims, start=1):
        key, kw, kb = jax.random.split(key, 3)
        bound = 1.0 / jnp.sqrt(fan_in)
        # stored [in, out]  (PyTorch nn.Linear weight is [out, in])
        params[f"w{idx}"] = jax.random.uniform(
            kw, (fan_in, fan_out), jnp.float32, -bound, bound)
        params[f"b{idx}"] = jax.random.uniform(
            kb, (1, fan_out), jnp.float32, -bound, bound)
    return params


def anet4_reference(x, params):
    """Pure-JAX f32 reference for correctness checking."""
    h = jnp.maximum(x @ params["w1"] + params["b1"], 0.0)
    h = jnp.maximum(h @ params["w2"] + params["b2"], 0.0)
    h = jnp.maximum(h @ params["w3"] + params["b3"], 0.0)
    return jax.nn.sigmoid(h @ params["w4"] + params["b4"])


if __name__ == "__main__":
    key = jax.random.PRNGKey(0)
    k_x, k_p = jax.random.split(key)

    batch = 8
    feature_dim = 32

    x = jax.random.normal(k_x, (batch, feature_dim), jnp.float32)
    params = init_params(k_p, feature_dim)

    out = anet4_forward(x, params)
    out = jax.block_until_ready(out)

    assert out.shape == (batch, 1)
    assert bool(jnp.all((out >= 0.0) & (out <= 1.0)))

    ref = anet4_reference(x, params)
    assert bool(jnp.max(jnp.abs(out - ref)) < 5e-2), "mismatch vs f32 reference"

    print("KERNEL_OK")
</pallas_src>

<mosaic_0001>
module attributes {stable_mosaic.version = 11 : i64} {
  func.func @anet4_kernel(%arg0: i32, %arg1: memref<16x32xf32, #tpu.memory_space<vmem>>, %arg2: memref<32x1024xbf16, #tpu.memory_space<vmem>>, %arg3: memref<1x1024xf32, #tpu.memory_space<vmem>>, %arg4: memref<1024x512xbf16, #tpu.memory_space<vmem>>, %arg5: memref<1x512xf32, #tpu.memory_space<vmem>>, %arg6: memref<512x256xbf16, #tpu.memory_space<vmem>>, %arg7: memref<1x256xf32, #tpu.memory_space<vmem>>, %arg8: memref<1x256xf32, #tpu.memory_space<vmem>>, %arg9: memref<1x1xf32, #tpu.memory_space<vmem>>, %arg10: memref<1x16xf32, #tpu.memory_space<vmem>>) attributes {dimension_semantics = [#tpu.dimension_semantics<parallel>], iteration_bounds = array<i64: 1>, scalar_prefetch = 0 : i64, scratch_operands = 0 : i64, tpu.core_type = #tpu.core_type<tc>, window_params = [{transform_indices = @transform_0, window_bounds = array<i64: 16, 32>}, {pipeline_mode = #tpu.pipeline_mode<synchronous>, transform_indices = @transform_1, window_bounds = array<i64: 32, 1024>}, {pipeline_mode = #tpu.pipeline_mode<synchronous>, transform_indices = @transform_2, window_bounds = array<i64: 1, 1024>}, {pipeline_mode = #tpu.pipeline_mode<synchronous>, transform_indices = @transform_3, window_bounds = array<i64: 1024, 512>}, {pipeline_mode = #tpu.pipeline_mode<synchronous>, transform_indices = @transform_4, window_bounds = array<i64: 1, 512>}, {pipeline_mode = #tpu.pipeline_mode<synchronous>, transform_indices = @transform_5, window_bounds = array<i64: 512, 256>}, {pipeline_mode = #tpu.pipeline_mode<synchronous>, transform_indices = @transform_6, window_bounds = array<i64: 1, 256>}, {pipeline_mode = #tpu.pipeline_mode<synchronous>, transform_indices = @transform_7, window_bounds = array<i64: 1, 256>}, {pipeline_mode = #tpu.pipeline_mode<synchronous>, transform_indices = @transform_8, window_bounds = array<i64: 1, 1>}, {transform_indices = @transform_9, window_bounds = array<i64: 1, 16>}]} {
    %c0 = arith.constant 0 : index
    %c0_0 = arith.constant 0 : index
    %0 = vector.load %arg1[%c0, %c0_0] : memref<16x32xf32, #tpu.memory_space<vmem>>, vector<16x32xf32>
    %1 = arith.truncf %0 : vector<16x32xf32> to vector<16x32xbf16>
    %2 = vector.extract_strided_slice %1 {offsets = [0, 0], sizes = [8, 32], strides = [1, 1]} : vector<16x32xbf16> to vector<8x32xbf16>
    %3 = vector.extract_strided_slice %1 {offsets = [8, 0], sizes = [8, 32], strides = [1, 1]} : vector<16x32xbf16> to vector<8x32xbf16>
    %c0_1 = arith.constant 0 : index
    %c0_2 = arith.constant 0 : index
    %4 = vector.load %arg2[%c0_1, %c0_2] : memref<32x1024xbf16, #tpu.memory_space<vmem>>, vector<32x1024xbf16>
    %c0_3 = arith.constant 0 : index
    %c0_4 = arith.constant 0 : index
    %5 = vector.load %arg3[%c0_3, %c0_4] : memref<1x1024xf32, #tpu.memory_space<vmem>>, vector<1x1024xf32>
    %c0_5 = arith.constant 0 : index
    %c0_6 = arith.constant 0 : index
    %6 = vector.load %arg4[%c0_5, %c0_6] : memref<1024x512xbf16, #tpu.memory_space<vmem>>, vector<1024x512xbf16>
    %c0_7 = arith.constant 0 : index
    %c0_8 = arith.constant 0 : index
    %7 = vector.load %arg5[%c0_7, %c0_8] : memref<1x512xf32, #tpu.memory_space<vmem>>, vector<1x512xf32>
    %c0_9 = arith.constant 0 : index
    %c0_10 = arith.constant 0 : index
    %8 = vector.load %arg6[%c0_9, %c0_10] : memref<512x256xbf16, #tpu.memory_space<vmem>>, vector<512x256xbf16>
    %c0_11 = arith.constant 0 : index
    %c0_12 = arith.constant 0 : index
    %9 = vector.load %arg7[%c0_11, %c0_12] : memref<1x256xf32, #tpu.memory_space<vmem>>, vector<1x256xf32>
    %c0_13 = arith.constant 0 : index
    %c0_14 = arith.constant 0 : index
    %10 = vector.load %arg8[%c0_13, %c0_14] : memref<1x256xf32, #tpu.memory_space<vmem>>, vector<1x256xf32>
    %c0_15 = arith.constant 0 : index
    %c0_16 = arith.constant 0 : index
    %11 = vector.load %arg9[%c0_15, %c0_16] : memref<1x1xf32, #tpu.memory_space<vmem>>, vector<1x1xf32>
    %cst = arith.constant dense<0.000000e+00> : vector<8x1024xf32>
    %12 = tpu.matmul %2, %4, %cst {dimension_numbers = #tpu.dot_dimension_numbers<[1], [0], [0], [1], [0, 0, 1, 1], [], []>} : vector<8x32xbf16>, vector<32x1024xbf16>, vector<8x1024xf32> -> vector<8x1024xf32>
    %cst_17 = arith.constant dense<0.000000e+00> : vector<8x1024xf32>
    %13 = tpu.matmul %3, %4, %cst_17 {dimension_numbers = #tpu.dot_dimension_numbers<[1], [0], [0], [1], [0, 0, 1, 1], [], []>} : vector<8x32xbf16>, vector<32x1024xbf16>, vector<8x1024xf32> -> vector<8x1024xf32>
    %14 = vector.broadcast %5 : vector<1x1024xf32> to vector<8x1024xf32>
    %15 = arith.addf %12, %14 : vector<8x1024xf32>
    %cst_18 = arith.constant 0.000000e+00 : f32
    %16 = vector.broadcast %cst_18 : f32 to vector<8x1024xf32>
    %17 = arith.maximumf %15, %16 : vector<8x1024xf32>
    %18 = arith.truncf %17 : vector<8x1024xf32> to vector<8x1024xbf16>
    %19 = vector.broadcast %5 : vector<1x1024xf32> to vector<8x1024xf32>
    %20 = arith.addf %13, %19 : vector<8x1024xf32>
    %cst_19 = arith.constant 0.000000e+00 : f32
    %21 = vector.broadcast %cst_19 : f32 to vector<8x1024xf32>
    %22 = arith.maximumf %20, %21 : vector<8x1024xf32>
    %23 = arith.truncf %22 : vector<8x1024xf32> to vector<8x1024xbf16>
    %cst_20 = arith.constant dense<0.000000e+00> : vector<8x512xf32>
    %24 = tpu.matmul %18, %6, %cst_20 {dimension_numbers = #tpu.dot_dimension_numbers<[1], [0], [0], [1], [0, 0, 1, 1], [], []>} : vector<8x1024xbf16>, vector<1024x512xbf16>, vector<8x512xf32> -> vector<8x512xf32>
    %cst_21 = arith.constant dense<0.000000e+00> : vector<8x512xf32>
    %25 = tpu.matmul %23, %6, %cst_21 {dimension_numbers = #tpu.dot_dimension_numbers<[1], [0], [0], [1], [0, 0, 1, 1], [], []>} : vector<8x1024xbf16>, vector<1024x512xbf16>, vector<8x512xf32> -> vector<8x512xf32>
    %26 = vector.broadcast %7 : vector<1x512xf32> to vector<8x512xf32>
    %27 = arith.addf %24, %26 : vector<8x512xf32>
    %cst_22 = arith.constant 0.000000e+00 : f32
    %28 = vector.broadcast %cst_22 : f32 to vector<8x512xf32>
    %29 = arith.maximumf %27, %28 : vector<8x512xf32>
    %30 = arith.truncf %29 : vector<8x512xf32> to vector<8x512xbf16>
    %31 = vector.broadcast %7 : vector<1x512xf32> to vector<8x512xf32>
    %32 = arith.addf %25, %31 : vector<8x512xf32>
    %cst_23 = arith.constant 0.000000e+00 : f32
    %33 = vector.broadcast %cst_23 : f32 to vector<8x512xf32>
    %34 = arith.maximumf %32, %33 : vector<8x512xf32>
    %35 = arith.truncf %34 : vector<8x512xf32> to vector<8x512xbf16>
    %cst_24 = arith.constant dense<0.000000e+00> : vector<8x256xf32>
    %36 = tpu.matmul %30, %8, %cst_24 {dimension_numbers = #tpu.dot_dimension_numbers<[1], [0], [0], [1], [0, 0, 1, 1], [], []>} : vector<8x512xbf16>, vector<512x256xbf16>, vector<8x256xf32> -> vector<8x256xf32>
    %cst_25 = arith.constant dense<0.000000e+00> : vector<8x256xf32>
    %37 = tpu.matmul %35, %8, %cst_25 {dimension_numbers = #tpu.dot_dimension_numbers<[1], [0], [0], [1], [0, 0, 1, 1], [], []>} : vector<8x512xbf16>, vector<512x256xbf16>, vector<8x256xf32> -> vector<8x256xf32>
    %38 = vector.broadcast %9 : vector<1x256xf32> to vector<8x256xf32>
    %39 = arith.addf %36, %38 : vector<8x256xf32>
    %cst_26 = arith.constant 0.000000e+00 : f32
    %40 = vector.broadcast %cst_26 : f32 to vector<8x256xf32>
    %41 = arith.maximumf %39, %40 : vector<8x256xf32>
    %42 = vector.broadcast %9 : vector<1x256xf32> to vector<8x256xf32>
    %43 = arith.addf %37, %42 : vector<8x256xf32>
    %cst_27 = arith.constant 0.000000e+00 : f32
    %44 = vector.broadcast %cst_27 : f32 to vector<8x256xf32>
    %45 = arith.maximumf %43, %44 : vector<8x256xf32>
    %cst_28 = arith.constant dense<0.000000e+00> : vector<1x8xf32>
    %46 = tpu.matmul %10, %41, %cst_28 {dimension_numbers = #tpu.dot_dimension_numbers<[1], [1], [0], [0], [0, 0, 1, 0], [], []>} : vector<1x256xf32>, vector<8x256xf32>, vector<1x8xf32> -> vector<1x8xf32>
    %cst_29 = arith.constant dense<0.000000e+00> : vector<1x8xf32>
    %47 = tpu.matmul %10, %45, %cst_29 {dimension_numbers = #tpu.dot_dimension_numbers<[1], [1], [0], [0], [0, 0, 1, 0], [], []>} : vector<1x256xf32>, vector<8x256xf32>, vector<1x8xf32> -> vector<1x8xf32>
    %48 = vector.broadcast %11 : vector<1x1xf32> to vector<1x8xf32>
    %49 = arith.addf %46, %48 : vector<1x8xf32>
    %50 = arith.negf %49 : vector<1x8xf32>
    %51 = math.exp %50 : vector<1x8xf32>
    %cst_30 = arith.constant 1.000000e+00 : f32
    %52 = vector.broadcast %cst_30 : f32 to vector<1x8xf32>
    %53 = arith.addf %52, %51 : vector<1x8xf32>
    %54 = arith.divf %52, %53 : vector<1x8xf32>
    %c0_31 = arith.constant 0 : index
    %c0_32 = arith.constant 0 : index
    %55 = vector.load %arg10[%c0_31, %c0_32] : memref<1x16xf32, #tpu.memory_space<vmem>>, vector<1x8xf32>
    tpu.vector_store %arg10[%c0_31, %c0_32], %54 {strides = array<i32>} : memref<1x16xf32, #tpu.memory_space<vmem>>, vector<1x8xf32>,
    %56 = vector.broadcast %11 : vector<1x1xf32> to vector<1x8xf32>
    %57 = arith.addf %47, %56 : vector<1x8xf32>
    %58 = arith.negf %57 : vector<1x8xf32>
    %59 = math.exp %58 : vector<1x8xf32>
    %cst_33 = arith.constant 1.000000e+00 : f32
    %60 = vector.broadcast %cst_33 : f32 to vector<1x8xf32>
    %61 = arith.addf %60, %59 : vector<1x8xf32>
    %62 = arith.divf %60, %61 : vector<1x8xf32>
    %c0_34 = arith.constant 0 : index
    %c8 = arith.constant 8 : index
    %63 = vector.load %arg10[%c0_34, %c8] : memref<1x16xf32, #tpu.memory_space<vmem>>, vector<1x8xf32>
    tpu.vector_store %arg10[%c0_34, %c8], %62 {strides = array<i32>} : memref<1x16xf32, #tpu.memory_space<vmem>>, vector<1x8xf32>,
    return
  }
  func.func @transform_0(%arg0: i32) -> (i32, i32) {
    %c0_i32 = arith.constant 0 : i32
    %c0_i32_0 = arith.constant 0 : i32
    return %arg0, %c0_i32 : i32, i32
  }
  func.func @transform_1(%arg0: i32) -> (i32, i32) {
    %c0_i32 = arith.constant 0 : i32
    %c0_i32_0 = arith.constant 0 : i32
    %c0_i32_1 = arith.constant 0 : i32
    return %c0_i32, %c0_i32_0 : i32, i32
  }
  func.func @transform_2(%arg0: i32) -> (i32, i32) {
    %c0_i32 = arith.constant 0 : i32
    %c0_i32_0 = arith.constant 0 : i32
    %c0_i32_1 = arith.constant 0 : i32
    return %c0_i32, %c0_i32_0 : i32, i32
  }
  func.func @transform_3(%arg0: i32) -> (i32, i32) {
    %c0_i32 = arith.constant 0 : i32
    %c0_i32_0 = arith.constant 0 : i32
    %c0_i32_1 = arith.constant 0 : i32
    return %c0_i32, %c0_i32_0 : i32, i32
  }
  func.func @transform_4(%arg0: i32) -> (i32, i32) {
    %c0_i32 = arith.constant 0 : i32
    %c0_i32_0 = arith.constant 0 : i32
    %c0_i32_1 = arith.constant 0 : i32
    return %c0_i32, %c0_i32_0 : i32, i32
  }
  func.func @transform_5(%arg0: i32) -> (i32, i32) {
    %c0_i32 = arith.constant 0 : i32
    %c0_i32_0 = arith.constant 0 : i32
    %c0_i32_1 = arith.constant 0 : i32
    return %c0_i32, %c0_i32_0 : i32, i32
  }
  func.func @transform_6(%arg0: i32) -> (i32, i32) {
    %c0_i32 = arith.constant 0 : i32
    %c0_i32_0 = arith.constant 0 : i32
    %c0_i32_1 = arith.constant 0 : i32
    return %c0_i32, %c0_i32_0 : i32, i32
  }
  func.func @transform_7(%arg0: i32) -> (i32, i32) {
    %c0_i32 = arith.constant 0 : i32
    %c0_i32_0 = arith.constant 0 : i32
    %c0_i32_1 = arith.constant 0 : i32
    return %c0_i32, %c0_i32_0 : i32, i32
  }
  func.func @transform_8(%arg0: i32) -> (i32, i32) {
    %c0_i32 = arith.constant 0 : i32
    %c0_i32_0 = arith.constant 0 : i32
    %c0_i32_1 = arith.constant 0 : i32
    return %c0_i32, %c0_i32_0 : i32, i32
  }
  func.func @transform_9(%arg0: i32) -> (i32, i32) {
    %c0_i32 = arith.constant 0 : i32
    %c0_i32_0 = arith.constant 0 : i32
    return %arg0, %c0_i32 : i32, i32
  }
}

</mosaic_0001>

<bundles_post_ra>
// kernel: tpu_custom_call.1
= control target key start
LH: loop header
LB: loop body
LE: loop exit
PB: predicated region body
PF: predicated region fallthrough
CT: control target
= control target key end

     0   :  { %s7150_s0 = inlined_call_operand.hbm [shape: f32[16,32], index: 0, kind: input, shape index: {}]   ;;  %s7151_s1 = inlined_call_operand.hbm [shape: bf16[32,1024], index: 1, kind: input, shape index: {}]   ;;  %s7152_s2 = inlined_call_operand.hbm [shape: f32[1,1024], index: 2, kind: input, shape index: {}]   ;;  %s7153_s3 = inlined_call_operand.hbm [shape: bf16[1024,512], index: 3, kind: input, shape index: {}]   ;;  %s7154_s4 = inlined_call_operand.vmem [shape: f32[1,512], index: 4, kind: input, shape index: {}]   ;;  %s7155_s5 = inlined_call_operand.hbm [shape: bf16[512,256], index: 5, kind: input, shape index: {}]   ;;  %s7156_s6 = inlined_call_operand.vmem [shape: f32[1,256], index: 6, kind: input, shape index: {}]   ;;  %s7157_s7 = inlined_call_operand.vmem [shape: f32[1,256], index: 7, kind: input, shape index: {}]   ;;  %s7158_s8 = inlined_call_operand.<no memory space> [shape: f32[1,1], index: 8, kind: input, shape index: {}]   ;;  %s7159_s9 = inlined_call_operand.hbm [shape: f32[1,16], index: 9, kind: output, shape index: {}]  }
   0x1   :  { %v14_v0 = vstv %s7158_s8 }
   0x2   :  { %15 = vst [vmem:[#allocation2] sm:$0x1] %v14_v0 }
   0x3   :  { %16 = vsyncpa [#allocation4], 0 }
   0x4   :  { %17 = vsyncpa [#allocation7], 0 }
   0x5   :  { %18 = vsyncpa [#allocation10], 0  ;;  %s37_s13 = sshll.u32 %s7151_s1, 4  ;;  %s38_s13 = int_to_ptr.hbm [resolvable:$true] %s37_s13 }
   0x6   :  { %19 = vsyncpa [#allocation5], 0  ;;  %s5503_s14 = smov [#allocation6]   ;;  %s61_s18 = sshll.u32 %s7153_s3, 4  ;;  %s62_s18 = int_to_ptr.hbm [resolvable:$true] %s61_s18 }
   0x7   :  { %s39_s15 = sshll.u32 %s5503_s14, 4  ;;  %s5504_s19 = smov 512   ;;  %s40_s15 = int_to_ptr.vmem [resolvable:$true] %s39_s15 }
   0x8   :  { %s5505_s20 = smov 32   ;;  %s5506_s8 = smov [#allocation9]  }
   0x9   :  { %45 = dma.hbm_to_vmem [thread:$0]  %s38_s13, 2048, %s40_s15, [#allocation7], %s5504_s19, %s5504_s19, %s5505_s20  }
   0xa   :  { %s63_s21 = sshll.u32 %s5506_s8, 4  ;;  %s5507_s22 = smov 256   ;;  %s64_s21 = int_to_ptr.vmem [resolvable:$true] %s63_s21 }
   0xb   :  { %s5508_s23 = smov 16   ;;  %s24_s25 = sshll.u32 %s7150_s0, 4  ;;  %s25_s25 = int_to_ptr.hbm [resolvable:$true] %s24_s25 }
   0xc   :  { %69 = dma.hbm_to_vmem [thread:$0]  %s62_s18, 32768, %s64_s21, [#allocation10], %s5507_s22, %s5507_s22, %s5508_s23  }
   0xd   :  { %s5509_s26 = smov [#allocation3]   ;;  %s51_s29 = sshll.u32 %s7152_s2, 4  ;;  %s52_s29 = int_to_ptr.hbm [resolvable:$true] %s51_s29 }
   0xe   :  { %s26_s27 = sshll.u32 %s5509_s26, 4  ;;  %s5510_s30 = smov 128   ;;  %s27_s27 = int_to_ptr.vmem [resolvable:$true] %s26_s27 }
   0xf   :  { %s5511_s10 = smov 8   ;;  %s5512_s11 = smov [#allocation8]  }
  0x10   :  { %32 = dma.hbm_to_vmem [thread:$0]  %s25_s25, 256, %s27_s27, [#allocation4], %s5510_s30, %s5510_s30, %s5511_s10  }
  0x11   :  { %s53_s12 = sshll.u32 %s5512_s11, 4  ;;  %s76_s15 = sshll.u32 %s7155_s5, 4  ;;  %s54_s12 = int_to_ptr.vmem [resolvable:$true] %s53_s12  ;;  %s77_s15 = int_to_ptr.hbm [resolvable:$true] %s76_s15 }
  0x12   :  { %56 = dma.hbm_to_vmem [thread:$0]  %s52_s29, 128, %s54_s12, [#allocation7]  }
  0x13   :  { %s5513_s0 = smov [#allocation11]  }
  0x14   :  { %s78_s16 = sshll.u32 %s5513_s0, 4  ;;  %s79_s16 = int_to_ptr.vmem [resolvable:$true] %s78_s16 }
  0x15   :  { %84 = dma.hbm_to_vmem [thread:$0]  %s77_s15, 8192, %s79_s16, [#allocation10], %s5510_s30, %s5510_s30, %s5511_s10  }
  0x16   :  { %5495 = dma.done.wait [#allocation4], 256  }
  0x17   :  { %5496 = vsyncadd [#allocation4], 4294967040 }
  0x18   :  { %5497 = dma.done.wait [#allocation7], 2176  }
  0x19   :  { %5498 = vsyncadd [#allocation7], 4294965120 }
  0x1a   :  { %5499 = dma.done.wait [#allocation10], 40960  }
  0x1b   :  { %5500 = vsyncadd [#allocation10], 4294926336  ;;  %v3665_v1 = vld [vmem:[#allocation6 + $0x40] sm:$0xf]  ;;  %v5001_v3 = vld [vmem:[#allocation6 + $0x44] sm:$0xf] }
  0x1c   :  { %v5005_v2 = vld [vmem:[#allocation6 + $0x5c] sm:$0xf0]  ;;  %v3667_v5 = vld [vmem:[#allocation6 + $0x60] sm:$0xf0]  ;;  %v3673_v6 = vld [vmem:[#allocation6 + $0x48] sm:$0xf] }
  0x1d   :  { %v5586_v4 = vor.u32 %v5005_v2, %v3665_v1  ;;  %v5006_v7 = vld [vmem:[#allocation6 + $0x64] sm:$0xf0]  ;;  %v3670_v8 = vor.u32 %v5001_v3, %v3667_v5  ;;  %v5002_v10 = vld [vmem:[#allocation6 + $0x4c] sm:$0xf]  ;;  %v3633_v12 = vld [vmem:[#allocation6] sm:$0xf] }
  0x1e   :  { %v5588_v9 = vor.u32 %v5006_v7, %v3673_v6  ;;  %v3675_v11 = vld [vmem:[#allocation6 + $0x68] sm:$0xf0]  ;;  %v4997_v14 = vld [vmem:[#allocation6 + $0x1c] sm:$0xf0]  ;;  %v4993_v15 = vld [vmem:[#allocation6 + $0x4] sm:$0xf] }
  0x1f   :  { %564 = vmatpush.bf16.msra.mxu0 %v5586_v4  ;;  %v3678_v13 = vor.u32 %v5002_v10, %v3675_v11  ;;  %v3635_v16 = vld [vmem:[#allocation6 + $0x20] sm:$0xf0]  ;;  %577 = vmatpush.bf16.msra.mxu1 %v3670_v8  ;;  %v3634_v17 = vor.u32 %v4997_v14, %v3633_v12  ;;  %v3641_v19 = vld [vmem:[#allocation6 + $0x8] sm:$0xf]  ;;  %v4994_v21 = vld [vmem:[#allocation6 + $0xc] sm:$0xf] }
  0x20   :  { %590 = vmatpush.bf16.msra.mxu2 %v5588_v9  ;;  %v3638_v18 = vor.u32 %v4993_v15, %v3635_v16  ;;  %v4998_v20 = vld [vmem:[#allocation6 + $0x24] sm:$0xf0]  ;;  %v3643_v23 = vld [vmem:[#allocation6 + $0x28] sm:$0xf0]  ;;  %v112_v24 = vld [vmem:[#allocation3] sm:$0xff]  ;;  %vm554_vm0 = vcmask 261120  }
  0x21   :  { %603 = vmatpush.bf16.msra.mxu3 %v3678_v13  ;;  %v3642_v22 = vor.u32 %v4998_v20, %v3641_v19  ;;  %v3681_v25 = vld [vmem:[#allocation6 + $0x50] sm:$0xf]  ;;  %v3646_v26 = vor.u32 %v4994_v21, %v3643_v23  ;;  %v114_v27 = vpack.c.bf16 %v112_v24, %v112_v24  ;;  %v5003_v29 = vld [vmem:[#allocation6 + $0x54] sm:$0xf]  ;;  %v3689_v33 = vld [vmem:[#allocation6 + $0x58] sm:$0xf] }
  0x22   :  { %v5007_v28 = vld [vmem:[#allocation6 + $0x6c] sm:$0xf0]  ;;  %v3683_v30 = vld [vmem:[#allocation6 + $0x70] sm:$0xf0]  ;;  %v5008_v34 = vld [vmem:[#allocation6 + $0x74] sm:$0xf0] }
  0x23   :  { %565 = vmatpush.bf16.msra.mxu0 %v3634_v17  ;;  %v3682_v31 = vor.u32 %v5007_v28, %v3681_v25  ;;  %v3686_v32 = vor.u32 %v5003_v29, %v3683_v30  ;;  %v5004_v35 = vld [vmem:[#allocation6 + $0x5c] sm:$0xf]  ;;  %578 = vmatpush.bf16.msra.mxu1 %v3638_v18  ;;  %v3690_v36 = vor.u32 %v5008_v34, %v3689_v33  ;;  %v3649_v38 = vld [vmem:[#allocation6 + $0x10] sm:$0xf]  ;;  %v4995_v42 = vld [vmem:[#allocation6 + $0x14] sm:$0xf] }
  0x24   :  { %591 = vmatpush.bf16.msra.mxu2 %v3642_v22  ;;  %v3691_v37 = vld [vmem:[#allocation6 + $0x78] sm:$0xf0]  ;;  %v4999_v39 = vld [vmem:[#allocation6 + $0x2c] sm:$0xf0]  ;;  %v3651_v43 = vld [vmem:[#allocation6 + $0x30] sm:$0xf0] }
  0x25   :  { %604 = vmatpush.bf16.msra.mxu3 %v3646_v26  ;;  %v3694_v40 = vor.u32 %v5004_v35, %v3691_v37  ;;  %v3650_v41 = vor.u32 %v4999_v39, %v3649_v38  ;;  %v3657_v44 = vld [vmem:[#allocation6 + $0x18] sm:$0xf]  ;;  %v3654_v45 = vor.u32 %v4995_v42, %v3651_v43  ;;  %v4996_v47 = vld [vmem:[#allocation6 + $0x1c] sm:$0xf]  ;;  %v3825_v52 = vld [vmem:[#allocation9 + $0xe0] sm:$0xf] }
  0x26   :  { %3695 = vmatmul.msk.bf16.vlgmr.msra.gmra.mxu0 %vm554_vm0, %v114_v27  ;;  %v5000_v46 = vld [vmem:[#allocation6 + $0x34] sm:$0xf0]  ;;  %v3659_v48 = vld [vmem:[#allocation6 + $0x38] sm:$0xf0]  ;;  %3696 = vmatmul.msk.bf16.vlgmr.msra.gmra.mxu1 %vm554_vm0, %v114_v27  ;;  %v3953_v54 = vld [vmem:[#allocation9 + $0x1e0] sm:$0xf] }
  0x27   :  { %616 = vmatpush.bf16.msrb.mxu0 %v3682_v31  ;;  %629 = vmatpush.bf16.msrb.mxu1 %v3686_v32  ;;  %v3658_v49 = vor.u32 %v5000_v46, %v3657_v44  ;;  %v3662_v50 = vor.u32 %v4996_v47, %v3659_v48  ;;  %v113_v51 = vld [vmem:[#allocation3 + $0x8] sm:$0xff]  ;;  %v4081_v56 = vld [vmem:[#allocation9 + $0x2e0] sm:$0xf]  ;;  %vm3545_vm5 = vcmask 57344   ;;  %s3619_s21 = sshll.u32 %s7159_s9, 4  ;;  %vm3610_vm10 = vcmask 122944   ;;  %s3620_s21 = int_to_ptr.hbm [resolvable:$true] %s3619_s21 }
  0x28   :  { %3697 = vmatmul.msk.bf16.vlgmr.msra.gmra.mxu2 %vm554_vm0, %v114_v27  ;;  %3698 = vmatmul.msk.bf16.vlgmr.msra.gmra.mxu3 %vm554_vm0, %v114_v27  ;;  %v5039_v53 = vld [vmem:[#allocation9 + $0xec] sm:$0xf0]  ;;  %v5602_v58 = vpack.c.bf16 %v113_v51, %v113_v51  ;;  %v4209_v59 = vld [vmem:[#allocation9 + $0x3e0] sm:$0xf] }
  0x29   :  { %642 = vmatpush.bf16.msrb.mxu2 %v3690_v36  ;;  %655 = vmatpush.bf16.msrb.mxu3 %v3694_v40  ;;  %v5071_v55 = vld [vmem:[#allocation9 + $0x1ec] sm:$0xf0]  ;;  %v5604_v61 = vor.u32 %v5039_v53, %v3825_v52  ;;  %v3809_v63 = vld [vmem:[#allocation9 + $0xc0] sm:$0xf] }
  0x2a   :  { %v5103_v57 = vld [vmem:[#allocation9 + $0x2ec] sm:$0xf0]  ;;  %v5606_v62 = vor.u32 %v5071_v55, %v3953_v54  ;;  %v3937_v1 = vld [vmem:[#allocation9 + $0x1c0] sm:$0xf] }
  0x2b   :  { %617 = vmatpush.bf16.msrb.mxu0 %v3650_v41  ;;  %630 = vmatpush.bf16.msrb.mxu1 %v3654_v45  ;;  %v5135_v60 = vld [vmem:[#allocation9 + $0x3ec] sm:$0xf0]  ;;  %v5608_v2 = vor.u32 %v5103_v57, %v4081_v56  ;;  %v4065_v5 = vld [vmem:[#allocation9 + $0x2c0] sm:$0xf] }
  0x2c   :  { %v5035_v0 = vld [vmem:[#allocation9 + $0xcc] sm:$0xf0]  ;;  %v4193_v7 = vld [vmem:[#allocation9 + $0x3c0] sm:$0xf] }
  0x2d   :  { %643 = vmatpush.bf16.msrb.mxu2 %v3658_v49  ;;  %656 = vmatpush.bf16.msrb.mxu3 %v3662_v50  ;;  %v5067_v3 = vld [vmem:[#allocation9 + $0x1cc] sm:$0xf0]  ;;  %v3793_v11 = vld [vmem:[#allocation9 + $0xa0] sm:$0xf] }
  0x2e   :  { %v5099_v6 = vld [vmem:[#allocation9 + $0x2cc] sm:$0xf0]  ;;  %v5624_v10 = vor.u32 %v5067_v3, %v3937_v1  ;;  %v4177_v19 = vld [vmem:[#allocation9 + $0x3a0] sm:$0xf] }
  0x2f   :  { %687 = vmatpush.bf16.msra.mxu0 %v5586_v4  ;;  %700 = vmatpush.bf16.msra.mxu1 %v3670_v8  ;;  %v5612_v4 = vor.u32 %v5135_v60, %v4209_v59  ;;  %v5131_v8 = vld [vmem:[#allocation9 + $0x3cc] sm:$0xf0]  ;;  %v5627_v14 = vor.u32 %v5099_v6, %v4065_v5  ;;  %v3777_v23 = vld [vmem:[#allocation9 + $0x80] sm:$0xf] }
  0x30   :  { %v5031_v12 = vld [vmem:[#allocation9 + $0xac] sm:$0xf0]  ;;  %v5630_v16 = vor.u32 %v5131_v8, %v4193_v7  ;;  %v3905_v25 = vld [vmem:[#allocation9 + $0x180] sm:$0xf] }
  0x31   :  { %713 = vmatpush.bf16.msra.mxu2 %v5588_v9  ;;  %726 = vmatpush.bf16.msra.mxu3 %v3678_v13  ;;  %v5621_v9 = vor.u32 %v5035_v0, %v3809_v63  ;;  %v3921_v13 = vld [vmem:[#allocation9 + $0x1a0] sm:$0xf]  ;;  %v5063_v15 = vld [vmem:[#allocation9 + $0x1ac] sm:$0xf0]  ;;  %v5633_v21 = vor.u32 %v5031_v12, %v3793_v11 }
  0x32   :  { %v5127_v20 = vld [vmem:[#allocation9 + $0x3ac] sm:$0xf0]  ;;  %v4033_v29 = vld [vmem:[#allocation9 + $0x280] sm:$0xf] }
  0x33   :  { %688 = vmatpush.bf16.msra.mxu0 %v3634_v17  ;;  %701 = vmatpush.bf16.msra.mxu1 %v3638_v18  ;;  %v4049_v17 = vld [vmem:[#allocation9 + $0x2a0] sm:$0xf]  ;;  %v5095_v18 = vld [vmem:[#allocation9 + $0x2ac] sm:$0xf0]  ;;  %v5642_v28 = vor.u32 %v5127_v20, %v4177_v19 }
  0x34   :  { %v5027_v24 = vld [vmem:[#allocation9 + $0x8c] sm:$0xf0]  ;;  %v3761_v35 = vld [vmem:[#allocation9 + $0x60] sm:$0xf] }
  0x35   :  { %714 = vmatpush.bf16.msra.mxu2 %v3642_v22  ;;  %727 = vmatpush.bf16.msra.mxu3 %v3646_v26  ;;  %v5636_v22 = vor.u32 %v5063_v15, %v3921_v13  ;;  %v5639_v26 = vor.u32 %v5095_v18, %v4049_v17  ;;  %v5091_v30 = vld [vmem:[#allocation9 + $0x28c] sm:$0xf0]  ;;  %v5645_v33 = vor.u32 %v5027_v24, %v3777_v23  ;;  %v3889_v37 = vld [vmem:[#allocation9 + $0x160] sm:$0xf] }
  0x36   :  { %3699 = vmatmul.msk.bf16.vlgmr.msrb.gmra.mxu0 %vm554_vm0, %v114_v27  ;;  %3700 = vmatmul.msk.bf16.vlgmr.msrb.gmra.mxu1 %vm554_vm0, %v114_v27  ;;  %v5651_v38 = vor.u32 %v5091_v30, %v4033_v29  ;;  %v5055_v39 = vld [vmem:[#allocation9 + $0x16c] sm:$0xf0]  ;;  %v4145_v43 = vld [vmem:[#allocation9 + $0x360] sm:$0xf] }
  0x37   :  { %739 = vmatpush.bf16.msrb.mxu0 %v3682_v31  ;;  %752 = vmatpush.bf16.msrb.mxu1 %v3686_v32  ;;  %v4161_v31 = vld [vmem:[#allocation9 + $0x380] sm:$0xf]  ;;  %v5123_v32 = vld [vmem:[#allocation9 + $0x38c] sm:$0xf0]  ;;  %v5660_v46 = vor.u32 %v5055_v39, %v3889_v37 }
  0x38   :  { %3701 = vmatmul.msk.bf16.vlgmr.msrb.gmra.mxu2 %vm554_vm0, %v114_v27  ;;  %3702 = vmatmul.msk.bf16.vlgmr.msrb.gmra.mxu3 %vm554_vm0, %v114_v27  ;;  %v5059_v27 = vld [vmem:[#allocation9 + $0x18c] sm:$0xf0]  ;;  %v3745_v47 = vld [vmem:[#allocation9 + $0x40] sm:$0xf] }
  0x39   :  { %765 = vmatpush.bf16.msrb.mxu2 %v3690_v36  ;;  %778 = vmatpush.bf16.msrb.mxu3 %v3694_v40  ;;  %v5648_v34 = vor.u32 %v5059_v27, %v3905_v25  ;;  %v5023_v36 = vld [vmem:[#allocation9 + $0x6c] sm:$0xf0]  ;;  %v5654_v40 = vor.u32 %v5123_v32, %v4161_v31  ;;  %v4001_v53 = vld [vmem:[#allocation9 + $0x240] sm:$0xf] }
  0x3a   :  { %v5087_v42 = vld [vmem:[#allocation9 + $0x26c] sm:$0xf0]  ;;  %v4129_v55 = vld [vmem:[#allocation9 + $0x340] sm:$0xf] }
  0x3b   :  { %740 = vmatpush.bf16.msrb.mxu0 %v3650_v41  ;;  %753 = vmatpush.bf16.msrb.mxu1 %v3654_v45  ;;  %v4017_v41 = vld [vmem:[#allocation9 + $0x260] sm:$0xf]  ;;  %v5119_v44 = vld [vmem:[#allocation9 + $0x36c] sm:$0xf0]  ;;  %v5657_v45 = vor.u32 %v5023_v36, %v3761_v35 }
  0x3c   :  { %v5019_v48 = vld [vmem:[#allocation9 + $0x4c] sm:$0xf0]  ;;  %v5666_v52 = vor.u32 %v5119_v44, %v4145_v43  ;;  %v3729_v60 = vld [vmem:[#allocation9 + $0x20] sm:$0xf] }
  0x3d   :  { %766 = vmatpush.bf16.msrb.mxu2 %v3658_v49  ;;  %779 = vmatpush.bf16.msrb.mxu3 %v3662_v50  ;;  %v3873_v49 = vld [vmem:[#allocation9 + $0x140] sm:$0xf]  ;;  %v5663_v50 = vor.u32 %v5087_v42, %v4017_v41  ;;  %v5051_v51 = vld [vmem:[#allocation9 + $0x14c] sm:$0xf0]  ;;  %v5675_v57 = vor.u32 %v5019_v48, %v3745_v47 }
  0x3e   :  { %v5083_v54 = vld [vmem:[#allocation9 + $0x24c] sm:$0xf0]  ;;  %v5680_v59 = vor.u32 %v5051_v51, %v3873_v49  ;;  %v3857_v0 = vld [vmem:[#allocation9 + $0x120] sm:$0xf] }
  0x3f   :  { %v5115_v56 = vld [vmem:[#allocation9 + $0x34c] sm:$0xf0]  ;;  %v5683_v1 = vor.u32 %v5083_v54, %v4001_v53  ;;  %v3985_v6 = vld [vmem:[#allocation9 + $0x220] sm:$0xf] }
  0x40   :  { %v5015_v63 = vld [vmem:[#allocation9 + $0x2c] sm:$0xf0]  ;;  %v5686_v5 = vor.u32 %v5115_v56, %v4129_v55  ;;  %v4113_v8 = vld [vmem:[#allocation9 + $0x320] sm:$0xf] }
  0x41   :  { %v5047_v3 = vld [vmem:[#allocation9 + $0x12c] sm:$0xf0]  ;;  %v5689_v11 = vor.u32 %v5015_v63, %v3729_v60  ;;  %v3713_v12 = vld [vmem:[#allocation9] sm:$0xf] }
  0x42   :  { %7399 = vst [vmem:[#allocation17_spill] sm:$0xff] %v5686_v5  ;;  %v5079_v7 = vld [vmem:[#allocation9 + $0x22c] sm:$0xf0]  ;;  %v5692_v15 = vor.u32 %v5047_v3, %v3857_v0  ;;  %v3841_v17 = vld [vmem:[#allocation9 + $0x100] sm:$0xf] }
  0x43   :  { %v5011_v13 = vld [vmem:[#allocation9 + $0xc] sm:$0xf0]  ;;  %v4337_v19 = vld [vmem:[#allocation9 + $0x4e0] sm:$0xf]  ;;  %v5695_v20 = vor.u32 %v5079_v7, %v3985_v6 }
  0x44   :  { %v5043_v18 = vld [vmem:[#allocation9 + $0x10c] sm:$0xf0]  ;;  %v4465_v24 = vld [vmem:[#allocation9 + $0x5e0] sm:$0xf]  ;;  %v5701_v32 = vor.u32 %v5011_v13, %v3713_v12 }
  0x45   :  { %7400 = vst [vmem:[#allocation18_spill] sm:$0xff] %v5695_v20  ;;  %v5167_v23 = vld [vmem:[#allocation9 + $0x4ec] sm:$0xf0]  ;;  %v3969_v29 = vld [vmem:[#allocation9 + $0x200] sm:$0xf]  ;;  %v5704_v39 = vor.u32 %v5043_v18, %v3841_v17 }
  0x46   :  { %3703 = vmatmul.msk.bf16.vlgmr.msra.gmra.mxu0 %vm554_vm0, %v5602_v58  ;;  %3704 = vmatmul.msk.bf16.vlgmr.msra.gmra.mxu1 %vm554_vm0, %v5602_v58  ;;  %v5199_v25 = vld [vmem:[#allocation9 + $0x5ec] sm:$0xf0]  ;;  %v4097_v31 = vld [vmem:[#allocation9 + $0x300] sm:$0xf]  ;;  %7402 = vst [vmem:[#allocation20_spill] sm:$0xff] %v5701_v32  ;;  %v5706_v41 = vor.u32 %v5167_v23, %v4337_v19 }
  0x47   :  { %2090 = vmatpush.bf16.msra.mxu0 %v5604_v61  ;;  %2103 = vmatpush.bf16.msra.mxu1 %v5606_v62  ;;  %v5075_v30 = vld [vmem:[#allocation9 + $0x20c] sm:$0xf0]  ;;  %v4593_v36 = vld [vmem:[#allocation9 + $0x6e0] sm:$0xf]  ;;  %7403 = vst [vmem:[#allocation21_spill] sm:$0xff] %v5704_v39  ;;  %v5709_v44 = vor.u32 %v5199_v25, %v4465_v24 }
  0x48   :  { %3705 = vmatmul.msk.bf16.vlgmr.msra.gmra.mxu2 %vm554_vm0, %v5602_v58  ;;  %3706 = vmatmul.msk.bf16.vlgmr.msra.gmra.mxu3 %vm554_vm0, %v5602_v58  ;;  %v5107_v35 = vld [vmem:[#allocation9 + $0x30c] sm:$0xf0]  ;;  %7404 = vst [vmem:[#allocation22_spill] sm:$0xff] %v5706_v41  ;;  %v4721_v42 = vld [vmem:[#allocation9 + $0x7e0] sm:$0xf]  ;;  %v5712_v49 = vor.u32 %v5075_v30, %v3969_v29 }
  0x49   :  { %2116 = vmatpush.bf16.msra.mxu2 %v5608_v2  ;;  %2129 = vmatpush.bf16.msra.mxu3 %v5612_v4  ;;  %v5231_v37 = vld [vmem:[#allocation9 + $0x6ec] sm:$0xf0]  ;;  %7405 = vst [vmem:[#allocation23_spill] sm:$0xff] %v5709_v44  ;;  %v4321_v47 = vld [vmem:[#allocation9 + $0x4c0] sm:$0xf]  ;;  %v5714_v54 = vor.u32 %v5107_v35, %v4097_v31 }
  0x4a   :  { %v5263_v43 = vld [vmem:[#allocation9 + $0x7ec] sm:$0xf0]  ;;  %7406 = vst [vmem:[#allocation24_spill] sm:$0xff] %v5712_v49  ;;  %v4449_v51 = vld [vmem:[#allocation9 + $0x5c0] sm:$0xf]  ;;  %v5716_v55 = vor.u32 %v5231_v37, %v4593_v36 }
  0x4b   :  { %2091 = vmatpush.bf16.msra.mxu0 %v5621_v9  ;;  %2104 = vmatpush.bf16.msra.mxu1 %v5624_v10  ;;  %v5163_v48 = vld [vmem:[#allocation9 + $0x4cc] sm:$0xf0]  ;;  %7407 = vst [vmem:[#allocation25_spill] sm:$0xff] %v5714_v54  ;;  %v5719_v56 = vor.u32 %v5263_v43, %v4721_v42  ;;  %v4577_v60 = vld [vmem:[#allocation9 + $0x6c0] sm:$0xf] }
  0x4c   :  { %v5195_v53 = vld [vmem:[#allocation9 + $0x5cc] sm:$0xf0]  ;;  %7408 = vst [vmem:[#allocation26_spill] sm:$0xff] %v5716_v55  ;;  %v5723_v0 = vor.u32 %v5163_v48, %v4321_v47  ;;  %v4705_v3 = vld [vmem:[#allocation9 + $0x7c0] sm:$0xf] }
  0x4d   :  { %2117 = vmatpush.bf16.msra.mxu2 %v5627_v14  ;;  %2130 = vmatpush.bf16.msra.mxu3 %v5630_v16  ;;  %7409 = vst [vmem:[#allocation27_spill] sm:$0xff] %v5719_v56  ;;  %v5227_v63 = vld [vmem:[#allocation9 + $0x6cc] sm:$0xf0]  ;;  %v5726_v7 = vor.u32 %v5195_v53, %v4449_v51  ;;  %v4433_v12 = vld [vmem:[#allocation9 + $0x5a0] sm:$0xf] }
  0x4e   :  { %7410 = vst [vmem:[#allocation28_spill] sm:$0xff] %v5723_v0  ;;  %v5259_v6 = vld [vmem:[#allocation9 + $0x7cc] sm:$0xf0]  ;;  %v5731_v17 = vor.u32 %v5227_v63, %v4577_v60  ;;  %v4561_v19 = vld [vmem:[#allocation9 + $0x6a0] sm:$0xf] }
  0x4f   :  { %2092 = vmatpush.bf16.msra.mxu0 %v5633_v21  ;;  %2105 = vmatpush.bf16.msra.mxu1 %v5636_v22  ;;  %7411 = vst [vmem:[#allocation29_spill] sm:$0xff] %v5726_v7  ;;  %v5191_v13 = vld [vmem:[#allocation9 + $0x5ac] sm:$0xf0]  ;;  %v5734_v18 = vor.u32 %v5259_v6, %v4705_v3  ;;  %v4689_v25 = vld [vmem:[#allocation9 + $0x7a0] sm:$0xf] }
  0x50   :  { %7412 = vst [vmem:[#allocation30_spill] sm:$0xff] %v5731_v17  ;;  %v5223_v23 = vld [vmem:[#allocation9 + $0x6ac] sm:$0xf0]  ;;  %v5740_v30 = vor.u32 %v5191_v13, %v4433_v12  ;;  %v4289_v31 = vld [vmem:[#allocation9 + $0x480] sm:$0xf] }
  0x51   :  { %2118 = vmatpush.bf16.msra.mxu2 %v5639_v26  ;;  %2131 = vmatpush.bf16.msra.mxu3 %v5642_v28  ;;  %7413 = vst [vmem:[#allocation31_spill] sm:$0xff] %v5734_v18  ;;  %v5255_v29 = vld [vmem:[#allocation9 + $0x7ac] sm:$0xf0]  ;;  %v4417_v36 = vld [vmem:[#allocation9 + $0x580] sm:$0xf]  ;;  %v5743_v42 = vor.u32 %v5223_v23, %v4561_v19 }
  0x52   :  { %7415 = vst [vmem:[#allocation33_spill] sm:$0xff] %v5740_v30  ;;  %v5155_v35 = vld [vmem:[#allocation9 + $0x48c] sm:$0xf0]  ;;  %v5746_v43 = vor.u32 %v5255_v29, %v4689_v25  ;;  %v4545_v47 = vld [vmem:[#allocation9 + $0x680] sm:$0xf] }
  0x53   :  { %2093 = vmatpush.bf16.msra.mxu0 %v5645_v33  ;;  %2106 = vmatpush.bf16.msra.mxu1 %v5648_v34  ;;  %v5187_v37 = vld [vmem:[#allocation9 + $0x58c] sm:$0xf0]  ;;  %7416 = vst [vmem:[#allocation34_spill] sm:$0xff] %v5743_v42  ;;  %v5749_v51 = vor.u32 %v5155_v35, %v4289_v31  ;;  %v4673_v53 = vld [vmem:[#allocation9 + $0x780] sm:$0xf] }
  0x54   :  { %7417 = vst [vmem:[#allocation35_spill] sm:$0xff] %v5746_v43  ;;  %v5219_v48 = vld [vmem:[#allocation9 + $0x68c] sm:$0xf0]  ;;  %v5752_v63 = vor.u32 %v5187_v37, %v4417_v36  ;;  %v4273_v3 = vld [vmem:[#allocation9 + $0x460] sm:$0xf] }
  0x55   :  { %2119 = vmatpush.bf16.msra.mxu2 %v5651_v38  ;;  %2132 = vmatpush.bf16.msra.mxu3 %v5654_v40  ;;  %7418 = vst [vmem:[#allocation36_spill] sm:$0xff] %v5749_v51  ;;  %v5251_v60 = vld [vmem:[#allocation9 + $0x78c] sm:$0xf0]  ;;  %v5755_v12 = vor.u32 %v5219_v48, %v4545_v47  ;;  %v4257_v25 = vld [vmem:[#allocation9 + $0x440] sm:$0xf] }
  0x56   :  { %3707 = vmatmul.msk.bf16.vlgmr.msrb.gmra.mxu0 %vm554_vm0, %v5602_v58  ;;  %3708 = vmatmul.msk.bf16.vlgmr.msrb.gmra.mxu1 %vm554_vm0, %v5602_v58  ;;  %7419 = vst [vmem:[#allocation37_spill] sm:$0xff] %v5752_v63  ;;  %v5151_v6 = vld [vmem:[#allocation9 + $0x46c] sm:$0xf0]  ;;  %v5758_v13 = vor.u32 %v5251_v60, %v4673_v53  ;;  %v4385_v31 = vld [vmem:[#allocation9 + $0x540] sm:$0xf] }
  0x57   :  { %2094 = vmatpush.bf16.msra.mxu0 %v5657_v45  ;;  %2107 = vmatpush.bf16.msra.mxu1 %v5660_v46  ;;  %7420 = vst [vmem:[#allocation38_spill] sm:$0xff] %v5755_v12  ;;  %v5761_v19 = vor.u32 %v5151_v6, %v4273_v3  ;;  %v5147_v29 = vld [vmem:[#allocation9 + $0x44c] sm:$0xf0]  ;;  %v4529_v47 = vld [vmem:[#allocation9 + $0x660] sm:$0xf] }
  0x58   :  { %3709 = vmatmul.msk.bf16.vlgmr.msrb.gmra.mxu2 %vm554_vm0, %v5602_v58  ;;  %3710 = vmatmul.msk.bf16.vlgmr.msrb.gmra.mxu3 %vm554_vm0, %v5602_v58  ;;  %v5111_v58 = vld [vmem:[#allocation9 + $0x32c] sm:$0xf0]  ;;  %7421 = vst [vmem:[#allocation39_spill] sm:$0xff] %v5758_v13  ;;  %v5769_v36 = vor.u32 %v5147_v29, %v4257_v25  ;;  %v4657_v53 = vld [vmem:[#allocation9 + $0x760] sm:$0xf] }
  0x59   :  { %2120 = vmatpush.bf16.msra.mxu2 %v5663_v50  ;;  %2133 = vmatpush.bf16.msra.mxu3 %v5666_v52  ;;  %v5698_v27 = vor.u32 %v5111_v58, %v4113_v8  ;;  %v4305_v8 = vld [vmem:[#allocation9 + $0x4a0] sm:$0xf]  ;;  %v5159_v58 = vld [vmem:[#allocation9 + $0x4ac] sm:$0xf0]  ;;  %7422 = vst [vmem:[#allocation40_spill] sm:$0xff] %v5761_v19 }
  0x5a   :  { %v5737_v24 = vor.u32 %v5159_v58, %v4305_v8  ;;  %v4401_v8 = vld [vmem:[#allocation9 + $0x560] sm:$0xf]  ;;  %v5183_v58 = vld [vmem:[#allocation9 + $0x56c] sm:$0xf0]  ;;  %7424 = vst [vmem:[#allocation42_spill] sm:$0xff] %v5769_v36 }
  0x5b   :  { %2095 = vmatpush.bf16.msra.mxu0 %v5675_v57  ;;  %2108 = vmatpush.bf16.msra.mxu1 %v5680_v59  ;;  %7401 = vst [vmem:[#allocation19_spill] sm:$0xff] %v5698_v27  ;;  %v5764_v23 = vor.u32 %v5183_v58, %v4401_v8  ;;  %v5179_v35 = vld [vmem:[#allocation9 + $0x54c] sm:$0xf0]  ;;  %v4241_v8 = vld [vmem:[#allocation9 + $0x420] sm:$0xf] }
  0x5c   :  { %7414 = vst [vmem:[#allocation32_spill] sm:$0xff] %v5737_v24  ;;  %v5772_v37 = vor.u32 %v5179_v35, %v4385_v31  ;;  %v5215_v48 = vld [vmem:[#allocation9 + $0x66c] sm:$0xf0]  ;;  %v4369_v29 = vld [vmem:[#allocation9 + $0x520] sm:$0xf] }
  0x5d   :  { %2121 = vmatpush.bf16.msra.mxu2 %v5683_v1  ;;  %2134 = vmatpush.bf16.msra.mxu3 %v5686_v5  ;;  %7423 = vst [vmem:[#allocation41_spill] sm:$0xff] %v5764_v23  ;;  %v5776_v60 = vor.u32 %v5215_v48, %v4529_v47  ;;  %v5247_v3 = vld [vmem:[#allocation9 + $0x76c] sm:$0xf0] }
  0x5e   :  { %7425 = vst [vmem:[#allocation43_spill] sm:$0xff] %v5772_v37  ;;  %v5778_v6 = vor.u32 %v5247_v3, %v4657_v53  ;;  %v5143_v58 = vld [vmem:[#allocation9 + $0x42c] sm:$0xf0]  ;;  %v4225_v3 = vld [vmem:[#allocation9 + $0x400] sm:$0xf] }
  0x5f   :  { %2096 = vmatpush.bf16.msra.mxu0 %v5689_v11  ;;  %2109 = vmatpush.bf16.msra.mxu1 %v5692_v15  ;;  %7426 = vst [vmem:[#allocation44_spill] sm:$0xff] %v5776_v60  ;;  %v5781_v25 = vor.u32 %v5143_v58, %v4241_v8  ;;  %v5175_v31 = vld [vmem:[#allocation9 + $0x52c] sm:$0xf0]  ;;  %v4353_v58 = vld [vmem:[#allocation9 + $0x500] sm:$0xf] }
  0x60   :  { %7427 = vst [vmem:[#allocation45_spill] sm:$0xff] %v5778_v6  ;;  %v5784_v35 = vor.u32 %v5175_v31, %v4369_v29  ;;  %v5243_v48 = vld [vmem:[#allocation9 + $0x74c] sm:$0xf0] }
  0x61   :  { %2122 = vmatpush.bf16.msra.mxu2 %v5695_v20  ;;  %2135 = vmatpush.bf16.msra.mxu3 %v5698_v27  ;;  %7428 = vst [vmem:[#allocation46_spill] sm:$0xff] %v5781_v25  ;;  %v5139_v8 = vld [vmem:[#allocation9 + $0x40c] sm:$0xf0] }
  0x62   :  { %7429 = vst [vmem:[#allocation47_spill] sm:$0xff] %v5784_v35  ;;  %v5171_v29 = vld [vmem:[#allocation9 + $0x50c] sm:$0xf0] }
  0x63   :  { %2097 = vmatpush.bf16.msra.mxu0 %v5701_v32  ;;  %2110 = vmatpush.bf16.msra.mxu1 %v5704_v39  ;;  %v5796_v31 = vor.u32 %v5171_v29, %v4353_v58  ;;  %v4609_v29 = vld [vmem:[#allocation9 + $0x700] sm:$0xf] }
  0x65   :  { %2123 = vmatpush.bf16.msra.mxu2 %v5712_v49  ;;  %2136 = vmatpush.bf16.msra.mxu3 %v5714_v54  ;;  %7433 = vst [vmem:[#allocation51_spill] sm:$0xff] %v5796_v31 }
  0x67   :  { %2142 = vmatpush.bf16.msrb.mxu0 %v5706_v41  ;;  %2155 = vmatpush.bf16.msrb.mxu1 %v5709_v44 }
  0x69   :  { %2168 = vmatpush.bf16.msrb.mxu2 %v5716_v55  ;;  %2181 = vmatpush.bf16.msrb.mxu3 %v5719_v56 }
  0x6b   :  { %2143 = vmatpush.bf16.msrb.mxu0 %v5723_v0  ;;  %2156 = vmatpush.bf16.msrb.mxu1 %v5726_v7  ;;  %v5045_v7 = vld [vmem:[#allocation9 + $0x124] sm:$0xf]  ;;  %v3859_v0 = vld [vmem:[#allocation9 + $0x130] sm:$0xf0] }
  0x6d   :  { %2169 = vmatpush.bf16.msrb.mxu2 %v5731_v17  ;;  %2182 = vmatpush.bf16.msrb.mxu3 %v5734_v18  ;;  %v3795_v18 = vld [vmem:[#allocation9 + $0xb0] sm:$0xf0] }
  0x6f   :  { %2144 = vmatpush.bf16.msrb.mxu0 %v5737_v24  ;;  %2157 = vmatpush.bf16.msrb.mxu1 %v5740_v30  ;;  %v5061_v30 = vld [vmem:[#allocation9 + $0x1a4] sm:$0xf] }
  0x71   :  { %2170 = vmatpush.bf16.msrb.mxu2 %v5743_v42  ;;  %2183 = vmatpush.bf16.msrb.mxu3 %v5746_v43  ;;  %v5065_v42 = vld [vmem:[#allocation9 + $0x1c4] sm:$0xf] }
  0x73   :  { %2145 = vmatpush.bf16.msrb.mxu0 %v5749_v51  ;;  %2158 = vmatpush.bf16.msrb.mxu1 %v5752_v63 }
  0x75   :  { %2171 = vmatpush.bf16.msrb.mxu2 %v5755_v12  ;;  %2184 = vmatpush.bf16.msrb.mxu3 %v5758_v13  ;;  %v4641_v13 = vld [vmem:[#allocation9 + $0x740] sm:$0xf] }
  0x76   :  { %v5790_v53 = vor.u32 %v5243_v48, %v4641_v13  ;;  %v4625_v48 = vld [vmem:[#allocation9 + $0x720] sm:$0xf] }
  0x77   :  { %2146 = vmatpush.bf16.msrb.mxu0 %v5761_v19  ;;  %2159 = vmatpush.bf16.msrb.mxu1 %v5764_v23 }
  0x78   :  { %7431 = vst [vmem:[#allocation49_spill] sm:$0xff] %v5790_v53 }
  0x79   :  { %2172 = vmatpush.bf16.msrb.mxu2 %v5776_v60  ;;  %2185 = vmatpush.bf16.msrb.mxu3 %v5778_v6  ;;  %v5793_v6 = vor.u32 %v5139_v8, %v4225_v3  ;;  %v4481_v3 = vld [vmem:[#allocation9 + $0x600] sm:$0xf]  ;;  %v5203_v8 = vld [vmem:[#allocation9 + $0x60c] sm:$0xf0] }
  0x7a   :  { %v5806_v58 = vor.u32 %v5203_v8, %v4481_v3  ;;  %v5037_v8 = vld [vmem:[#allocation9 + $0xe4] sm:$0xf] }
  0x7b   :  { %2147 = vmatpush.bf16.msrb.mxu0 %v5769_v36  ;;  %2160 = vmatpush.bf16.msrb.mxu1 %v5772_v37  ;;  %v4513_v37 = vld [vmem:[#allocation9 + $0x640] sm:$0xf]  ;;  %v5211_v36 = vld [vmem:[#allocation9 + $0x64c] sm:$0xf0]  ;;  %7432 = vst [vmem:[#allocation50_spill] sm:$0xff] %v5793_v6 }
  0x7c   :  { %v5787_v47 = vor.u32 %v5211_v36, %v4513_v37  ;;  %v4497_v36 = vld [vmem:[#allocation9 + $0x620] sm:$0xf]  ;;  %v5207_v37 = vld [vmem:[#allocation9 + $0x62c] sm:$0xf0]  ;;  %7436 = vst [vmem:[#allocation54_spill] sm:$0xff] %v5806_v58 }
  0x7d   :  { %2186 = vmatpush.bf16.msrb.mxu3 %v5790_v53  ;;  %v5800_v13 = vor.u32 %v5207_v37, %v4497_v36  ;;  %v5812_v36 = vld [vmem:[#allocation8] sm:$0xff] }
  0x7e   :  { %7430 = vst [vmem:[#allocation48_spill] sm:$0xff] %v5787_v47  ;;  %2173 = vmatpush.bf16.msrb.mxu2 %v5787_v47  ;;  %v7181_v37 = vperm.slane %v5812_v36, 1  ;;  %v7184_v47 = vperm.slane %v5812_v36, 2  ;;  %v7190_v23 = vperm.slane %v5812_v36, 3  ;;  %v7494_v20 = vperm.slane %v5812_v36, 3 }
  0x7f   :  { %2148 = vmatpush.bf16.msrb.mxu0 %v5781_v25  ;;  %2161 = vmatpush.bf16.msrb.mxu1 %v5784_v35  ;;  %7434 = vst [vmem:[#allocation52_spill] sm:$0xff] %v5800_v13  ;;  %v5239_v35 = vld [vmem:[#allocation9 + $0x72c] sm:$0xf0] }
  0x80   :  { %v5802_v25 = vor.u32 %v5239_v35, %v4625_v48  ;;  %v7178_v35 = vperm.slane %v5812_v36, 0 }
  0x82   :  { %7435 = vst [vmem:[#allocation53_spill] sm:$0xff] %v5802_v25  ;;  %2174 = vmatpush.bf16.msrb.mxu2 %v5800_v13  ;;  %2187 = vmatpush.bf16.msrb.mxu3 %v5802_v25  ;;  %v3827_v13 = vld [vmem:[#allocation9 + $0xf0] sm:$0xf0] }
  0x83   :  { %2149 = vmatpush.bf16.msrb.mxu0 %v5793_v6  ;;  %2162 = vmatpush.bf16.msrb.mxu1 %v5796_v31  ;;  %v5235_v6 = vld [vmem:[#allocation9 + $0x70c] sm:$0xf0]  ;;  %v5821_v60 = vor.u32 %v5037_v8, %v3827_v13  ;;  %v5101_v8 = vld [vmem:[#allocation9 + $0x2e4] sm:$0xf] }
  0x84   :  { %v5808_v53 = vor.u32 %v5235_v6, %v4609_v29  ;;  %v5069_v29 = vld [vmem:[#allocation9 + $0x1e4] sm:$0xf] }
  0x85   :  { %7438 = vst [vmem:[#allocation56_spill] sm:$0xff] %v5821_v60 }
  0x86   :  { %7437 = vst [vmem:[#allocation55_spill] sm:$0xff] %v5808_v53  ;;  %2175 = vmatpush.bf16.msrb.mxu2 %v5806_v58  ;;  %2188 = vmatpush.bf16.msrb.mxu3 %v5808_v53  ;;  %v3955_v58 = vld [vmem:[#allocation9 + $0x1f0] sm:$0xf0] }
  0x87   :  { %v5826_v19 = vor.u32 %v5069_v29, %v3955_v58 }
  0x89   :  { %7439 = vst [vmem:[#allocation57_spill] sm:$0xff] %v5826_v19 }
  0xa3   :  { %v567_v48 = vpop.f32.mrf.mxu0  ;;  %v580_v3 = vpop.f32.mrf.mxu1 }
  0xa4   :  { %v568_v25 = vadd.f32 %v567_v48, %v7178_v35  ;;  %v581_v6 = vadd.f32 %v580_v3, %v7181_v37  ;;  %v5033_v48 = vld [vmem:[#allocation9 + $0xc4] sm:$0xf]  ;;  %v3811_v35 = vld [vmem:[#allocation9 + $0xd0] sm:$0xf0] }
  0xa5   :  { %v3939_v3 = vld [vmem:[#allocation9 + $0x1d0] sm:$0xf0]  ;;  %v5835_v58 = vor.u32 %v5033_v48, %v3811_v35 }
  0xa6   :  { %v662_v31 = vmax.f32 %v568_v25, 0.0  ;;  %v663_v53 = vmax.f32 %v581_v6, 0.0  ;;  %v4083_v6 = vld [vmem:[#allocation9 + $0x2f0] sm:$0xf0]  ;;  %v5840_v51 = vor.u32 %v5065_v42, %v3939_v3  ;;  %v5097_v42 = vld [vmem:[#allocation9 + $0x2c4] sm:$0xf] }
  0xa7   :  { %7440 = vst [vmem:[#allocation58_spill] sm:$0xff] %v5835_v58  ;;  %v5842_v35 = vor.u32 %v5101_v8, %v4083_v6  ;;  %v4067_v3 = vld [vmem:[#allocation9 + $0x2d0] sm:$0xf0]  ;;  %v5025_v6 = vld [vmem:[#allocation9 + $0x84] sm:$0xf] }
  0xa8   :  { %v5823_v12 = vpack.c.bf16 %v662_v31, %v662_v31  ;;  %v5828_v43 = vpack.c.bf16 %v663_v53, %v663_v53  ;;  %v5133_v53 = vld [vmem:[#allocation9 + $0x3e4] sm:$0xf]  ;;  %7441 = vst [vmem:[#allocation59_spill] sm:$0xff] %v5840_v51  ;;  %v4195_v8 = vld [vmem:[#allocation9 + $0x3d0] sm:$0xf0] }
  0xa9   :  { %7442 = vst [vmem:[#allocation60_spill] sm:$0xff] %v5842_v35 }
  0xaa   :  { %2098 = vmatmul.bf16.vlgmr.msra.gmra.mxu0 %v5823_v12  ;;  %2111 = vmatmul.bf16.vlgmr.msra.gmra.mxu1 %v5828_v43 }
  0xab   :  { %v593_v37 = vpop.f32.mrf.mxu2  ;;  %v606_v13 = vpop.f32.mrf.mxu3  ;;  %2194 = vmatpush.bf16.msra.mxu0 %v5821_v60  ;;  %2207 = vmatpush.bf16.msra.mxu1 %v5826_v19  ;;  %v3923_v60 = vld [vmem:[#allocation9 + $0x1b0] sm:$0xf0] }
  0xac   :  { %v594_v25 = vadd.f32 %v593_v37, %v7184_v47  ;;  %v569_v31 = vpop.f32.mrf.mxu0  ;;  %v607_v29 = vadd.f32 %v606_v13, %v7190_v23  ;;  %v582_v63 = vpop.f32.mrf.mxu1  ;;  %v4211_v37 = vld [vmem:[#allocation9 + $0x3f0] sm:$0xf0]  ;;  %v5029_v47 = vld [vmem:[#allocation9 + $0xa4] sm:$0xf] }
  0xad   :  { %v5848_v13 = vor.u32 %v5133_v53, %v4211_v37  ;;  %v5850_v63 = vor.u32 %v5029_v47, %v3795_v18  ;;  %v5129_v23 = vld [vmem:[#allocation9 + $0x3c4] sm:$0xf]  ;;  %v3907_v37 = vld [vmem:[#allocation9 + $0x190] sm:$0xf0]  ;;  %v5861_v47 = vor.u32 %v5097_v42, %v4067_v3 }
  0xae   :  { %v664_v17 = vmax.f32 %v594_v25, 0.0  ;;  %v665_v31 = vmax.f32 %v607_v29, 0.0  ;;  %v5855_v25 = vor.u32 %v5061_v30, %v3923_v60  ;;  %v3779_v29 = vld [vmem:[#allocation9 + $0x90] sm:$0xf0]  ;;  %v5057_v53 = vld [vmem:[#allocation9 + $0x184] sm:$0xf] }
  0xaf   :  { %2195 = vmatpush.bf16.msra.mxu0 %v5835_v58  ;;  %7443 = vst [vmem:[#allocation61_spill] sm:$0xff] %v5848_v13  ;;  %2208 = vmatpush.bf16.msra.mxu1 %v5840_v51  ;;  %v5867_v48 = vor.u32 %v5025_v6, %v3779_v29  ;;  %v4051_v51 = vld [vmem:[#allocation9 + $0x2b0] sm:$0xf0]  ;;  %v7449_v58 = vperm.slane %v5812_v36, 4  ;;  %v5872_v42 = vor.u32 %v5057_v53, %v3907_v37  ;;  %v5125_v3 = vld [vmem:[#allocation9 + $0x3a4] sm:$0xf] }
  0xb0   :  { %v5845_v24 = vpack.c.bf16 %v664_v17, %v664_v17  ;;  %7444 = vst [vmem:[#allocation62_spill] sm:$0xff] %v5850_v63  ;;  %v5852_v19 = vpack.c.bf16 %v665_v31, %v665_v31  ;;  %v5865_v31 = vor.u32 %v5129_v23, %v4195_v8  ;;  %v5093_v17 = vld [vmem:[#allocation9 + $0x2a4] sm:$0xf]  ;;  %v3763_v23 = vld [vmem:[#allocation9 + $0x70] sm:$0xf0] }
  0xb1   :  { %7445 = vst [vmem:[#allocation63_spill] sm:$0xff] %v5855_v25  ;;  %v5053_v8 = vld [vmem:[#allocation9 + $0x164] sm:$0xf]  ;;  %v3891_v6 = vld [vmem:[#allocation9 + $0x170] sm:$0xf0]  ;;  %v5877_v55 = vor.u32 %v5093_v17, %v4051_v51 }
  0xb2   :  { %2124 = vmatmul.bf16.vlgmr.msra.gmra.mxu2 %v5845_v24  ;;  %2137 = vmatmul.bf16.vlgmr.msra.gmra.mxu3 %v5852_v19  ;;  %7446 = vst [vmem:[#allocation64_spill] sm:$0xff] %v5861_v47  ;;  %v5890_v51 = vor.u32 %v5053_v8, %v3891_v6  ;;  %v5121_v17 = vld [vmem:[#allocation9 + $0x384] sm:$0xf] }
  0xb3   :  { %2220 = vmatpush.bf16.msra.mxu2 %v5842_v35  ;;  %v595_v18 = vpop.f32.mrf.mxu2  ;;  %2233 = vmatpush.bf16.msra.mxu3 %v5848_v13  ;;  %v608_v30 = vpop.f32.mrf.mxu3  ;;  %7447 = vst [vmem:[#allocation65_spill] sm:$0xff] %v5865_v31  ;;  %v4179_v13 = vld [vmem:[#allocation9 + $0x3b0] sm:$0xf0] }
  0xb4   :  { %2196 = vmatpush.bf16.msra.mxu0 %v5850_v63  ;;  %v619_v60 = vpop.f32.mrf.mxu0  ;;  %7448 = vst [vmem:[#allocation66_spill] sm:$0xff] %v5867_v48  ;;  %2209 = vmatpush.bf16.msra.mxu1 %v5855_v25  ;;  %v632_v18 = vpop.f32.mrf.mxu1  ;;  %v5021_v30 = vld [vmem:[#allocation9 + $0x64] sm:$0xf]  ;;  %v7451_v63 = vperm.slane %v5812_v36, 5  ;;  %v5882_v53 = vor.u32 %v5125_v3, %v4179_v13  ;;  %v3875_v3 = vld [vmem:[#allocation9 + $0x150] sm:$0xf0] }
  0xb5   :  { %v620_v35 = vadd.f32 %v619_v60, %v7449_v58  ;;  %7450 = vst [vmem:[#allocation67_spill] sm:$0xff] %v5872_v42  ;;  %v4035_v60 = vld [vmem:[#allocation9 + $0x290] sm:$0xf0]  ;;  %v5017_v25 = vld [vmem:[#allocation9 + $0x44] sm:$0xf] }
  0xb6   :  { %v633_v56 = vadd.f32 %v632_v18, %v7451_v63  ;;  %7452 = vst [vmem:[#allocation68_spill] sm:$0xff] %v5877_v55  ;;  %v5089_v63 = vld [vmem:[#allocation9 + $0x284] sm:$0xf] }
  0xb7   :  { %v666_v29 = vmax.f32 %v620_v35, 0.0  ;;  %2221 = vmatpush.bf16.msra.mxu2 %v5861_v47  ;;  %2234 = vmatpush.bf16.msra.mxu3 %v5865_v31  ;;  %7453 = vst [vmem:[#allocation69_spill] sm:$0xff] %v5882_v53  ;;  %v5888_v35 = vor.u32 %v5021_v30, %v3763_v23  ;;  %v5049_v13 = vld [vmem:[#allocation9 + $0x144] sm:$0xf]  ;;  %v7457_v30 = vperm.slane %v5812_v36, 6 }
  0xb8   :  { %v667_v58 = vmax.f32 %v633_v56, 0.0  ;;  %2197 = vmatpush.bf16.msra.mxu0 %v5867_v48  ;;  %2210 = vmatpush.bf16.msra.mxu1 %v5872_v42  ;;  %7455 = vst [vmem:[#allocation71_spill] sm:$0xff] %v5890_v51  ;;  %v4163_v56 = vld [vmem:[#allocation9 + $0x390] sm:$0xf0]  ;;  %v5117_v47 = vld [vmem:[#allocation9 + $0x364] sm:$0xf] }
  0xb9   :  { %v5885_v18 = vpack.c.bf16 %v666_v29, %v666_v29  ;;  %7454 = vst [vmem:[#allocation70_spill] sm:$0xff] %v5888_v35  ;;  %v3747_v48 = vld [vmem:[#allocation9 + $0x50] sm:$0xf0]  ;;  %v5896_v29 = vor.u32 %v5089_v63, %v4035_v60  ;;  %v5902_v6 = vor.u32 %v5121_v17, %v4163_v56  ;;  %v5910_v60 = vor.u32 %v5049_v13, %v3875_v3  ;;  %v5113_v3 = vld [vmem:[#allocation9 + $0x344] sm:$0xf] }
  0xba   :  { %v5892_v31 = vpack.c.bf16 %v667_v58, %v667_v58  ;;  %v5085_v58 = vld [vmem:[#allocation9 + $0x264] sm:$0xf]  ;;  %v4019_v42 = vld [vmem:[#allocation9 + $0x270] sm:$0xf0]  ;;  %v5908_v63 = vor.u32 %v5017_v25, %v3747_v48 }
  0xbb   :  { %2222 = vmatpush.bf16.msra.mxu2 %v5877_v55  ;;  %v645_v37 = vpop.f32.mrf.mxu2  ;;  %2150 = vmatmul.bf16.vlgmr.msrb.gmra.mxu0 %v5885_v18  ;;  %7456 = vst [vmem:[#allocation72_spill] sm:$0xff] %v5896_v29  ;;  %v658_v8 = vpop.f32.mrf.mxu3  ;;  %v7459_v55 = vperm.slane %v5812_v36, 7  ;;  %v5081_v25 = vld [vmem:[#allocation9 + $0x244] sm:$0xf]  ;;  %v4003_v13 = vld [vmem:[#allocation9 + $0x250] sm:$0xf0] }
  0xbc   :  { %2235 = vmatpush.bf16.msra.mxu3 %v5882_v53  ;;  %v646_v23 = vadd.f32 %v645_v37, %v7457_v30  ;;  %2163 = vmatmul.bf16.vlgmr.msrb.gmra.mxu1 %v5892_v31  ;;  %7458 = vst [vmem:[#allocation73_spill] sm:$0xff] %v5902_v6  ;;  %v621_v54 = vpop.f32.mrf.mxu0  ;;  %v4147_v37 = vld [vmem:[#allocation9 + $0x370] sm:$0xf0]  ;;  %v5013_v30 = vld [vmem:[#allocation9 + $0x24] sm:$0xf]  ;;  %v634_v17 = vpop.f32.mrf.mxu1 }
  0xbd   :  { %v659_v49 = vadd.f32 %v658_v8, %v7459_v55  ;;  %2198 = vmatpush.bf16.msra.mxu0 %v5888_v35  ;;  %2211 = vmatpush.bf16.msra.mxu1 %v5890_v51  ;;  %7460 = vst [vmem:[#allocation74_spill] sm:$0xff] %v5908_v63  ;;  %v3731_v53 = vld [vmem:[#allocation9 + $0x30] sm:$0xf0]  ;;  %v5913_v54 = vor.u32 %v5085_v58, %v4019_v42  ;;  %v5009_v58 = vld [vmem:[#allocation9 + $0x4] sm:$0xf] }
  0xbe   :  { %7461 = vst [vmem:[#allocation75_spill] sm:$0xff] %v5910_v60  ;;  %v668_v56 = vmax.f32 %v646_v23, 0.0  ;;  %v5918_v48 = vor.u32 %v5117_v47, %v4147_v37  ;;  %v5926_v23 = vor.u32 %v5045_v7, %v3859_v0  ;;  %v4131_v42 = vld [vmem:[#allocation9 + $0x350] sm:$0xf0]  ;;  %v5041_v47 = vld [vmem:[#allocation9 + $0x104] sm:$0xf] }
  0xbf   :  { %v669_v27 = vmax.f32 %v659_v49, 0.0  ;;  %2223 = vmatpush.bf16.msra.mxu2 %v5896_v29  ;;  %7462 = vst [vmem:[#allocation76_spill] sm:$0xff] %v5913_v54  ;;  %v5924_v49 = vor.u32 %v5013_v30, %v3731_v53  ;;  %v3715_v17 = vld [vmem:[#allocation9 + $0x10] sm:$0xf0]  ;;  %v5197_v53 = vld [vmem:[#allocation9 + $0x5e4] sm:$0xf]  ;;  %v5934_v0 = vor.u32 %v5113_v3, %v4131_v42 }
  0xc0   :  { %v5915_v55 = vpack.c.bf16 %v668_v56, %v668_v56  ;;  %2236 = vmatpush.bf16.msra.mxu3 %v5902_v6  ;;  %7463 = vst [vmem:[#allocation77_spill] sm:$0xff] %v5918_v48  ;;  %v3843_v37 = vld [vmem:[#allocation9 + $0x110] sm:$0xf0]  ;;  %v5165_v56 = vld [vmem:[#allocation9 + $0x4e4] sm:$0xf]  ;;  %v5938_v51 = vor.u32 %v5009_v58, %v3715_v17 }
  0xc1   :  { %v5920_v8 = vpack.c.bf16 %v669_v27, %v669_v27  ;;  %2199 = vmatpush.bf16.msra.mxu0 %v5908_v63  ;;  %2212 = vmatpush.bf16.msra.mxu1 %v5910_v60  ;;  %7464 = vst [vmem:[#allocation78_spill] sm:$0xff] %v5924_v49  ;;  %v5931_v27 = vor.u32 %v5081_v25, %v4003_v13  ;;  %v4339_v60 = vld [vmem:[#allocation9 + $0x4f0] sm:$0xf0]  ;;  %v5077_v6 = vld [vmem:[#allocation9 + $0x224] sm:$0xf] }
  0xc2   :  { %7465 = vst [vmem:[#allocation79_spill] sm:$0xff] %v5926_v23  ;;  %2176 = vmatmul.bf16.vlgmr.msrb.gmra.mxu2 %v5915_v55  ;;  %v4467_v30 = vld [vmem:[#allocation9 + $0x5f0] sm:$0xf0]  ;;  %v5109_v25 = vld [vmem:[#allocation9 + $0x324] sm:$0xf]  ;;  %v5942_v13 = vor.u32 %v5165_v56, %v4339_v60 }
  0xc3   :  { %2189 = vmatmul.bf16.vlgmr.msrb.gmra.mxu3 %v5920_v8  ;;  %2224 = vmatpush.bf16.msra.mxu2 %v5913_v54  ;;  %7466 = vst [vmem:[#allocation80_spill] sm:$0xff] %v5931_v27  ;;  %v647_v63 = vpop.f32.mrf.mxu2  ;;  %v660_v7 = vpop.f32.mrf.mxu3  ;;  %v3987_v29 = vld [vmem:[#allocation9 + $0x230] sm:$0xf0]  ;;  %v5940_v54 = vor.u32 %v5041_v47, %v3843_v37  ;;  %v5944_v35 = vor.u32 %v5197_v53, %v4467_v30  ;;  %v5073_v17 = vld [vmem:[#allocation9 + $0x204] sm:$0xf] }
  0xc4   :  { %2237 = vmatpush.bf16.msra.mxu3 %v5918_v48  ;;  %7467 = vst [vmem:[#allocation81_spill] sm:$0xff] %v5934_v0  ;;  %v4115_v63 = vld [vmem:[#allocation9 + $0x330] sm:$0xf0]  ;;  %v5161_v48 = vld [vmem:[#allocation9 + $0x4c4] sm:$0xf]  ;;  %v5947_v3 = vor.u32 %v5077_v6, %v3987_v29 }
  0xc5   :  { %2200 = vmatpush.bf16.msra.mxu0 %v5924_v49  ;;  %2213 = vmatpush.bf16.msra.mxu1 %v5926_v23  ;;  %7468 = vst [vmem:[#allocation82_spill] sm:$0xff] %v5938_v51  ;;  %v4323_v42 = vld [vmem:[#allocation9 + $0x4d0] sm:$0xf0]  ;;  %v5193_v7 = vld [vmem:[#allocation9 + $0x5c4] sm:$0xf]  ;;  %v5950_v58 = vor.u32 %v5109_v25, %v4115_v63 }
  0xc6   :  { %7469 = vst [vmem:[#allocation83_spill] sm:$0xff] %v5940_v54  ;;  %v4451_v49 = vld [vmem:[#allocation9 + $0x5d0] sm:$0xf0]  ;;  %v5105_v37 = vld [vmem:[#allocation9 + $0x304] sm:$0xf]  ;;  %v5956_v29 = vor.u32 %v5161_v48, %v4323_v42 }
  0xc7   :  { %7470 = vst [vmem:[#allocation84_spill] sm:$0xff] %v5942_v13  ;;  %2225 = vmatpush.bf16.msra.mxu2 %v5931_v27  ;;  %v3971_v47 = vld [vmem:[#allocation9 + $0x210] sm:$0xf0]  ;;  %v5229_v56 = vld [vmem:[#allocation9 + $0x6e4] sm:$0xf]  ;;  %v5958_v6 = vor.u32 %v5193_v7, %v4451_v49 }
  0xc8   :  { %7471 = vst [vmem:[#allocation85_spill] sm:$0xff] %v5944_v35  ;;  %2238 = vmatpush.bf16.msra.mxu3 %v5934_v0  ;;  %v4099_v60 = vld [vmem:[#allocation9 + $0x310] sm:$0xf0]  ;;  %v5261_v30 = vld [vmem:[#allocation9 + $0x7e4] sm:$0xf]  ;;  %v5961_v0 = vor.u32 %v5073_v17, %v3971_v47 }
  0xc9   :  { %7472 = vst [vmem:[#allocation86_spill] sm:$0xff] %v5947_v3  ;;  %2201 = vmatpush.bf16.msra.mxu0 %v5938_v51  ;;  %2214 = vmatpush.bf16.msra.mxu1 %v5940_v54  ;;  %v4595_v53 = vld [vmem:[#allocation9 + $0x6f0] sm:$0xf0]  ;;  %v5157_v63 = vld [vmem:[#allocation9 + $0x4a4] sm:$0xf] }
  0xca   :  { %7473 = vst [vmem:[#allocation87_spill] sm:$0xff] %v5950_v58  ;;  %v4723_v25 = vld [vmem:[#allocation9 + $0x7f0] sm:$0xf0]  ;;  %v5189_v54 = vld [vmem:[#allocation9 + $0x5a4] sm:$0xf]  ;;  %v5967_v48 = vor.u32 %v5229_v56, %v4595_v53 }
  0xcb   :  { %7474 = vst [vmem:[#allocation88_spill] sm:$0xff] %v5956_v29  ;;  %2226 = vmatpush.bf16.msra.mxu2 %v5947_v3  ;;  %v4307_v51 = vld [vmem:[#allocation9 + $0x4b0] sm:$0xf0]  ;;  %v5970_v49 = vor.u32 %v5261_v30, %v4723_v25  ;;  %v5225_v42 = vld [vmem:[#allocation9 + $0x6c4] sm:$0xf]  ;;  %v690_v25 = vpop.f32.mrf.mxu0 }
  0xcc   :  { %7475 = vst [vmem:[#allocation89_spill] sm:$0xff] %v5958_v6  ;;  %v4435_v27 = vld [vmem:[#allocation9 + $0x5b0] sm:$0xf0]  ;;  %2239 = vmatpush.bf16.msra.mxu3 %v5950_v58  ;;  %2202 = vmatmul.bf16.vlgmr.msra.gmra.mxu0 %v5823_v12  ;;  %v5974_v17 = vor.u32 %v5157_v63, %v4307_v51  ;;  %v5257_v58 = vld [vmem:[#allocation9 + $0x7c4] sm:$0xf]  ;;  %v7484_v63 = vperm.slane %v5812_v36, 0 }
  0xcd   :  { %2246 = vmatpush.bf16.msrb.mxu0 %v5942_v13  ;;  %2259 = vmatpush.bf16.msrb.mxu1 %v5944_v35  ;;  %7476 = vst [vmem:[#allocation90_spill] sm:$0xff] %v5961_v0  ;;  %v5965_v13 = vor.u32 %v5105_v37, %v4099_v60  ;;  %v4579_v7 = vld [vmem:[#allocation9 + $0x6d0] sm:$0xf0]  ;;  %v5976_v47 = vor.u32 %v5189_v54, %v4435_v27  ;;  %v5153_v37 = vld [vmem:[#allocation9 + $0x484] sm:$0xf] }
  0xce   :  { %7478 = vst [vmem:[#allocation92_spill] sm:$0xff] %v5967_v48  ;;  %2215 = vmatmul.bf16.vlgmr.msra.gmra.mxu1 %v5828_v43  ;;  %v4707_v3 = vld [vmem:[#allocation9 + $0x7d0] sm:$0xf0]  ;;  %v5185_v56 = vld [vmem:[#allocation9 + $0x584] sm:$0xf]  ;;  %v5981_v30 = vor.u32 %v5225_v42, %v4579_v7 }
  0xcf   :  { %7477 = vst [vmem:[#allocation91_spill] sm:$0xff] %v5965_v13  ;;  %2227 = vmatpush.bf16.msra.mxu2 %v5961_v0  ;;  %v4291_v60 = vld [vmem:[#allocation9 + $0x490] sm:$0xf0]  ;;  %v5984_v51 = vor.u32 %v5257_v58, %v4707_v3  ;;  %v5221_v54 = vld [vmem:[#allocation9 + $0x6a4] sm:$0xf] }
  0xd0   :  { %7479 = vst [vmem:[#allocation93_spill] sm:$0xff] %v5970_v49  ;;  %v4419_v53 = vld [vmem:[#allocation9 + $0x590] sm:$0xf0]  ;;  %2240 = vmatpush.bf16.msra.mxu3 %v5965_v13  ;;  %v5992_v13 = vor.u32 %v5153_v37, %v4291_v60  ;;  %v5253_v42 = vld [vmem:[#allocation9 + $0x7a4] sm:$0xf]  ;;  %v716_v60 = vpop.f32.mrf.mxu2 }
  0xd1   :  { %2247 = vmatpush.bf16.msrb.mxu0 %v5956_v29  ;;  %2260 = vmatpush.bf16.msrb.mxu1 %v5958_v6  ;;  %7480 = vst [vmem:[#allocation94_spill] sm:$0xff] %v5974_v17  ;;  %v4563_v27 = vld [vmem:[#allocation9 + $0x6b0] sm:$0xf0]  ;;  %v5988_v6 = vadd.f32 %v690_v25, %v7484_v63  ;;  %v5149_v0 = vld [vmem:[#allocation9 + $0x464] sm:$0xf]  ;;  %v7487_v63 = vperm.slane %v5812_v36, 1 }
  0xd2   :  { %7481 = vst [vmem:[#allocation95_spill] sm:$0xff] %v5976_v47  ;;  %v4691_v7 = vld [vmem:[#allocation9 + $0x7b0] sm:$0xf0]  ;;  %2228 = vmatmul.bf16.vlgmr.msra.gmra.mxu2 %v5845_v24  ;;  %v5181_v58 = vld [vmem:[#allocation9 + $0x564] sm:$0xf]  ;;  %v6003_v37 = vor.u32 %v5221_v54, %v4563_v27  ;;  %v7490_v29 = vperm.slane %v5812_v36, 2 }
  0xd3   :  { %2272 = vmatpush.bf16.msrb.mxu2 %v5967_v48  ;;  %7482 = vst [vmem:[#allocation96_spill] sm:$0xff] %v5981_v30  ;;  %v5994_v48 = vor.u32 %v5185_v56, %v4419_v53  ;;  %2241 = vmatmul.bf16.vlgmr.msra.gmra.mxu3 %v5852_v19  ;;  %v4275_v3 = vld [vmem:[#allocation9 + $0x470] sm:$0xf0]  ;;  %v6006_v56 = vor.u32 %v5253_v42, %v4691_v7  ;;  %v5217_v53 = vld [vmem:[#allocation9 + $0x684] sm:$0xf] }
  0xd4   :  { %2285 = vmatpush.bf16.msrb.mxu3 %v5970_v49  ;;  %7483 = vst [vmem:[#allocation97_spill] sm:$0xff] %v5984_v51  ;;  %v703_v49 = vpop.f32.mrf.mxu1  ;;  %v4403_v25 = vld [vmem:[#allocation9 + $0x570] sm:$0xf0]  ;;  %v6010_v35 = vadd.f32 %v716_v60, %v7490_v29  ;;  %v5249_v54 = vld [vmem:[#allocation9 + $0x784] sm:$0xf]  ;;  %v692_v60 = vpop.f32.mrf.mxu0 }
  0xd5   :  { %2248 = vmatpush.bf16.msrb.mxu0 %v5974_v17  ;;  %2261 = vmatpush.bf16.msrb.mxu1 %v5976_v47  ;;  %7485 = vst [vmem:[#allocation98_spill] sm:$0xff] %v5992_v13  ;;  %v6000_v17 = vadd.f32 %v703_v49, %v7487_v63  ;;  %v4547_v47 = vld [vmem:[#allocation9 + $0x690] sm:$0xf0]  ;;  %v6014_v49 = vor.u32 %v5149_v0, %v4275_v3  ;;  %v5177_v7 = vld [vmem:[#allocation9 + $0x544] sm:$0xf] }
  0xd6   :  { %7486 = vst [vmem:[#allocation99_spill] sm:$0xff] %v5994_v48  ;;  %v6016_v63 = vor.u32 %v5181_v58, %v4403_v25  ;;  %v4675_v27 = vld [vmem:[#allocation9 + $0x790] sm:$0xf0]  ;;  %v6023_v29 = vor.u32 %v5217_v53, %v4547_v47  ;;  %v5213_v3 = vld [vmem:[#allocation9 + $0x664] sm:$0xf] }
  0xd7   :  { %2273 = vmatpush.bf16.msrb.mxu2 %v5981_v30  ;;  %7488 = vst [vmem:[#allocation100_spill] sm:$0xff] %v6003_v37  ;;  %v5145_v30 = vld [vmem:[#allocation9 + $0x444] sm:$0xf]  ;;  %v4259_v42 = vld [vmem:[#allocation9 + $0x450] sm:$0xf0]  ;;  %v6026_v0 = vor.u32 %v5249_v54, %v4675_v27 }
  0xd8   :  { %2286 = vmatpush.bf16.msrb.mxu3 %v5984_v51  ;;  %7489 = vst [vmem:[#allocation101_spill] sm:$0xff] %v6006_v56  ;;  %v729_v51 = vpop.f32.mrf.mxu3  ;;  %v4387_v23 = vld [vmem:[#allocation9 + $0x550] sm:$0xf0]  ;;  %v6030_v25 = vor.u32 %v5145_v30, %v4259_v42  ;;  %v5173_v60 = vld [vmem:[#allocation9 + $0x524] sm:$0xf]  ;;  %v718_v27 = vpop.f32.mrf.mxu2 }
  0xd9   :  { %7491 = vst [vmem:[#allocation102_spill] sm:$0xff] %v6010_v35  ;;  %2249 = vmatpush.bf16.msrb.mxu0 %v5992_v13  ;;  %2262 = vmatpush.bf16.msrb.mxu1 %v5994_v48  ;;  %v6020_v44 = vadd.f32 %v729_v51, %v7494_v20  ;;  %v4531_v58 = vld [vmem:[#allocation9 + $0x670] sm:$0xf0]  ;;  %v6032_v48 = vor.u32 %v5177_v7, %v4387_v23  ;;  %v5245_v20 = vld [vmem:[#allocation9 + $0x764] sm:$0xf] }
  0xda   :  { %7492 = vst [vmem:[#allocation103_spill] sm:$0xff] %v6014_v49  ;;  %v4659_v51 = vld [vmem:[#allocation9 + $0x770] sm:$0xf0]  ;;  %v6035_v54 = vor.u32 %v5213_v3, %v4531_v58  ;;  %v5209_v30 = vld [vmem:[#allocation9 + $0x644] sm:$0xf] }
  0xdb   :  { %7493 = vst [vmem:[#allocation104_spill] sm:$0xff] %v6016_v63  ;;  %2274 = vmatpush.bf16.msrb.mxu2 %v6003_v37  ;;  %v5141_v37 = vld [vmem:[#allocation9 + $0x424] sm:$0xf]  ;;  %v4243_v53 = vld [vmem:[#allocation9 + $0x430] sm:$0xf0] }
  0xdc   :  { %7495 = vst [vmem:[#allocation105_spill] sm:$0xff] %v6020_v44  ;;  %2287 = vmatpush.bf16.msrb.mxu3 %v6006_v56  ;;  %v705_v47 = vpop.f32.mrf.mxu1  ;;  %v4371_v13 = vld [vmem:[#allocation9 + $0x530] sm:$0xf0]  ;;  %v5241_v23 = vld [vmem:[#allocation9 + $0x744] sm:$0xf]  ;;  %v6042_v7 = vor.u32 %v5141_v37, %v4243_v53 }
  0xdd   :  { %7496 = vst [vmem:[#allocation106_spill] sm:$0xff] %v6023_v29  ;;  %2250 = vmatpush.bf16.msrb.mxu0 %v6014_v49  ;;  %2263 = vmatpush.bf16.msrb.mxu1 %v6016_v63  ;;  %v6038_v49 = vor.u32 %v5245_v20, %v4659_v51  ;;  %v4515_v42 = vld [vmem:[#allocation9 + $0x650] sm:$0xf0]  ;;  %v6044_v47 = vor.u32 %v5173_v60, %v4371_v13  ;;  %v5169_v27 = vld [vmem:[#allocation9 + $0x504] sm:$0xf] }
  0xde   :  { %7497 = vst [vmem:[#allocation107_spill] sm:$0xff] %v6026_v0  ;;  %v4643_v63 = vld [vmem:[#allocation9 + $0x750] sm:$0xf0]  ;;  %v6047_v20 = vor.u32 %v5209_v30, %v4515_v42  ;;  %v5040_v51 = vld [vmem:[#allocation9 + $0xf4] sm:$0xf0] }
  0xdf   :  { %7498 = vst [vmem:[#allocation108_spill] sm:$0xff] %v6030_v25  ;;  %2275 = vmatpush.bf16.msrb.mxu2 %v6023_v29  ;;  %v5137_v29 = vld [vmem:[#allocation9 + $0x404] sm:$0xf]  ;;  %v4227_v3 = vld [vmem:[#allocation9 + $0x410] sm:$0xf0]  ;;  %v6050_v37 = vor.u32 %v5241_v23, %v4643_v63 }
  0xe0   :  { %7499 = vst [vmem:[#allocation109_spill] sm:$0xff] %v6032_v48  ;;  %2288 = vmatpush.bf16.msrb.mxu3 %v6026_v0  ;;  %v731_v58 = vpop.f32.mrf.mxu3  ;;  %v4355_v56 = vld [vmem:[#allocation9 + $0x510] sm:$0xf0]  ;;  %v3833_v0 = vld [vmem:[#allocation9 + $0xe8] sm:$0xf]  ;;  %v6054_v60 = vor.u32 %v5137_v29, %v4227_v3 }
  0xe1   :  { %7500 = vst [vmem:[#allocation110_spill] sm:$0xff] %v6035_v54  ;;  %2251 = vmatpush.bf16.msrb.mxu0 %v6030_v25  ;;  %2264 = vmatpush.bf16.msrb.mxu1 %v6032_v48  ;;  %v3961_v44 = vld [vmem:[#allocation9 + $0x1e8] sm:$0xf]  ;;  %v5072_v25 = vld [vmem:[#allocation9 + $0x1f4] sm:$0xf0]  ;;  %v6056_v58 = vor.u32 %v5169_v27, %v4355_v56  ;;  %v6058_v42 = vor.u32 %v5040_v51, %v3833_v0 }
  0xe2   :  { %7501 = vst [vmem:[#allocation111_spill] sm:$0xff] %v6038_v49  ;;  %v5205_v13 = vld [vmem:[#allocation9 + $0x624] sm:$0xf]  ;;  %v4499_v53 = vld [vmem:[#allocation9 + $0x630] sm:$0xf0]  ;;  %v6060_v48 = vor.u32 %v5072_v25, %v3961_v44 }
  0xe3   :  { %7502 = vst [vmem:[#allocation112_spill] sm:$0xff] %v6042_v7  ;;  %2276 = vmatpush.bf16.msrb.mxu2 %v6035_v54  ;;  %v5237_v54 = vld [vmem:[#allocation9 + $0x724] sm:$0xf]  ;;  %v4627_v30 = vld [vmem:[#allocation9 + $0x730] sm:$0xf0]  ;;  %v6063_v63 = vor.u32 %v5205_v13, %v4499_v53 }
  0xe4   :  { %7503 = vst [vmem:[#allocation113_spill] sm:$0xff] %v6044_v47  ;;  %2289 = vmatpush.bf16.msrb.mxu3 %v6038_v49  ;;  %v3817_v35 = vld [vmem:[#allocation9 + $0xc8] sm:$0xf]  ;;  %v5036_v23 = vld [vmem:[#allocation9 + $0xd4] sm:$0xf0]  ;;  %v6066_v29 = vor.u32 %v5237_v54, %v4627_v30 }
  0xe5   :  { %7504 = vst [vmem:[#allocation114_spill] sm:$0xff] %v6047_v20  ;;  %2252 = vmatpush.bf16.msrb.mxu0 %v6042_v7  ;;  %2265 = vmatpush.bf16.msrb.mxu1 %v6044_v47  ;;  %v3945_v49 = vld [vmem:[#allocation9 + $0x1c8] sm:$0xf]  ;;  %v5068_v7 = vld [vmem:[#allocation9 + $0x1d4] sm:$0xf0]  ;;  %v6072_v51 = vor.u32 %v5036_v23, %v3817_v35 }
  0xe6   :  { %7505 = vst [vmem:[#allocation115_spill] sm:$0xff] %v6050_v37  ;;  %v5201_v56 = vld [vmem:[#allocation9 + $0x604] sm:$0xf]  ;;  %v4483_v3 = vld [vmem:[#allocation9 + $0x610] sm:$0xf0]  ;;  %v6074_v13 = vor.u32 %v5068_v7, %v3945_v49 }
  0xe7   :  { %7506 = vst [vmem:[#allocation116_spill] sm:$0xff] %v6054_v60  ;;  %2277 = vmatpush.bf16.msrb.mxu2 %v6047_v20  ;;  %v5233_v27 = vld [vmem:[#allocation9 + $0x704] sm:$0xf]  ;;  %v4611_v44 = vld [vmem:[#allocation9 + $0x710] sm:$0xf0]  ;;  %v6077_v30 = vor.u32 %v5201_v56, %v4483_v3 }
  0xe8   :  { %7507 = vst [vmem:[#allocation117_spill] sm:$0xff] %v6056_v58  ;;  %2290 = vmatpush.bf16.msrb.mxu3 %v6050_v37  ;;  %v4089_v0 = vld [vmem:[#allocation9 + $0x2e8] sm:$0xf]  ;;  %v5104_v25 = vld [vmem:[#allocation9 + $0x2f4] sm:$0xf0] }
  0xe9   :  { %7508 = vst [vmem:[#allocation118_spill] sm:$0xff] %v6058_v42  ;;  %2253 = vmatpush.bf16.msrb.mxu0 %v6054_v60  ;;  %2266 = vmatpush.bf16.msrb.mxu1 %v6056_v58  ;;  %v4217_v54 = vld [vmem:[#allocation9 + $0x3e8] sm:$0xf]  ;;  %v5136_v53 = vld [vmem:[#allocation9 + $0x3f4] sm:$0xf0]  ;;  %v6081_v58 = vor.u32 %v5233_v27, %v4611_v44 }
  0xea   :  { %7509 = vst [vmem:[#allocation119_spill] sm:$0xff] %v6060_v48  ;;  %v3801_v60 = vld [vmem:[#allocation9 + $0xa8] sm:$0xf]  ;;  %v5032_v37 = vld [vmem:[#allocation9 + $0xb4] sm:$0xf0]  ;;  %v6086_v49 = vor.u32 %v5136_v53, %v4217_v54 }
  0xeb   :  { %7510 = vst [vmem:[#allocation120_spill] sm:$0xff] %v6063_v63  ;;  %2278 = vmatpush.bf16.msrb.mxu2 %v6063_v63  ;;  %v3929_v35 = vld [vmem:[#allocation9 + $0x1a8] sm:$0xf]  ;;  %v5064_v23 = vld [vmem:[#allocation9 + $0x1b4] sm:$0xf0]  ;;  %v6090_v56 = vor.u32 %v5032_v37, %v3801_v60 }
  0xec   :  { %7511 = vst [vmem:[#allocation121_spill] sm:$0xff] %v6066_v29  ;;  %2291 = vmatpush.bf16.msrb.mxu3 %v6066_v29  ;;  %2254 = vmatmul.bf16.vlgmr.msrb.gmra.mxu0 %v5885_v18  ;;  %v4073_v7 = vld [vmem:[#allocation9 + $0x2c8] sm:$0xf]  ;;  %v5100_v63 = vld [vmem:[#allocation9 + $0x2d4] sm:$0xf0]  ;;  %v6093_v27 = vor.u32 %v5064_v23, %v3929_v35  ;;  %v7522_v35 = vperm.slane %v5812_v36, 4 }
  0xed   :  { %2298 = vmatpush.bf16.msra.mxu0 %v6058_v42  ;;  %2311 = vmatpush.bf16.msra.mxu1 %v6060_v48  ;;  %7512 = vst [vmem:[#allocation122_spill] sm:$0xff] %v6072_v51  ;;  %v6083_v42 = vor.u32 %v5104_v25, %v4089_v0  ;;  %v4201_v3 = vld [vmem:[#allocation9 + $0x3c8] sm:$0xf]  ;;  %v5132_v29 = vld [vmem:[#allocation9 + $0x3d4] sm:$0xf0]  ;;  %v6097_v25 = vor.u32 %v5100_v63, %v4073_v7 }
  0xee   :  { %7513 = vst [vmem:[#allocation123_spill] sm:$0xff] %v6074_v13  ;;  %2267 = vmatmul.bf16.vlgmr.msrb.gmra.mxu1 %v5892_v31  ;;  %v3785_v44 = vld [vmem:[#allocation9 + $0x88] sm:$0xf]  ;;  %v5028_v0 = vld [vmem:[#allocation9 + $0x94] sm:$0xf0]  ;;  %v6100_v37 = vor.u32 %v5132_v29, %v4201_v3 }
  0xef   :  { %7514 = vst [vmem:[#allocation124_spill] sm:$0xff] %v6077_v30  ;;  %2279 = vmatpush.bf16.msrb.mxu2 %v6077_v30  ;;  %v3913_v54 = vld [vmem:[#allocation9 + $0x188] sm:$0xf]  ;;  %v5060_v53 = vld [vmem:[#allocation9 + $0x194] sm:$0xf0]  ;;  %v768_v30 = vpop.f32.mrf.mxu2 }
  0xf0   :  { %7515 = vst [vmem:[#allocation125_spill] sm:$0xff] %v6081_v58  ;;  %2292 = vmatpush.bf16.msrb.mxu3 %v6081_v58  ;;  %v4057_v60 = vld [vmem:[#allocation9 + $0x2a8] sm:$0xf]  ;;  %v5128_v7 = vld [vmem:[#allocation9 + $0x3b4] sm:$0xf0]  ;;  %v755_v58 = vpop.f32.mrf.mxu1  ;;  %v6112_v29 = vor.u32 %v5060_v53, %v3913_v54  ;;  %v7530_v53 = vperm.slane %v5812_v36, 6 }
  0xf1   :  { %7516 = vst [vmem:[#allocation126_spill] sm:$0xff] %v6083_v42  ;;  %2299 = vmatpush.bf16.msra.mxu0 %v6072_v51  ;;  %2312 = vmatpush.bf16.msra.mxu1 %v6074_v13  ;;  %v742_v51 = vpop.f32.mrf.mxu0  ;;  %v5096_v13 = vld [vmem:[#allocation9 + $0x2b4] sm:$0xf0]  ;;  %v4185_v63 = vld [vmem:[#allocation9 + $0x3a8] sm:$0xf] }
  0xf2   :  { %7517 = vst [vmem:[#allocation127_spill] sm:$0xff] %v6086_v49  ;;  %v6104_v23 = vadd.f32 %v742_v51, %v7522_v35  ;;  %2280 = vmatmul.bf16.vlgmr.msrb.gmra.mxu2 %v5915_v55  ;;  %v3769_v3 = vld [vmem:[#allocation9 + $0x68] sm:$0xf]  ;;  %v7526_v51 = vperm.slane %v5812_v36, 5  ;;  %v6122_v48 = vor.u32 %v5128_v7, %v4185_v63  ;;  %v5092_v54 = vld [vmem:[#allocation9 + $0x294] sm:$0xf0]  ;;  %v6126_v20 = vadd.f32 %v768_v30, %v7530_v53 }
  0xf3   :  { %7518 = vst [vmem:[#allocation128_spill] sm:$0xff] %v6090_v56  ;;  %2324 = vmatpush.bf16.msra.mxu2 %v6083_v42  ;;  %v6108_v42 = vor.u32 %v5028_v0, %v3785_v44  ;;  %2293 = vmatmul.bf16.vlgmr.msrb.gmra.mxu3 %v5920_v8  ;;  %v3897_v44 = vld [vmem:[#allocation9 + $0x168] sm:$0xf]  ;;  %v5056_v0 = vld [vmem:[#allocation9 + $0x174] sm:$0xf0]  ;;  %v7534_v7 = vperm.slane %v5812_v36, 7 }
  0xf4   :  { %7519 = vst [vmem:[#allocation129_spill] sm:$0xff] %v6093_v27  ;;  %2337 = vmatpush.bf16.msra.mxu3 %v6086_v49  ;;  %v5024_v49 = vld [vmem:[#allocation9 + $0x74] sm:$0xf0]  ;;  %v6116_v35 = vadd.f32 %v755_v58, %v7526_v51  ;;  %v4169_v51 = vld [vmem:[#allocation9 + $0x388] sm:$0xf] }
  0xf5   :  { %7520 = vst [vmem:[#allocation130_spill] sm:$0xff] %v6097_v25  ;;  %2300 = vmatpush.bf16.msra.mxu0 %v6090_v56  ;;  %2313 = vmatpush.bf16.msra.mxu1 %v6093_v27  ;;  %v6119_v56 = vor.u32 %v5096_v13, %v4057_v60  ;;  %v4041_v27 = vld [vmem:[#allocation9 + $0x288] sm:$0xf]  ;;  %v6129_v58 = vor.u32 %v5024_v49, %v3769_v3  ;;  %v5124_v13 = vld [vmem:[#allocation9 + $0x394] sm:$0xf0]  ;;  %v781_v60 = vpop.f32.mrf.mxu3 }
  0xf6   :  { %7521 = vst [vmem:[#allocation131_spill] sm:$0xff] %v6100_v37  ;;  %v5020_v63 = vld [vmem:[#allocation9 + $0x54] sm:$0xf0]  ;;  %v6136_v47 = vadd.f32 %v781_v60, %v7534_v7  ;;  %v6139_v30 = vor.u32 %v5092_v54, %v4041_v27  ;;  %v3881_v53 = vld [vmem:[#allocation9 + $0x148] sm:$0xf] }
  0xf7   :  { %7523 = vst [vmem:[#allocation132_spill] sm:$0xff] %v6104_v23  ;;  %2325 = vmatpush.bf16.msra.mxu2 %v6097_v25  ;;  %v6132_v25 = vor.u32 %v5056_v0, %v3897_v44  ;;  %v5052_v49 = vld [vmem:[#allocation9 + $0x154] sm:$0xf0]  ;;  %v4153_v36 = vld [vmem:[#allocation9 + $0x368] sm:$0xf] }
  0xf8   :  { %7524 = vst [vmem:[#allocation133_spill] sm:$0xff] %v6108_v42  ;;  %2338 = vmatpush.bf16.msra.mxu3 %v6100_v37  ;;  %v3753_v37 = vld [vmem:[#allocation9 + $0x48] sm:$0xf]  ;;  %v5088_v44 = vld [vmem:[#allocation9 + $0x274] sm:$0xf0]  ;;  %v757_v7 = vpop.f32.mrf.mxu1  ;;  %v6148_v27 = vor.u32 %v5052_v49, %v3881_v53 }
  0xf9   :  { %7525 = vst [vmem:[#allocation134_spill] sm:$0xff] %v6112_v29  ;;  %2301 = vmatpush.bf16.msra.mxu0 %v6108_v42  ;;  %2314 = vmatpush.bf16.msra.mxu1 %v6112_v29  ;;  %v744_v3 = vpop.f32.mrf.mxu0  ;;  %v6142_v42 = vor.u32 %v5124_v13, %v4169_v51  ;;  %v4025_v29 = vld [vmem:[#allocation9 + $0x268] sm:$0xf]  ;;  %v6145_v0 = vor.u32 %v5020_v63, %v3753_v37  ;;  %v5120_v60 = vld [vmem:[#allocation9 + $0x374] sm:$0xf0] }
  0xfa   :  { %7527 = vst [vmem:[#allocation135_spill] sm:$0xff] %v6116_v35  ;;  %v3737_v54 = vld [vmem:[#allocation9 + $0x28] sm:$0xf]  ;;  %v6151_v3 = vor.u32 %v5088_v44, %v4025_v29  ;;  %v5048_v13 = vld [vmem:[#allocation9 + $0x134] sm:$0xf0]  ;;  %v6154_v37 = vor.u32 %v5120_v60, %v4153_v36 }
  0xfb   :  { %7528 = vst [vmem:[#allocation136_spill] sm:$0xff] %v6119_v56  ;;  %2326 = vmatpush.bf16.msra.mxu2 %v6119_v56  ;;  %v5016_v56 = vld [vmem:[#allocation9 + $0x34] sm:$0xf0]  ;;  %v3865_v51 = vld [vmem:[#allocation9 + $0x128] sm:$0xf] }
  0xfc   :  { %7529 = vst [vmem:[#allocation137_spill] sm:$0xff] %v6122_v48  ;;  %2339 = vmatpush.bf16.msra.mxu3 %v6122_v48  ;;  %v770_v48 = vpop.f32.mrf.mxu2  ;;  %v4009_v63 = vld [vmem:[#allocation9 + $0x248] sm:$0xf]  ;;  %v6157_v7 = vor.u32 %v5016_v56, %v3737_v54  ;;  %v5116_v49 = vld [vmem:[#allocation9 + $0x354] sm:$0xf0]  ;;  %v6160_v29 = vor.u32 %v5048_v13, %v3865_v51 }
  0xfd   :  { %7531 = vst [vmem:[#allocation138_spill] sm:$0xff] %v6126_v20  ;;  %2302 = vmatpush.bf16.msra.mxu0 %v6129_v58  ;;  %2315 = vmatpush.bf16.msra.mxu1 %v6132_v25  ;;  %v4137_v53 = vld [vmem:[#allocation9 + $0x348] sm:$0xf]  ;;  %v5012_v44 = vld [vmem:[#allocation9 + $0x14] sm:$0xf0] }
  0xfe   :  { %7532 = vst [vmem:[#allocation139_spill] sm:$0xff] %v6129_v58  ;;  %v5084_v58 = vld [vmem:[#allocation9 + $0x254] sm:$0xf0]  ;;  %v3849_v48 = vld [vmem:[#allocation9 + $0x108] sm:$0xf]  ;;  %v6166_v56 = vor.u32 %v5116_v49, %v4137_v53 }
  0xff   :  { %7533 = vst [vmem:[#allocation140_spill] sm:$0xff] %v6132_v25  ;;  %2327 = vmatpush.bf16.msra.mxu2 %v6139_v30  ;;  %v3721_v25 = vld [vmem:[#allocation9 + $0x8] sm:$0xf]  ;;  %v6163_v36 = vor.u32 %v5084_v58, %v4009_v63  ;;  %v5200_v54 = vld [vmem:[#allocation9 + $0x5f4] sm:$0xf0] }
 0x100   :  { %7535 = vst [vmem:[#allocation141_spill] sm:$0xff] %v6136_v47  ;;  %2340 = vmatpush.bf16.msra.mxu3 %v6142_v42  ;;  %v783_v47 = vpop.f32.mrf.mxu3  ;;  %v4345_v60 = vld [vmem:[#allocation9 + $0x4e8] sm:$0xf]  ;;  %v5080_v20 = vld [vmem:[#allocation9 + $0x234] sm:$0xf0]  ;;  %v6169_v51 = vor.u32 %v5012_v44, %v3721_v25 }
 0x101   :  { %7536 = vst [vmem:[#allocation142_spill] sm:$0xff] %v6139_v30  ;;  %2303 = vmatpush.bf16.msra.mxu0 %v6145_v0  ;;  %2316 = vmatpush.bf16.msra.mxu1 %v6148_v27  ;;  %v5044_v30 = vld [vmem:[#allocation9 + $0x114] sm:$0xf0]  ;;  %v3993_v47 = vld [vmem:[#allocation9 + $0x228] sm:$0xf] }
 0x102   :  { %7537 = vst [vmem:[#allocation143_spill] sm:$0xff] %v6142_v42  ;;  %v5168_v42 = vld [vmem:[#allocation9 + $0x4f4] sm:$0xf0]  ;;  %v4121_v13 = vld [vmem:[#allocation9 + $0x328] sm:$0xf]  ;;  %v6172_v58 = vor.u32 %v5044_v30, %v3849_v48  ;;  %v6179_v49 = vor.u32 %v5080_v20, %v3993_v47 }
 0x103   :  { %7538 = vst [vmem:[#allocation144_spill] sm:$0xff] %v6145_v0  ;;  %2328 = vmatpush.bf16.msra.mxu2 %v6151_v3  ;;  %v4473_v0 = vld [vmem:[#allocation9 + $0x5e8] sm:$0xf]  ;;  %v6174_v63 = vor.u32 %v5168_v42, %v4345_v60  ;;  %v5108_v42 = vld [vmem:[#allocation9 + $0x314] sm:$0xf0] }
 0x104   :  { %7539 = vst [vmem:[#allocation145_spill] sm:$0xff] %v6148_v27  ;;  %2341 = vmatpush.bf16.msra.mxu3 %v6154_v37  ;;  %v5112_v27 = vld [vmem:[#allocation9 + $0x334] sm:$0xf0]  ;;  %v6177_v53 = vor.u32 %v5200_v54, %v4473_v0  ;;  %v4457_v35 = vld [vmem:[#allocation9 + $0x5c8] sm:$0xf] }
 0x105   :  { %7540 = vst [vmem:[#allocation146_spill] sm:$0xff] %v6151_v3  ;;  %2304 = vmatpush.bf16.msra.mxu0 %v6157_v7  ;;  %2317 = vmatpush.bf16.msra.mxu1 %v6160_v29  ;;  %v4329_v3 = vld [vmem:[#allocation9 + $0x4c8] sm:$0xf]  ;;  %v6182_v25 = vor.u32 %v5112_v27, %v4121_v13  ;;  %v5232_v60 = vld [vmem:[#allocation9 + $0x6f4] sm:$0xf0] }
 0x106   :  { %7541 = vst [vmem:[#allocation147_spill] sm:$0xff] %v6154_v37  ;;  %v5164_v37 = vld [vmem:[#allocation9 + $0x4d4] sm:$0xf0]  ;;  %v3977_v44 = vld [vmem:[#allocation9 + $0x208] sm:$0xf] }
 0x107   :  { %7542 = vst [vmem:[#allocation148_spill] sm:$0xff] %v6157_v7  ;;  %2329 = vmatpush.bf16.msra.mxu2 %v6163_v36  ;;  %v5196_v7 = vld [vmem:[#allocation9 + $0x5d4] sm:$0xf0]  ;;  %v4105_v30 = vld [vmem:[#allocation9 + $0x308] sm:$0xf]  ;;  %v6187_v20 = vor.u32 %v5164_v37, %v4329_v3 }
 0x108   :  { %7543 = vst [vmem:[#allocation149_spill] sm:$0xff] %v6160_v29  ;;  %2342 = vmatpush.bf16.msra.mxu3 %v6166_v56  ;;  %v5076_v29 = vld [vmem:[#allocation9 + $0x214] sm:$0xf0]  ;;  %v4601_v48 = vld [vmem:[#allocation9 + $0x6e8] sm:$0xf]  ;;  %v6191_v27 = vor.u32 %v5196_v7, %v4457_v35 }
 0x109   :  { %7544 = vst [vmem:[#allocation150_spill] sm:$0xff] %v6163_v36  ;;  %2305 = vmatpush.bf16.msra.mxu0 %v6169_v51  ;;  %2318 = vmatpush.bf16.msra.mxu1 %v6172_v58  ;;  %v4729_v0 = vld [vmem:[#allocation9 + $0x7e8] sm:$0xf]  ;;  %v5264_v54 = vld [vmem:[#allocation9 + $0x7f4] sm:$0xf0]  ;;  %v6193_v47 = vor.u32 %v5076_v29, %v3977_v44  ;;  %v6199_v3 = vor.u32 %v5232_v60, %v4601_v48 }
 0x10a   :  { %7545 = vst [vmem:[#allocation151_spill] sm:$0xff] %v6166_v56  ;;  %v4313_v13 = vld [vmem:[#allocation9 + $0x4a8] sm:$0xf]  ;;  %v5228_v7 = vld [vmem:[#allocation9 + $0x6d4] sm:$0xf0] }
 0x10b   :  { %7546 = vst [vmem:[#allocation152_spill] sm:$0xff] %v6169_v51  ;;  %2330 = vmatpush.bf16.msra.mxu2 %v6179_v49  ;;  %v5160_v51 = vld [vmem:[#allocation9 + $0x4b4] sm:$0xf0]  ;;  %v4441_v37 = vld [vmem:[#allocation9 + $0x5a8] sm:$0xf] }
 0x10c   :  { %7547 = vst [vmem:[#allocation153_spill] sm:$0xff] %v6172_v58  ;;  %2343 = vmatpush.bf16.msra.mxu3 %v6182_v25  ;;  %2306 = vmatmul.bf16.vlgmr.msra.gmra.mxu0 %v5823_v12  ;;  %v6197_v58 = vor.u32 %v5108_v42, %v4105_v30  ;;  %v4585_v35 = vld [vmem:[#allocation9 + $0x6c8] sm:$0xf]  ;;  %v6205_v29 = vor.u32 %v5160_v51, %v4313_v13  ;;  %v5156_v48 = vld [vmem:[#allocation9 + $0x494] sm:$0xf0] }
 0x10d   :  { %7548 = vst [vmem:[#allocation154_spill] sm:$0xff] %v6174_v63  ;;  %2350 = vmatpush.bf16.msrb.mxu0 %v6174_v63  ;;  %2363 = vmatpush.bf16.msrb.mxu1 %v6177_v53  ;;  %v5192_v63 = vld [vmem:[#allocation9 + $0x5b4] sm:$0xf0]  ;;  %v4713_v44 = vld [vmem:[#allocation9 + $0x7c8] sm:$0xf]  ;;  %v6213_v60 = vor.u32 %v5228_v7, %v4585_v35 }
 0x10e   :  { %7549 = vst [vmem:[#allocation155_spill] sm:$0xff] %v6177_v53  ;;  %2319 = vmatmul.bf16.vlgmr.msra.gmra.mxu1 %v5828_v43  ;;  %v6202_v53 = vor.u32 %v5264_v54, %v4729_v0  ;;  %v6209_v30 = vor.u32 %v5192_v63, %v4441_v37  ;;  %v4297_v42 = vld [vmem:[#allocation9 + $0x488] sm:$0xf]  ;;  %v5188_v54 = vld [vmem:[#allocation9 + $0x594] sm:$0xf0] }
 0x10f   :  { %7550 = vst [vmem:[#allocation156_spill] sm:$0xff] %v6179_v49  ;;  %2331 = vmatpush.bf16.msra.mxu2 %v6193_v47  ;;  %v4425_v0 = vld [vmem:[#allocation9 + $0x588] sm:$0xf]  ;;  %v6220_v63 = vor.u32 %v5156_v48, %v4297_v42  ;;  %v5070_v49 = vld [vmem:[#allocation9 + $0x1ec] sm:$0xf] }
 0x110   :  { %7551 = vst [vmem:[#allocation157_spill] sm:$0xff] %v6182_v25  ;;  %v5260_v25 = vld [vmem:[#allocation9 + $0x7d4] sm:$0xf0]  ;;  %2344 = vmatpush.bf16.msra.mxu3 %v6197_v58  ;;  %v4569_v13 = vld [vmem:[#allocation9 + $0x6a8] sm:$0xf]  ;;  %v6224_v35 = vor.u32 %v5188_v54, %v4425_v0 }
 0x111   :  { %7552 = vst [vmem:[#allocation158_spill] sm:$0xff] %v6187_v20  ;;  %2351 = vmatpush.bf16.msrb.mxu0 %v6187_v20  ;;  %2364 = vmatpush.bf16.msrb.mxu1 %v6191_v27  ;;  %v6216_v51 = vor.u32 %v5260_v25, %v4713_v44  ;;  %v4697_v37 = vld [vmem:[#allocation9 + $0x7a8] sm:$0xf]  ;;  %v5252_v54 = vld [vmem:[#allocation9 + $0x794] sm:$0xf0] }
 0x112   :  { %7553 = vst [vmem:[#allocation159_spill] sm:$0xff] %v6191_v27  ;;  %v5224_v27 = vld [vmem:[#allocation9 + $0x6b4] sm:$0xf0]  ;;  %2332 = vmatmul.bf16.vlgmr.msra.gmra.mxu2 %v5845_v24  ;;  %v4281_v7 = vld [vmem:[#allocation9 + $0x468] sm:$0xf] }
 0x113   :  { %7554 = vst [vmem:[#allocation160_spill] sm:$0xff] %v6193_v47  ;;  %2376 = vmatpush.bf16.msrb.mxu2 %v6199_v3  ;;  %2345 = vmatmul.bf16.vlgmr.msra.gmra.mxu3 %v5852_v19  ;;  %v6227_v25 = vor.u32 %v5224_v27, %v4569_v13  ;;  %v4409_v44 = vld [vmem:[#allocation9 + $0x568] sm:$0xf]  ;;  %v5148_v13 = vld [vmem:[#allocation9 + $0x454] sm:$0xf0] }
 0x114   :  { %7555 = vst [vmem:[#allocation161_spill] sm:$0xff] %v6197_v58  ;;  %2389 = vmatpush.bf16.msrb.mxu3 %v6202_v53  ;;  %v5256_v58 = vld [vmem:[#allocation9 + $0x7b4] sm:$0xf0]  ;;  %v4553_v48 = vld [vmem:[#allocation9 + $0x688] sm:$0xf] }
 0x115   :  { %7556 = vst [vmem:[#allocation162_spill] sm:$0xff] %v6199_v3  ;;  %2352 = vmatpush.bf16.msrb.mxu0 %v6205_v29  ;;  %2365 = vmatpush.bf16.msrb.mxu1 %v6209_v30  ;;  %v5184_v3 = vld [vmem:[#allocation9 + $0x574] sm:$0xf0]  ;;  %v6230_v42 = vor.u32 %v5256_v58, %v4697_v37  ;;  %v4681_v0 = vld [vmem:[#allocation9 + $0x788] sm:$0xf] }
 0x116   :  { %7557 = vst [vmem:[#allocation163_spill] sm:$0xff] %v6202_v53  ;;  %v5152_v53 = vld [vmem:[#allocation9 + $0x474] sm:$0xf0]  ;;  %v4265_v27 = vld [vmem:[#allocation9 + $0x448] sm:$0xf] }
 0x117   :  { %7558 = vst [vmem:[#allocation164_spill] sm:$0xff] %v6205_v29  ;;  %2377 = vmatpush.bf16.msrb.mxu2 %v6213_v60  ;;  %v5220_v29 = vld [vmem:[#allocation9 + $0x694] sm:$0xf0]  ;;  %v6233_v47 = vor.u32 %v5152_v53, %v4281_v7  ;;  %v4393_v58 = vld [vmem:[#allocation9 + $0x548] sm:$0xf] }
 0x118   :  { %7559 = vst [vmem:[#allocation165_spill] sm:$0xff] %v6209_v30  ;;  %2390 = vmatpush.bf16.msrb.mxu3 %v6216_v51  ;;  %v6236_v30 = vor.u32 %v5184_v3, %v4409_v44  ;;  %v5180_v37 = vld [vmem:[#allocation9 + $0x554] sm:$0xf0]  ;;  %v4537_v53 = vld [vmem:[#allocation9 + $0x668] sm:$0xf] }
 0x119   :  { %7560 = vst [vmem:[#allocation166_spill] sm:$0xff] %v6213_v60  ;;  %2353 = vmatpush.bf16.msrb.mxu0 %v6220_v63  ;;  %2366 = vmatpush.bf16.msrb.mxu1 %v6224_v35  ;;  %v6239_v60 = vor.u32 %v5220_v29, %v4553_v48  ;;  %v5216_v7 = vld [vmem:[#allocation9 + $0x674] sm:$0xf0]  ;;  %v4665_v3 = vld [vmem:[#allocation9 + $0x768] sm:$0xf] }
 0x11a   :  { %7561 = vst [vmem:[#allocation167_spill] sm:$0xff] %v6216_v51  ;;  %v6242_v51 = vor.u32 %v5252_v54, %v4681_v0  ;;  %v5248_v44 = vld [vmem:[#allocation9 + $0x774] sm:$0xf0]  ;;  %v4249_v29 = vld [vmem:[#allocation9 + $0x428] sm:$0xf] }
 0x11b   :  { %7562 = vst [vmem:[#allocation168_spill] sm:$0xff] %v6220_v63  ;;  %2378 = vmatpush.bf16.msrb.mxu2 %v6227_v25  ;;  %v6245_v63 = vor.u32 %v5148_v13, %v4265_v27  ;;  %v5144_v48 = vld [vmem:[#allocation9 + $0x434] sm:$0xf0]  ;;  %v4377_v0 = vld [vmem:[#allocation9 + $0x528] sm:$0xf] }
 0x11c   :  { %7563 = vst [vmem:[#allocation169_spill] sm:$0xff] %v6224_v35  ;;  %2391 = vmatpush.bf16.msrb.mxu3 %v6230_v42  ;;  %v6248_v35 = vor.u32 %v5180_v37, %v4393_v58  ;;  %v5176_v54 = vld [vmem:[#allocation9 + $0x534] sm:$0xf0]  ;;  %v4521_v27 = vld [vmem:[#allocation9 + $0x648] sm:$0xf] }
 0x11d   :  { %7564 = vst [vmem:[#allocation170_spill] sm:$0xff] %v6227_v25  ;;  %2354 = vmatpush.bf16.msrb.mxu0 %v6233_v47  ;;  %2367 = vmatpush.bf16.msrb.mxu1 %v6236_v30  ;;  %v6251_v25 = vor.u32 %v5216_v7, %v4537_v53  ;;  %v5212_v13 = vld [vmem:[#allocation9 + $0x654] sm:$0xf0]  ;;  %v4649_v58 = vld [vmem:[#allocation9 + $0x748] sm:$0xf] }
 0x11e   :  { %7565 = vst [vmem:[#allocation171_spill] sm:$0xff] %v6230_v42  ;;  %v6254_v42 = vor.u32 %v5248_v44, %v4665_v3  ;;  %v5244_v37 = vld [vmem:[#allocation9 + $0x754] sm:$0xf0]  ;;  %v4361_v7 = vld [vmem:[#allocation9 + $0x508] sm:$0xf]  ;;  %v6263_v3 = vor.u32 %v5212_v13, %v4521_v27 }
 0x11f   :  { %7566 = vst [vmem:[#allocation172_spill] sm:$0xff] %v6233_v47  ;;  %2379 = vmatpush.bf16.msrb.mxu2 %v6239_v60  ;;  %v6257_v47 = vor.u32 %v5144_v48, %v4249_v29  ;;  %v5140_v53 = vld [vmem:[#allocation9 + $0x414] sm:$0xf0]  ;;  %v5038_v44 = vld [vmem:[#allocation9 + $0xec] sm:$0xf]  ;;  %v6266_v29 = vor.u32 %v5244_v37, %v4649_v58 }
 0x120   :  { %7567 = vst [vmem:[#allocation173_spill] sm:$0xff] %v6236_v30  ;;  %2392 = vmatpush.bf16.msrb.mxu3 %v6242_v51  ;;  %v4233_v30 = vld [vmem:[#allocation9 + $0x408] sm:$0xf]  ;;  %v5172_v20 = vld [vmem:[#allocation9 + $0x514] sm:$0xf0] }
 0x121   :  { %7568 = vst [vmem:[#allocation174_spill] sm:$0xff] %v6239_v60  ;;  %2355 = vmatpush.bf16.msrb.mxu0 %v6245_v63  ;;  %2368 = vmatpush.bf16.msrb.mxu1 %v6248_v35  ;;  %v6260_v60 = vor.u32 %v5176_v54, %v4377_v0  ;;  %v3963_v48 = vld [vmem:[#allocation9 + $0x1f8] sm:$0xf0]  ;;  %v5208_v56 = vld [vmem:[#allocation9 + $0x634] sm:$0xf0]  ;;  %v6269_v0 = vor.u32 %v5140_v53, %v4233_v30 }
 0x122   :  { %7569 = vst [vmem:[#allocation175_spill] sm:$0xff] %v6242_v51  ;;  %v3835_v51 = vld [vmem:[#allocation9 + $0xf8] sm:$0xf0]  ;;  %v4633_v54 = vld [vmem:[#allocation9 + $0x728] sm:$0xf]  ;;  %v6272_v27 = vor.u32 %v5172_v20, %v4361_v7  ;;  %v6277_v58 = vor.u32 %v5070_v49, %v3963_v48 }
 0x123   :  { %7570 = vst [vmem:[#allocation176_spill] sm:$0xff] %v6245_v63  ;;  %2380 = vmatpush.bf16.msrb.mxu2 %v6251_v25  ;;  %v4505_v63 = vld [vmem:[#allocation9 + $0x628] sm:$0xf]  ;;  %v6274_v13 = vor.u32 %v5038_v44, %v3835_v51  ;;  %v5066_v36 = vld [vmem:[#allocation9 + $0x1cc] sm:$0xf] }
 0x124   :  { %7571 = vst [vmem:[#allocation177_spill] sm:$0xff] %v6248_v35  ;;  %2393 = vmatpush.bf16.msrb.mxu3 %v6254_v42  ;;  %v5240_v35 = vld [vmem:[#allocation9 + $0x734] sm:$0xf0]  ;;  %v6279_v37 = vor.u32 %v5208_v56, %v4505_v63  ;;  %v4489_v53 = vld [vmem:[#allocation9 + $0x608] sm:$0xf] }
 0x125   :  { %7572 = vst [vmem:[#allocation178_spill] sm:$0xff] %v6251_v25  ;;  %2356 = vmatpush.bf16.msrb.mxu0 %v6257_v47  ;;  %2369 = vmatpush.bf16.msrb.mxu1 %v6260_v60  ;;  %v5034_v25 = vld [vmem:[#allocation9 + $0xcc] sm:$0xf]  ;;  %v6282_v30 = vor.u32 %v5240_v35, %v4633_v54  ;;  %v4617_v20 = vld [vmem:[#allocation9 + $0x708] sm:$0xf] }
 0x126   :  { %7573 = vst [vmem:[#allocation179_spill] sm:$0xff] %v6254_v42  ;;  %v3819_v42 = vld [vmem:[#allocation9 + $0xd8] sm:$0xf0]  ;;  %v5236_v51 = vld [vmem:[#allocation9 + $0x714] sm:$0xf0] }
 0x127   :  { %7574 = vst [vmem:[#allocation180_spill] sm:$0xff] %v6257_v47  ;;  %2381 = vmatpush.bf16.msrb.mxu2 %v6263_v3  ;;  %v3947_v47 = vld [vmem:[#allocation9 + $0x1d8] sm:$0xf0]  ;;  %v5102_v7 = vld [vmem:[#allocation9 + $0x2ec] sm:$0xf]  ;;  %v6287_v56 = vor.u32 %v5034_v25, %v3819_v42  ;;  %v6302_v25 = vor.u32 %v5236_v51, %v4617_v20 }
 0x128   :  { %7575 = vst [vmem:[#allocation181_spill] sm:$0xff] %v6260_v60  ;;  %2394 = vmatpush.bf16.msrb.mxu3 %v6266_v29  ;;  %v5204_v60 = vld [vmem:[#allocation9 + $0x614] sm:$0xf0]  ;;  %v4091_v44 = vld [vmem:[#allocation9 + $0x2f8] sm:$0xf0]  ;;  %v6291_v35 = vor.u32 %v5066_v36, %v3947_v47 }
 0x129   :  { %7576 = vst [vmem:[#allocation182_spill] sm:$0xff] %v6263_v3  ;;  %2357 = vmatpush.bf16.msrb.mxu0 %v6269_v0  ;;  %2370 = vmatpush.bf16.msrb.mxu1 %v6272_v27  ;;  %v5134_v49 = vld [vmem:[#allocation9 + $0x3ec] sm:$0xf]  ;;  %v4219_v63 = vld [vmem:[#allocation9 + $0x3f8] sm:$0xf0]  ;;  %v6293_v48 = vor.u32 %v5204_v60, %v4489_v53  ;;  %v6304_v42 = vor.u32 %v5102_v7, %v4091_v44 }
 0x12a   :  { %7577 = vst [vmem:[#allocation183_spill] sm:$0xff] %v6266_v29  ;;  %v5030_v54 = vld [vmem:[#allocation9 + $0xac] sm:$0xf]  ;;  %v3931_v36 = vld [vmem:[#allocation9 + $0x1b8] sm:$0xf0]  ;;  %v6307_v47 = vor.u32 %v5134_v49, %v4219_v63  ;;  %v2099_v63 = vpop.f32.mrf.mxu0 }
 0x12b   :  { %7578 = vst [vmem:[#allocation184_spill] sm:$0xff] %v6269_v0  ;;  %2382 = vmatpush.bf16.msrb.mxu2 %v6279_v37  ;;  %v3803_v0 = vld [vmem:[#allocation9 + $0xb8] sm:$0xf0]  ;;  %v5098_v60 = vld [vmem:[#allocation9 + $0x2cc] sm:$0xf] }
 0x12c   :  { %7579 = vst [vmem:[#allocation185_spill] sm:$0xff] %v6272_v27  ;;  %v6298_v27 = vld [vmem:[%s7154_s4] sm:$0xf]  ;;  %2395 = vmatpush.bf16.msrb.mxu3 %v6282_v30  ;;  %2358 = vmatmul.bf16.vlgmr.msrb.gmra.mxu0 %v5885_v18  ;;  %v4075_v53 = vld [vmem:[#allocation9 + $0x2d8] sm:$0xf0] }
 0x12d   :  { %7580 = vst [vmem:[#allocation186_spill] sm:$0xff] %v6274_v13  ;;  %2402 = vmatpush.bf16.msra.mxu0 %v6274_v13  ;;  %2415 = vmatpush.bf16.msra.mxu1 %v6277_v58  ;;  %v5130_v13 = vld [vmem:[#allocation9 + $0x3cc] sm:$0xf]  ;;  %v4203_v29 = vld [vmem:[#allocation9 + $0x3d8] sm:$0xf0]  ;;  %v6319_v44 = vor.u32 %v5098_v60, %v4075_v53 }
 0x12e   :  { %7581 = vst [vmem:[#allocation187_spill] sm:$0xff] %v6277_v58  ;;  %2371 = vmatmul.bf16.vlgmr.msrb.gmra.mxu1 %v5892_v31  ;;  %v6310_v58 = vor.u32 %v5030_v54, %v3803_v0  ;;  %v5026_v51 = vld [vmem:[#allocation9 + $0x8c] sm:$0xf]  ;;  %v3787_v7 = vld [vmem:[#allocation9 + $0x98] sm:$0xf0]  ;;  %v6322_v54 = vor.u32 %v5130_v13, %v4203_v29 }
 0x12f   :  { %7582 = vst [vmem:[#allocation188_spill] sm:$0xff] %v6279_v37  ;;  %v5062_v37 = vld [vmem:[#allocation9 + $0x1ac] sm:$0xf]  ;;  %2383 = vmatpush.bf16.msrb.mxu2 %v6293_v48  ;;  %v3915_v49 = vld [vmem:[#allocation9 + $0x198] sm:$0xf0] }
 0x130   :  { %7583 = vst [vmem:[#allocation189_spill] sm:$0xff] %v6282_v30  ;;  %v6315_v20 = vor.u32 %v5062_v37, %v3931_v36  ;;  %2396 = vmatpush.bf16.msrb.mxu3 %v6302_v25  ;;  %v5058_v0 = vld [vmem:[#allocation9 + $0x18c] sm:$0xf]  ;;  %v7594_v37 = vperm.slane %v6298_v27, 0  ;;  %v4187_v53 = vld [vmem:[#allocation9 + $0x3b8] sm:$0xf0] }
 0x131   :  { %7584 = vst [vmem:[#allocation190_spill] sm:$0xff] %v6287_v56  ;;  %2403 = vmatpush.bf16.msra.mxu0 %v6287_v56  ;;  %2416 = vmatpush.bf16.msra.mxu1 %v6291_v35  ;;  %v5094_v30 = vld [vmem:[#allocation9 + $0x2ac] sm:$0xf]  ;;  %v6332_v29 = vor.u32 %v5058_v0, %v3915_v49  ;;  %v4171_v49 = vld [vmem:[#allocation9 + $0x398] sm:$0xf0] }
 0x132   :  { %7585 = vst [vmem:[#allocation191_spill] sm:$0xff] %v6291_v35  ;;  %v4059_v35 = vld [vmem:[#allocation9 + $0x2b8] sm:$0xf0]  ;;  %2384 = vmatmul.bf16.vlgmr.msrb.gmra.mxu2 %v5915_v55  ;;  %v2100_v36 = vadd.f32 %v2099_v63, %v7594_v37  ;;  %v5126_v60 = vld [vmem:[#allocation9 + $0x3ac] sm:$0xf] }
 0x133   :  { %7586 = vst [vmem:[#allocation192_spill] sm:$0xff] %v6293_v48  ;;  %2428 = vmatpush.bf16.msra.mxu2 %v6304_v42  ;;  %2397 = vmatmul.bf16.vlgmr.msrb.gmra.mxu3 %v5920_v8  ;;  %v5022_v13 = vld [vmem:[#allocation9 + $0x6c] sm:$0xf]  ;;  %v3899_v63 = vld [vmem:[#allocation9 + $0x178] sm:$0xf0] }
 0x134   :  { %7587 = vst [vmem:[#allocation193_spill] sm:$0xff] %v6302_v25  ;;  %2441 = vmatpush.bf16.msra.mxu3 %v6307_v47  ;;  %v2112_v25 = vpop.f32.mrf.mxu1  ;;  %v5054_v56 = vld [vmem:[#allocation9 + $0x16c] sm:$0xf]  ;;  %v4043_v37 = vld [vmem:[#allocation9 + $0x298] sm:$0xf0] }
 0x135   :  { %7588 = vst [vmem:[#allocation194_spill] sm:$0xff] %v6304_v42  ;;  %2404 = vmatpush.bf16.msra.mxu0 %v6310_v58  ;;  %v6328_v42 = vor.u32 %v5026_v51, %v3787_v7  ;;  %2417 = vmatpush.bf16.msra.mxu1 %v6315_v20  ;;  %v2113_v48 = vadd.f32 %v2112_v25, %v2100_v36  ;;  %v5090_v7 = vld [vmem:[#allocation9 + $0x28c] sm:$0xf]  ;;  %v3723_v3 = vld [vmem:[#allocation9 + $0x18] sm:$0xf0] }
 0x136   :  { %7589 = vst [vmem:[#allocation195_spill] sm:$0xff] %v6307_v47  ;;  %v3771_v47 = vld [vmem:[#allocation9 + $0x78] sm:$0xf0]  ;;  %v6338_v51 = vor.u32 %v5126_v60, %v4187_v53  ;;  %v5122_v0 = vld [vmem:[#allocation9 + $0x38c] sm:$0xf]  ;;  %v6344_v25 = vor.u32 %v5054_v56, %v3899_v63  ;;  %v6347_v36 = vor.u32 %v5090_v7, %v4043_v37 }
 0x137   :  { %7590 = vst [vmem:[#allocation196_spill] sm:$0xff] %v6310_v58  ;;  %2429 = vmatpush.bf16.msra.mxu2 %v6319_v44  ;;  %v6335_v58 = vor.u32 %v5094_v30, %v4059_v35  ;;  %v5018_v30 = vld [vmem:[#allocation9 + $0x4c] sm:$0xf]  ;;  %v3755_v35 = vld [vmem:[#allocation9 + $0x58] sm:$0xf0] }
 0x138   :  { %7591 = vst [vmem:[#allocation197_spill] sm:$0xff] %v6315_v20  ;;  %2442 = vmatpush.bf16.msra.mxu3 %v6322_v54  ;;  %v6341_v20 = vor.u32 %v5022_v13, %v3771_v47  ;;  %v5050_v60 = vld [vmem:[#allocation9 + $0x14c] sm:$0xf]  ;;  %v3883_v53 = vld [vmem:[#allocation9 + $0x158] sm:$0xf0]  ;;  %v6353_v56 = vor.u32 %v5018_v30, %v3755_v35  ;;  %v2125_v35 = vpop.f32.mrf.mxu2 }
 0x139   :  { %7592 = vst [vmem:[#allocation198_spill] sm:$0xff] %v6319_v44  ;;  %2405 = vmatpush.bf16.msra.mxu0 %v6328_v42  ;;  %2418 = vmatpush.bf16.msra.mxu1 %v6332_v29  ;;  %v5086_v47 = vld [vmem:[#allocation9 + $0x26c] sm:$0xf]  ;;  %v4027_v13 = vld [vmem:[#allocation9 + $0x278] sm:$0xf0]  ;;  %v6356_v7 = vor.u32 %v5050_v60, %v3883_v53 }
 0x13a   :  { %7593 = vst [vmem:[#allocation199_spill] sm:$0xff] %v6322_v54  ;;  %v2101_v54 = vpop.f32.mrf.mxu0  ;;  %v5118_v63 = vld [vmem:[#allocation9 + $0x36c] sm:$0xf]  ;;  %v4155_v44 = vld [vmem:[#allocation9 + $0x378] sm:$0xf0] }
 0x13b   :  { %7595 = vst [vmem:[#allocation200_spill] sm:$0xff] %v6328_v42  ;;  %2430 = vmatpush.bf16.msra.mxu2 %v6335_v58  ;;  %v6350_v42 = vor.u32 %v5122_v0, %v4171_v49  ;;  %v5014_v37 = vld [vmem:[#allocation9 + $0x2c] sm:$0xf]  ;;  %v6359_v54 = vor.u32 %v5086_v47, %v4027_v13  ;;  %v3867_v49 = vld [vmem:[#allocation9 + $0x138] sm:$0xf0]  ;;  %v2126_v47 = vadd.f32 %v2125_v35, %v2113_v48  ;;  %v2138_v13 = vpop.f32.mrf.mxu3 }
 0x13c   :  { %7596 = vst [vmem:[#allocation201_spill] sm:$0xff] %v6332_v29  ;;  %2443 = vmatpush.bf16.msra.mxu3 %v6338_v51  ;;  %v2114_v29 = vpop.f32.mrf.mxu1  ;;  %v5046_v0 = vld [vmem:[#allocation9 + $0x12c] sm:$0xf]  ;;  %v4011_v30 = vld [vmem:[#allocation9 + $0x258] sm:$0xf0] }
 0x13d   :  { %7597 = vst [vmem:[#allocation202_spill] sm:$0xff] %v6335_v58  ;;  %2406 = vmatpush.bf16.msra.mxu0 %v6341_v20  ;;  %2419 = vmatpush.bf16.msra.mxu1 %v6344_v25  ;;  %v3739_v58 = vld [vmem:[#allocation9 + $0x38] sm:$0xf0]  ;;  %v5082_v29 = vld [vmem:[#allocation9 + $0x24c] sm:$0xf] }
 0x13e   :  { %7598 = vst [vmem:[#allocation203_spill] sm:$0xff] %v6338_v51  ;;  %v5114_v60 = vld [vmem:[#allocation9 + $0x34c] sm:$0xf]  ;;  %v4139_v53 = vld [vmem:[#allocation9 + $0x358] sm:$0xf0] }
 0x13f   :  { %7599 = vst [vmem:[#allocation204_spill] sm:$0xff] %v6341_v20  ;;  %2431 = vmatpush.bf16.msra.mxu2 %v6347_v36  ;;  %v6362_v20 = vor.u32 %v5118_v63, %v4155_v44  ;;  %v5010_v51 = vld [vmem:[#allocation9 + $0xc] sm:$0xf]  ;;  %v3851_v44 = vld [vmem:[#allocation9 + $0x118] sm:$0xf0]  ;;  %v6371_v63 = vor.u32 %v5082_v29, %v4011_v30  ;;  %v6374_v39 = vor.u32 %v5114_v60, %v4139_v53 }
 0x140   :  { %7600 = vst [vmem:[#allocation205_spill] sm:$0xff] %v6344_v25  ;;  %2444 = vmatpush.bf16.msra.mxu3 %v6350_v42  ;;  %v6365_v25 = vor.u32 %v5014_v37, %v3739_v58  ;;  %v4347_v23 = vld [vmem:[#allocation9 + $0x4f8] sm:$0xf0]  ;;  %v5198_v58 = vld [vmem:[#allocation9 + $0x5ec] sm:$0xf]  ;;  %v2139_v37 = vadd.f32 %v2138_v13, %v2126_v47 }
 0x141   :  { %7601 = vst [vmem:[#allocation206_spill] sm:$0xff] %v6347_v36  ;;  %2407 = vmatpush.bf16.msra.mxu0 %v6353_v56  ;;  %2420 = vmatpush.bf16.msra.mxu1 %v6356_v7  ;;  %v6368_v36 = vor.u32 %v5046_v0, %v3867_v49  ;;  %v4475_v48 = vld [vmem:[#allocation9 + $0x5f8] sm:$0xf0]  ;;  %v5078_v35 = vld [vmem:[#allocation9 + $0x22c] sm:$0xf] }
 0x142   :  { %7602 = vst [vmem:[#allocation207_spill] sm:$0xff] %v6350_v42  ;;  %v5042_v42 = vld [vmem:[#allocation9 + $0x10c] sm:$0xf]  ;;  %v2151_v41 = vpop.f32.mrf.mxu0  ;;  %v3995_v0 = vld [vmem:[#allocation9 + $0x238] sm:$0xf0]  ;;  %v6385_v60 = vor.u32 %v5198_v58, %v4475_v48 }
 0x143   :  { %7603 = vst [vmem:[#allocation208_spill] sm:$0xff] %v6353_v56  ;;  %2432 = vmatpush.bf16.msra.mxu2 %v6359_v54  ;;  %v5166_v56 = vld [vmem:[#allocation9 + $0x4ec] sm:$0xf]  ;;  %v4123_v29 = vld [vmem:[#allocation9 + $0x338] sm:$0xf0]  ;;  %v2152_v30 = vadd.f32 %v2151_v41, %v2139_v37  ;;  %v6380_v32 = vor.u32 %v5042_v42, %v3851_v44  ;;  %v6387_v53 = vor.u32 %v5078_v35, %v3995_v0  ;;  %v2140_v48 = vpop.f32.mrf.mxu3 }
 0x144   :  { %7604 = vst [vmem:[#allocation209_spill] sm:$0xff] %v6356_v7  ;;  %2445 = vmatpush.bf16.msra.mxu3 %v6362_v20  ;;  %v2164_v49 = vpop.f32.mrf.mxu1  ;;  %v6377_v7 = vor.u32 %v5010_v51, %v3723_v3  ;;  %v6382_v47 = vor.u32 %v5166_v56, %v4347_v23  ;;  %v5162_v13 = vld [vmem:[#allocation9 + $0x4cc] sm:$0xf]  ;;  %v4459_v3 = vld [vmem:[#allocation9 + $0x5d8] sm:$0xf0]  ;;  %v2127_v23 = vpop.f32.mrf.mxu2 }
 0x145   :  { %7605 = vst [vmem:[#allocation210_spill] sm:$0xff] %v6359_v54  ;;  %2408 = vmatpush.bf16.msra.mxu0 %v6365_v25  ;;  %v5110_v54 = vld [vmem:[#allocation9 + $0x32c] sm:$0xf]  ;;  %2421 = vmatpush.bf16.msra.mxu1 %v6368_v36  ;;  %v2165_v51 = vadd.f32 %v2164_v49, %v2152_v30  ;;  %v3979_v42 = vld [vmem:[#allocation9 + $0x218] sm:$0xf0] }
 0x146   :  { %7606 = vst [vmem:[#allocation211_spill] sm:$0xff] %v6362_v20  ;;  %v5194_v20 = vld [vmem:[#allocation9 + $0x5cc] sm:$0xf]  ;;  %v6390_v5 = vor.u32 %v5110_v54, %v4123_v29  ;;  %v4107_v56 = vld [vmem:[#allocation9 + $0x318] sm:$0xf0] }
 0x147   :  { %7607 = vst [vmem:[#allocation212_spill] sm:$0xff] %v6365_v25  ;;  %2433 = vmatpush.bf16.msra.mxu2 %v6371_v63  ;;  %v4331_v25 = vld [vmem:[#allocation9 + $0x4d8] sm:$0xf0]  ;;  %v5074_v41 = vld [vmem:[#allocation9 + $0x20c] sm:$0xf]  ;;  %v6399_v54 = vor.u32 %v5194_v20, %v4459_v3 }
 0x148   :  { %7608 = vst [vmem:[#allocation213_spill] sm:$0xff] %v6380_v32  ;;  %2446 = vmatpush.bf16.msra.mxu3 %v6374_v39  ;;  %v5106_v44 = vld [vmem:[#allocation9 + $0x30c] sm:$0xf]  ;;  %v4603_v58 = vld [vmem:[#allocation9 + $0x6f8] sm:$0xf0]  ;;  %v6395_v35 = vor.u32 %v5162_v13, %v4331_v25  ;;  %v6401_v29 = vor.u32 %v5074_v41, %v3979_v42 }
 0x149   :  { %7609 = vst [vmem:[#allocation214_spill] sm:$0xff] %v6382_v47  ;;  %2409 = vmatpush.bf16.msra.mxu0 %v6377_v7  ;;  %v5230_v37 = vld [vmem:[#allocation9 + $0x6ec] sm:$0xf]  ;;  %2422 = vmatpush.bf16.msra.mxu1 %v6380_v32  ;;  %v4731_v49 = vld [vmem:[#allocation9 + $0x7f8] sm:$0xf0] }
 0x14a   :  { %7610 = vst [vmem:[#allocation215_spill] sm:$0xff] %v6387_v53  ;;  %v5262_v0 = vld [vmem:[#allocation9 + $0x7ec] sm:$0xf]  ;;  %v4315_v23 = vld [vmem:[#allocation9 + $0x4b8] sm:$0xf0]  ;;  %v2153_v48 = vpop.f32.mrf.mxu0  ;;  %v6407_v25 = vor.u32 %v5230_v37, %v4603_v58 }
 0x14b   :  { %7611 = vst [vmem:[#allocation216_spill] sm:$0xff] %v6390_v5  ;;  %2434 = vmatpush.bf16.msra.mxu2 %v6387_v53  ;;  %v5158_v30 = vld [vmem:[#allocation9 + $0x4ac] sm:$0xf]  ;;  %v4443_v32 = vld [vmem:[#allocation9 + $0x5b8] sm:$0xf0]  ;;  %v6410_v20 = vor.u32 %v5262_v0, %v4731_v49 }
 0x14c   :  { %2447 = vmatpush.bf16.msra.mxu3 %v6390_v5  ;;  %2410 = vmatmul.bf16.vlgmr.msra.gmra.mxu0 %v5823_v12  ;;  %7613 = vst [vmem:[#allocation218_spill] sm:$0xff] %v6407_v25  ;;  %v5190_v13 = vld [vmem:[#allocation9 + $0x5ac] sm:$0xf]  ;;  %v2166_v53 = vpop.f32.mrf.mxu1  ;;  %v4587_v41 = vld [vmem:[#allocation9 + $0x6d8] sm:$0xf0]  ;;  %v6413_v42 = vor.u32 %v5158_v30, %v4315_v23  ;;  %v2177_v0 = vpop.f32.mrf.mxu2 }
 0x14d   :  { %2454 = vmatpush.bf16.msrb.mxu0 %v6382_v47  ;;  %2467 = vmatpush.bf16.msrb.mxu1 %v6385_v60  ;;  %v6405_v47 = vor.u32 %v5106_v44, %v4107_v56  ;;  %7614 = vst [vmem:[#allocation219_spill] sm:$0xff] %v6410_v20  ;;  %v5226_v3 = vld [vmem:[#allocation9 + $0x6cc] sm:$0xf]  ;;  %v4715_v12 = vld [vmem:[#allocation9 + $0x7d8] sm:$0xf0]  ;;  %v6417_v44 = vor.u32 %v5190_v13, %v4443_v32  ;;  %v2190_v32 = vpop.f32.mrf.mxu3 }
 0x14e   :  { %2423 = vmatmul.bf16.vlgmr.msra.gmra.mxu1 %v5828_v43  ;;  %7615 = vst [vmem:[#allocation220_spill] sm:$0xff] %v6413_v42  ;;  %v5258_v5 = vld [vmem:[#allocation9 + $0x7cc] sm:$0xf]  ;;  %v4299_v37 = vld [vmem:[#allocation9 + $0x498] sm:$0xf0]  ;;  %v6421_v43 = vor.u32 %v5226_v3, %v4587_v41  ;;  %v2178_v48 = vadd.f32 %v2177_v0, %v2165_v51 }
 0x14f   :  { %7612 = vst [vmem:[#allocation217_spill] sm:$0xff] %v6405_v47  ;;  %2435 = vmatpush.bf16.msra.mxu2 %v6401_v29  ;;  %v5154_v56 = vld [vmem:[#allocation9 + $0x48c] sm:$0xf]  ;;  %v4427_v58 = vld [vmem:[#allocation9 + $0x598] sm:$0xf0]  ;;  %v6424_v49 = vor.u32 %v5258_v5, %v4715_v12 }
 0x150   :  { %7616 = vst [vmem:[#allocation221_spill] sm:$0xff] %v6417_v44  ;;  %2448 = vmatpush.bf16.msra.mxu3 %v6405_v47  ;;  %v5186_v53 = vld [vmem:[#allocation9 + $0x58c] sm:$0xf]  ;;  %v4571_v23 = vld [vmem:[#allocation9 + $0x6b8] sm:$0xf0]  ;;  %v6435_v51 = vadd.f32 %v2190_v32, %v2178_v48 }
 0x151   :  { %2455 = vmatpush.bf16.msrb.mxu0 %v6395_v35  ;;  %2468 = vmatpush.bf16.msrb.mxu1 %v6399_v54  ;;  %7617 = vst [vmem:[#allocation222_spill] sm:$0xff] %v6421_v43  ;;  %v5222_v30 = vld [vmem:[#allocation9 + $0x6ac] sm:$0xf]  ;;  %v4699_v41 = vld [vmem:[#allocation9 + $0x7b8] sm:$0xf0]  ;;  %v6433_v5 = vor.u32 %v5186_v53, %v4427_v58  ;;  %v7623_v53 = vperm.slane %v6298_v27, 1 }
 0x152   :  { %7618 = vst [vmem:[#allocation223_spill] sm:$0xff] %v6424_v49  ;;  %2436 = vmatmul.bf16.vlgmr.msra.gmra.mxu2 %v5845_v24  ;;  %v5254_v3 = vld [vmem:[#allocation9 + $0x7ac] sm:$0xf]  ;;  %v6438_v24 = vor.u32 %v5222_v30, %v4571_v23  ;;  %v4411_v13 = vld [vmem:[#allocation9 + $0x578] sm:$0xf0] }
 0x153   :  { %2480 = vmatpush.bf16.msrb.mxu2 %v6407_v25  ;;  %v6429_v25 = vor.u32 %v5154_v56, %v4299_v37  ;;  %2449 = vmatmul.bf16.vlgmr.msra.gmra.mxu3 %v5852_v19  ;;  %v5150_v12 = vld [vmem:[#allocation9 + $0x46c] sm:$0xf]  ;;  %7620 = vst [vmem:[#allocation225_spill] sm:$0xff] %v6435_v51  ;;  %v2203_v56 = vpop.f32.mrf.mxu0  ;;  %v6441_v37 = vor.u32 %v5254_v3, %v4699_v41  ;;  %v4683_v30 = vld [vmem:[#allocation9 + $0x798] sm:$0xf0] }
 0x154   :  { %2493 = vmatpush.bf16.msrb.mxu3 %v6410_v20  ;;  %v4283_v20 = vld [vmem:[#allocation9 + $0x478] sm:$0xf0]  ;;  %7621 = vst [vmem:[#allocation226_spill] sm:$0xff] %v6438_v24  ;;  %v5182_v0 = vld [vmem:[#allocation9 + $0x56c] sm:$0xf]  ;;  %v2204_v58 = vadd.f32 %v2203_v56, %v7623_v53  ;;  %v2179_v53 = vpop.f32.mrf.mxu2 }
 0x155   :  { %2456 = vmatpush.bf16.msrb.mxu0 %v6413_v42  ;;  %7619 = vst [vmem:[#allocation224_spill] sm:$0xff] %v6429_v25  ;;  %2469 = vmatpush.bf16.msrb.mxu1 %v6417_v44  ;;  %v5218_v19 = vld [vmem:[#allocation9 + $0x68c] sm:$0xf]  ;;  %v4555_v42 = vld [vmem:[#allocation9 + $0x698] sm:$0xf0]  ;;  %v2216_v44 = vpop.f32.mrf.mxu1  ;;  %v6446_v48 = vor.u32 %v5150_v12, %v4283_v20  ;;  %v6449_v23 = vor.u32 %v5182_v0, %v4411_v13  ;;  %v2192_v47 = vpop.f32.mrf.mxu3 }
 0x156   :  { %7622 = vst [vmem:[#allocation227_spill] sm:$0xff] %v6441_v37  ;;  %v5250_v32 = vld [vmem:[#allocation9 + $0x78c] sm:$0xf]  ;;  %v2217_v3 = vadd.f32 %v2216_v44, %v2204_v58  ;;  %v6452_v41 = vor.u32 %v5218_v19, %v4555_v42  ;;  %v4395_v56 = vld [vmem:[#allocation9 + $0x558] sm:$0xf0] }
 0x157   :  { %2481 = vmatpush.bf16.msrb.mxu2 %v6421_v43  ;;  %7624 = vst [vmem:[#allocation228_spill] sm:$0xff] %v6446_v48  ;;  %v5146_v51 = vld [vmem:[#allocation9 + $0x44c] sm:$0xf]  ;;  %v6455_v20 = vor.u32 %v5250_v32, %v4683_v30  ;;  %v4667_v44 = vld [vmem:[#allocation9 + $0x778] sm:$0xf0] }
 0x158   :  { %2494 = vmatpush.bf16.msrb.mxu3 %v6424_v49  ;;  %7625 = vst [vmem:[#allocation229_spill] sm:$0xff] %v6449_v23  ;;  %v4267_v49 = vld [vmem:[#allocation9 + $0x458] sm:$0xf0]  ;;  %v5178_v43 = vld [vmem:[#allocation9 + $0x54c] sm:$0xf] }
 0x159   :  { %2457 = vmatpush.bf16.msrb.mxu0 %v6429_v25  ;;  %2470 = vmatpush.bf16.msrb.mxu1 %v6433_v5  ;;  %7626 = vst [vmem:[#allocation230_spill] sm:$0xff] %v6452_v41  ;;  %v5214_v12 = vld [vmem:[#allocation9 + $0x66c] sm:$0xf]  ;;  %v4539_v25 = vld [vmem:[#allocation9 + $0x678] sm:$0xf0]  ;;  %v6458_v13 = vor.u32 %v5146_v51, %v4267_v49  ;;  %v6461_v42 = vor.u32 %v5178_v43, %v4395_v56 }
 0x15a   :  { %7627 = vst [vmem:[#allocation231_spill] sm:$0xff] %v6455_v20  ;;  %v5246_v0 = vld [vmem:[#allocation9 + $0x76c] sm:$0xf]  ;;  %v4251_v58 = vld [vmem:[#allocation9 + $0x438] sm:$0xf0]  ;;  %v6464_v53 = vor.u32 %v5214_v12, %v4539_v25 }
 0x15b   :  { %2482 = vmatpush.bf16.msrb.mxu2 %v6438_v24  ;;  %7628 = vst [vmem:[#allocation232_spill] sm:$0xff] %v6458_v13  ;;  %v5142_v19 = vld [vmem:[#allocation9 + $0x42c] sm:$0xf]  ;;  %v4379_v30 = vld [vmem:[#allocation9 + $0x538] sm:$0xf0]  ;;  %v2205_v47 = vpop.f32.mrf.mxu0 }
 0x15c   :  { %2495 = vmatpush.bf16.msrb.mxu3 %v6441_v37  ;;  %7629 = vst [vmem:[#allocation233_spill] sm:$0xff] %v6461_v42  ;;  %v5174_v32 = vld [vmem:[#allocation9 + $0x52c] sm:$0xf]  ;;  %v4523_v51 = vld [vmem:[#allocation9 + $0x658] sm:$0xf0]  ;;  %v6470_v43 = vor.u32 %v5142_v19, %v4251_v58 }
 0x15d   :  { %2458 = vmatpush.bf16.msrb.mxu0 %v6446_v48  ;;  %2471 = vmatpush.bf16.msrb.mxu1 %v6449_v23  ;;  %v6467_v48 = vor.u32 %v5246_v0, %v4667_v44  ;;  %v5210_v49 = vld [vmem:[#allocation9 + $0x64c] sm:$0xf]  ;;  %v2218_v37 = vpop.f32.mrf.mxu1  ;;  %v4651_v23 = vld [vmem:[#allocation9 + $0x758] sm:$0xf0]  ;;  %v6473_v25 = vor.u32 %v5174_v32, %v4379_v30 }
 0x15e   :  { %7631 = vst [vmem:[#allocation235_spill] sm:$0xff] %v6470_v43  ;;  %v5242_v56 = vld [vmem:[#allocation9 + $0x74c] sm:$0xf]  ;;  %v6476_v47 = vor.u32 %v5210_v49, %v4523_v51  ;;  %v4363_v44 = vld [vmem:[#allocation9 + $0x518] sm:$0xf0] }
 0x15f   :  { %2483 = vmatpush.bf16.msrb.mxu2 %v6452_v41  ;;  %7630 = vst [vmem:[#allocation234_spill] sm:$0xff] %v6467_v48  ;;  %v5138_v12 = vld [vmem:[#allocation9 + $0x40c] sm:$0xf]  ;;  %v4235_v41 = vld [vmem:[#allocation9 + $0x418] sm:$0xf0]  ;;  %v6479_v37 = vor.u32 %v5242_v56, %v4651_v23 }
 0x160   :  { %2496 = vmatpush.bf16.msrb.mxu3 %v6455_v20  ;;  %v5170_v0 = vld [vmem:[#allocation9 + $0x50c] sm:$0xf]  ;;  %v4507_v58 = vld [vmem:[#allocation9 + $0x638] sm:$0xf0]  ;;  %v2242_v20 = vpop.f32.mrf.mxu3  ;;  %v6482_v32 = vor.u32 %v5138_v12, %v4235_v41 }
 0x161   :  { %2459 = vmatpush.bf16.msrb.mxu0 %v6458_v13  ;;  %2472 = vmatpush.bf16.msrb.mxu1 %v6461_v42  ;;  %v5206_v19 = vld [vmem:[#allocation9 + $0x62c] sm:$0xf]  ;;  %v2229_v13 = vpop.f32.mrf.mxu2  ;;  %v4635_v42 = vld [vmem:[#allocation9 + $0x738] sm:$0xf0]  ;;  %v6485_v49 = vor.u32 %v5170_v0, %v4363_v44  ;;  %v7646_v0 = vld [vmem:[#allocation27_spill] sm:$0xff] }
 0x162   :  { %v5238_v30 = vld [vmem:[#allocation9 + $0x72c] sm:$0xf]  ;;  %v2230_v24 = vadd.f32 %v2229_v13, %v2217_v3  ;;  %v6488_v51 = vor.u32 %v5206_v19, %v4507_v58  ;;  %v4619_v12 = vld [vmem:[#allocation9 + $0x718] sm:$0xf0]  ;;  %v7377_v19 = vperm.slane %v6298_v27, 2  ;;  %v7648_v58 = vld [vmem:[#allocation33_spill] sm:$0xff] }
 0x163   :  { %2484 = vmatpush.bf16.msrb.mxu2 %v6464_v53  ;;  %v6491_v56 = vor.u32 %v5238_v30, %v4635_v42  ;;  %v5234_v41 = vld [vmem:[#allocation9 + $0x70c] sm:$0xf]  ;;  %v7647_v44 = vld [vmem:[#allocation32_spill] sm:$0xff] }
 0x164   :  { %2497 = vmatpush.bf16.msrb.mxu3 %v6467_v48  ;;  %v2243_v23 = vadd.f32 %v2242_v20, %v2230_v24  ;;  %v5202_v48 = vld [vmem:[#allocation9 + $0x60c] sm:$0xf]  ;;  %v6502_v24 = vor.u32 %v5234_v41, %v4619_v12 }
 0x165   :  { %2460 = vmatpush.bf16.msrb.mxu0 %v6470_v43  ;;  %2473 = vmatpush.bf16.msrb.mxu1 %v6473_v25  ;;  %v4491_v43 = vld [vmem:[#allocation9 + $0x618] sm:$0xf0]  ;;  %v7645_v42 = vld [vmem:[#allocation26_spill] sm:$0xff] }
 0x166   :  { %v6498_v3 = vor.u32 %v5202_v48, %v4491_v43  ;;  %v7644_v48 = vld [vmem:[#allocation25_spill] sm:$0xff]  ;;  %v7649_v30 = vld [vmem:[#allocation30_spill] sm:$0xff] }
 0x167   :  { %2485 = vmatpush.bf16.msrb.mxu2 %v6476_v47 }
 0x168   :  { %2498 = vmatpush.bf16.msrb.mxu3 %v6479_v37  ;;  %v2244_v13 = vpop.f32.mrf.mxu3 }
 0x169   :  { %2461 = vmatpush.bf16.msrb.mxu0 %v6482_v32  ;;  %2474 = vmatpush.bf16.msrb.mxu1 %v6485_v49  ;;  %v2231_v20 = vpop.f32.mrf.mxu2  ;;  %v7651_v13 = vld [vmem:[#allocation36_spill] sm:$0xff] }
 0x16b   :  { %2486 = vmatpush.bf16.msrb.mxu2 %v6488_v51 }
 0x16c   :  { %2499 = vmatpush.bf16.msrb.mxu3 %v6491_v56  ;;  %2462 = vmatmul.bf16.vlgmr.msrb.gmra.mxu0 %v5885_v18 }
 0x16d   :  { %2514 = vmatpush.bf16.msra.mxu0 %v5604_v61  ;;  %2527 = vmatpush.bf16.msra.mxu1 %v5606_v62  ;;  %v2255_v61 = vpop.f32.mrf.mxu0 }
 0x16e   :  { %2475 = vmatmul.bf16.vlgmr.msrb.gmra.mxu1 %v5892_v31  ;;  %v2256_v62 = vadd.f32 %v2255_v61, %v2243_v23  ;;  %v7650_v23 = vld [vmem:[#allocation31_spill] sm:$0xff]  ;;  %v7652_v61 = vld [vmem:[#allocation37_spill] sm:$0xff] }
 0x16f   :  { %2487 = vmatpush.bf16.msrb.mxu2 %v6498_v3 }
 0x170   :  { %2500 = vmatpush.bf16.msrb.mxu3 %v6502_v24 }
 0x171   :  { %2515 = vmatpush.bf16.msra.mxu0 %v5621_v9  ;;  %2528 = vmatpush.bf16.msra.mxu1 %v5624_v10  ;;  %v2268_v9 = vpop.f32.mrf.mxu1 }
 0x172   :  { %2488 = vmatmul.bf16.vlgmr.msrb.gmra.mxu2 %v5915_v55  ;;  %v7641_v55 = vld [vmem:[#allocation28_spill] sm:$0xff] }
 0x173   :  { %2540 = vmatpush.bf16.msra.mxu2 %v5608_v2  ;;  %2501 = vmatmul.bf16.vlgmr.msrb.gmra.mxu3 %v5920_v8  ;;  %v2269_v2 = vadd.f32 %v2268_v9, %v2256_v62  ;;  %v7642_v8 = vld [vmem:[#allocation29_spill] sm:$0xff]  ;;  %v7653_v9 = vld [vmem:[#allocation34_spill] sm:$0xff] }
 0x174   :  { %2553 = vmatpush.bf16.msra.mxu3 %v5612_v4 }
 0x175   :  { %2516 = vmatpush.bf16.msra.mxu0 %v5633_v21  ;;  %2529 = vmatpush.bf16.msra.mxu1 %v5636_v22  ;;  %v2257_v4 = vpop.f32.mrf.mxu0  ;;  %v785_v22 = vmax.f32 %v5988_v6, 0.0  ;;  %v7643_v6 = vld [vmem:[#allocation24_spill] sm:$0xff] }
 0x176   :  { %v2294_v21 = vpop.f32.mrf.mxu3  ;;  %v7655_v4 = vld [vmem:[#allocation40_spill] sm:$0xff] }
 0x177   :  { %2541 = vmatpush.bf16.msra.mxu2 %v5627_v14  ;;  %v2281_v14 = vpop.f32.mrf.mxu2 }
 0x178   :  { %2554 = vmatpush.bf16.msra.mxu3 %v5630_v16  ;;  %v2282_v16 = vadd.f32 %v2281_v14, %v2269_v2  ;;  %v7654_v2 = vld [vmem:[#allocation35_spill] sm:$0xff]  ;;  %v7657_v14 = vld [vmem:[#allocation38_spill] sm:$0xff] }
 0x179   :  { %2517 = vmatpush.bf16.msra.mxu0 %v5645_v33  ;;  %2530 = vmatpush.bf16.msra.mxu1 %v5648_v34  ;;  %v2270_v10 = vpop.f32.mrf.mxu1  ;;  %v7632_v33 = vld [vmem:[#allocation17_spill] sm:$0xff]  ;;  %v7633_v34 = vld [vmem:[#allocation20_spill] sm:$0xff] }
 0x17a   :  { %v7656_v10 = vld [vmem:[#allocation41_spill] sm:$0xff] }
 0x17b   :  { %2542 = vmatpush.bf16.msra.mxu2 %v5639_v26  ;;  %v786_v26 = vmax.f32 %v6000_v17, 0.0 }
 0x17c   :  { %2555 = vmatpush.bf16.msra.mxu3 %v5642_v28  ;;  %v6533_v28 = vadd.f32 %v2294_v21, %v2282_v16  ;;  %v7658_v16 = vld [vmem:[#allocation39_spill] sm:$0xff] }
 0x17d   :  { %2518 = vmatpush.bf16.msra.mxu0 %v5657_v45  ;;  %2531 = vmatpush.bf16.msra.mxu1 %v5660_v46  ;;  %v7635_v45 = vld [vmem:[#allocation22_spill] sm:$0xff]  ;;  %v6542_v46 = vpack.c.bf16 %v786_v26, %v786_v26 }
 0x17e   :  { %v2296_v18 = vpop.f32.mrf.mxu3  ;;  %v7659_v26 = vld [vmem:[#allocation42_spill] sm:$0xff] }
 0x17f   :  { %2543 = vmatpush.bf16.msra.mxu2 %v5651_v38  ;;  %v6538_v38 = vpack.c.bf16 %v785_v22, %v785_v22 }
 0x180   :  { %2556 = vmatpush.bf16.msra.mxu3 %v5654_v40  ;;  %v7634_v40 = vld [vmem:[#allocation21_spill] sm:$0xff] }
 0x181   :  { %2519 = vmatpush.bf16.msra.mxu0 %v5675_v57  ;;  %2532 = vmatpush.bf16.msra.mxu1 %v5680_v59  ;;  %v7638_v57 = vld [vmem:[#allocation102_spill] sm:$0xff] }
 0x182   :  { %v787_v59 = vmax.f32 %v7638_v57, 0.0  ;;  %v7663_v57 = vld [vmem:[#allocation46_spill] sm:$0xff] }
 0x183   :  { %2544 = vmatpush.bf16.msra.mxu2 %v5663_v50  ;;  %v7636_v50 = vld [vmem:[#allocation23_spill] sm:$0xff] }
 0x184   :  { %2557 = vmatpush.bf16.msra.mxu3 %v5666_v52  ;;  %v7637_v52 = vld [vmem:[#allocation18_spill] sm:$0xff]  ;;  %v6554_v17 = vpack.c.bf16 %v787_v59, %v787_v59  ;;  %v7664_v59 = vld [vmem:[#allocation132_spill] sm:$0xff] }
 0x185   :  { %2520 = vmatpush.bf16.msra.mxu0 %v5689_v11  ;;  %2533 = vmatpush.bf16.msra.mxu1 %v5692_v15  ;;  %v7639_v11 = vld [vmem:[#allocation19_spill] sm:$0xff]  ;;  %v7640_v15 = vld [vmem:[#allocation105_spill] sm:$0xff] }
 0x186   :  { %v788_v31 = vmax.f32 %v7640_v15, 0.0  ;;  %v7666_v15 = vld [vmem:[#allocation135_spill] sm:$0xff] }
 0x187   :  { %2545 = vmatpush.bf16.msra.mxu2 %v5683_v1  ;;  %v2283_v1 = vpop.f32.mrf.mxu2 }
 0x188   :  { %2558 = vmatpush.bf16.msra.mxu3 %v7632_v33  ;;  %v6558_v43 = vpack.c.bf16 %v788_v31, %v788_v31  ;;  %v7660_v33 = vld [vmem:[#allocation43_spill] sm:$0xff]  ;;  %v790_v31 = vmax.f32 %v7666_v15, 0.0  ;;  %v7690_v15 = vld [vmem:[#allocation69_spill] sm:$0xff] }
 0x189   :  { %2521 = vmatpush.bf16.msra.mxu0 %v7633_v34  ;;  %2534 = vmatpush.bf16.msra.mxu1 %v7634_v40  ;;  %v2307_v41 = vpop.f32.mrf.mxu0  ;;  %v7661_v34 = vld [vmem:[#allocation44_spill] sm:$0xff]  ;;  %v7662_v40 = vld [vmem:[#allocation45_spill] sm:$0xff]  ;;  %v7665_v1 = vld [vmem:[#allocation47_spill] sm:$0xff] }
 0x18a   :  { %v2308_v12 = vadd.f32 %v2307_v41, %v7377_v19  ;;  %v5323_v19 = vld [vmem:[#allocation11 + $0x1d4] sm:$0xf] }
 0x18b   :  { %2546 = vmatpush.bf16.msra.mxu2 %v7637_v52  ;;  %v2320_v20 = vpop.f32.mrf.mxu1 }
 0x18c   :  { %2559 = vmatpush.bf16.msra.mxu3 %v7639_v11  ;;  %2522 = vmatmul.bf16.vlgmr.msra.gmra.mxu0 %v6538_v38  ;;  %v2321_v62 = vadd.f32 %v2320_v20, %v2308_v12  ;;  %v789_v11 = vmax.f32 %v7664_v59, 0.0  ;;  %v7675_v12 = vld [vmem:[#allocation53_spill] sm:$0xff]  ;;  %v7688_v59 = vld [vmem:[#allocation67_spill] sm:$0xff] }
 0x18d   :  { %2566 = vmatpush.bf16.msrb.mxu0 %v7635_v45  ;;  %2579 = vmatpush.bf16.msrb.mxu1 %v7636_v50 }
 0x18e   :  { %2535 = vmatmul.bf16.vlgmr.msra.gmra.mxu1 %v6542_v46 }
 0x18f   :  { %2547 = vmatpush.bf16.msra.mxu2 %v7643_v6  ;;  %v7669_v6 = vld [vmem:[#allocation50_spill] sm:$0xff] }
 0x190   :  { %2560 = vmatpush.bf16.msra.mxu3 %v7644_v48  ;;  %v6589_v48 = vpack.c.bf16 %v789_v11, %v789_v11 }
 0x191   :  { %2567 = vmatpush.bf16.msrb.mxu0 %v7641_v55  ;;  %2580 = vmatpush.bf16.msrb.mxu1 %v7642_v8  ;;  %v2309_v21 = vpop.f32.mrf.mxu0  ;;  %v7667_v55 = vld [vmem:[#allocation48_spill] sm:$0xff]  ;;  %v7668_v8 = vld [vmem:[#allocation49_spill] sm:$0xff] }
 0x192   :  { %2548 = vmatmul.bf16.vlgmr.msra.gmra.mxu2 %v6554_v17 }
 0x193   :  { %2592 = vmatpush.bf16.msrb.mxu2 %v7645_v42  ;;  %2561 = vmatmul.bf16.vlgmr.msra.gmra.mxu3 %v6558_v43  ;;  %v2322_v22 = vpop.f32.mrf.mxu1  ;;  %v7670_v42 = vld [vmem:[#allocation51_spill] sm:$0xff] }
 0x194   :  { %2605 = vmatpush.bf16.msrb.mxu3 %v7646_v0  ;;  %v7671_v0 = vld [vmem:[#allocation56_spill] sm:$0xff]  ;;  %v7682_v22 = vld [vmem:[#allocation61_spill] sm:$0xff] }
 0x195   :  { %2568 = vmatpush.bf16.msrb.mxu0 %v7647_v44  ;;  %2581 = vmatpush.bf16.msrb.mxu1 %v7648_v58  ;;  %v2333_v45 = vpop.f32.mrf.mxu2  ;;  %v6593_v44 = vpack.c.bf16 %v790_v31, %v790_v31  ;;  %v7672_v58 = vld [vmem:[#allocation57_spill] sm:$0xff]  ;;  %v7691_v31 = vld [vmem:[#allocation70_spill] sm:$0xff] }
 0x196   :  { %v2334_v50 = vadd.f32 %v2333_v45, %v2321_v62  ;;  %v2346_v52 = vpop.f32.mrf.mxu3 }
 0x197   :  { %2593 = vmatpush.bf16.msrb.mxu2 %v7649_v30  ;;  %v7673_v30 = vld [vmem:[#allocation52_spill] sm:$0xff] }
 0x198   :  { %2606 = vmatpush.bf16.msrb.mxu3 %v7650_v23  ;;  %v2347_v18 = vadd.f32 %v2346_v52, %v2334_v50  ;;  %v7674_v23 = vld [vmem:[#allocation138_spill] sm:$0xff] }
 0x199   :  { %2569 = vmatpush.bf16.msrb.mxu0 %v7651_v13  ;;  %2582 = vmatpush.bf16.msrb.mxu1 %v7652_v61  ;;  %v791_v41 = vmax.f32 %v7674_v23, 0.0  ;;  %v7676_v13 = vld [vmem:[#allocation141_spill] sm:$0xff] }
 0x19a   :  { %v792_v61 = vmax.f32 %v7676_v13, 0.0  ;;  %v7698_v23 = vld [vmem:[#allocation77_spill] sm:$0xff]  ;;  %v7699_v13 = vld [vmem:[#allocation78_spill] sm:$0xff] }
 0x19b   :  { %2594 = vmatpush.bf16.msrb.mxu2 %v7653_v9  ;;  %v7677_v9 = vld [vmem:[#allocation58_spill] sm:$0xff] }
 0x19c   :  { %2607 = vmatpush.bf16.msrb.mxu3 %v7654_v2  ;;  %v7678_v2 = vld [vmem:[#allocation59_spill] sm:$0xff]  ;;  %v6609_v21 = vpack.c.bf16 %v792_v61, %v792_v61 }
 0x19d   :  { %2570 = vmatpush.bf16.msrb.mxu0 %v7655_v4  ;;  %2583 = vmatpush.bf16.msrb.mxu1 %v7656_v10  ;;  %v2335_v20 = vpop.f32.mrf.mxu2  ;;  %v7679_v4 = vld [vmem:[#allocation54_spill] sm:$0xff]  ;;  %v6605_v10 = vpack.c.bf16 %v791_v41, %v791_v41  ;;  %v7700_v61 = vld [vmem:[#allocation79_spill] sm:$0xff] }
 0x19e   :  { %v2348_v62 = vpop.f32.mrf.mxu3 }
 0x19f   :  { %2595 = vmatpush.bf16.msrb.mxu2 %v7657_v14  ;;  %v7680_v14 = vld [vmem:[#allocation55_spill] sm:$0xff] }
 0x1a0   :  { %2608 = vmatpush.bf16.msrb.mxu3 %v7658_v16  ;;  %v7681_v16 = vld [vmem:[#allocation60_spill] sm:$0xff] }
 0x1a1   :  { %2571 = vmatpush.bf16.msrb.mxu0 %v7659_v26  ;;  %2584 = vmatpush.bf16.msrb.mxu1 %v7660_v33  ;;  %v7683_v26 = vld [vmem:[#allocation62_spill] sm:$0xff]  ;;  %v7684_v33 = vld [vmem:[#allocation63_spill] sm:$0xff] }
 0x1a3   :  { %2596 = vmatpush.bf16.msrb.mxu2 %v7661_v34  ;;  %v7685_v34 = vld [vmem:[#allocation64_spill] sm:$0xff] }
 0x1a4   :  { %2609 = vmatpush.bf16.msrb.mxu3 %v7662_v40  ;;  %v7686_v40 = vld [vmem:[#allocation65_spill] sm:$0xff] }
 0x1a5   :  { %2572 = vmatpush.bf16.msrb.mxu0 %v7663_v57  ;;  %2585 = vmatpush.bf16.msrb.mxu1 %v7665_v1  ;;  %v7687_v57 = vld [vmem:[#allocation66_spill] sm:$0xff]  ;;  %v7689_v1 = vld [vmem:[#allocation68_spill] sm:$0xff] }
 0x1a7   :  { %2597 = vmatpush.bf16.msrb.mxu2 %v7667_v55  ;;  %v7692_v55 = vld [vmem:[#allocation71_spill] sm:$0xff] }
 0x1a8   :  { %2610 = vmatpush.bf16.msrb.mxu3 %v7668_v8  ;;  %v7693_v8 = vld [vmem:[#allocation72_spill] sm:$0xff] }
 0x1a9   :  { %2573 = vmatpush.bf16.msrb.mxu0 %v7669_v6  ;;  %2586 = vmatpush.bf16.msrb.mxu1 %v7670_v42  ;;  %v2359_v45 = vpop.f32.mrf.mxu0  ;;  %v7694_v6 = vld [vmem:[#allocation73_spill] sm:$0xff] }
 0x1aa   :  { %v2360_v50 = vadd.f32 %v2359_v45, %v2347_v18  ;;  %v7709_v45 = vld [vmem:[#allocation88_spill] sm:$0xff] }
 0x1ab   :  { %2598 = vmatpush.bf16.msrb.mxu2 %v7673_v30  ;;  %v2372_v52 = vpop.f32.mrf.mxu1  ;;  %v7697_v30 = vld [vmem:[#allocation76_spill] sm:$0xff] }
 0x1ac   :  { %2611 = vmatpush.bf16.msrb.mxu3 %v7675_v12  ;;  %2574 = vmatmul.bf16.vlgmr.msrb.gmra.mxu0 %v6589_v48  ;;  %v2373_v11 = vadd.f32 %v2372_v52, %v2360_v50  ;;  %v7710_v50 = vld [vmem:[#allocation89_spill] sm:$0xff]  ;;  %v7711_v52 = vld [vmem:[#allocation90_spill] sm:$0xff] }
 0x1ad   :  { %2618 = vmatpush.bf16.msra.mxu0 %v7671_v0  ;;  %2631 = vmatpush.bf16.msra.mxu1 %v7672_v58  ;;  %v7695_v0 = vld [vmem:[#allocation74_spill] sm:$0xff]  ;;  %v7696_v58 = vld [vmem:[#allocation75_spill] sm:$0xff] }
 0x1ae   :  { %2587 = vmatmul.bf16.vlgmr.msrb.gmra.mxu1 %v6593_v44 }
 0x1af   :  { %2599 = vmatpush.bf16.msrb.mxu2 %v7679_v4  ;;  %v7703_v4 = vld [vmem:[#allocation82_spill] sm:$0xff] }
 0x1b0   :  { %2612 = vmatpush.bf16.msrb.mxu3 %v7680_v14  ;;  %v7704_v14 = vld [vmem:[#allocation83_spill] sm:$0xff] }
 0x1b1   :  { %2619 = vmatpush.bf16.msra.mxu0 %v7677_v9  ;;  %2632 = vmatpush.bf16.msra.mxu1 %v7678_v2  ;;  %v2361_v42 = vpop.f32.mrf.mxu0  ;;  %v7701_v9 = vld [vmem:[#allocation80_spill] sm:$0xff]  ;;  %v7702_v2 = vld [vmem:[#allocation81_spill] sm:$0xff] }
 0x1b2   :  { %2600 = vmatmul.bf16.vlgmr.msrb.gmra.mxu2 %v6605_v10 }
 0x1b3   :  { %2644 = vmatpush.bf16.msra.mxu2 %v7681_v16  ;;  %2613 = vmatmul.bf16.vlgmr.msrb.gmra.mxu3 %v6609_v21  ;;  %v2374_v18 = vpop.f32.mrf.mxu1  ;;  %v7705_v16 = vld [vmem:[#allocation84_spill] sm:$0xff] }
 0x1b4   :  { %2657 = vmatpush.bf16.msra.mxu3 %v7682_v22  ;;  %v7706_v22 = vld [vmem:[#allocation85_spill] sm:$0xff] }
 0x1b5   :  { %2620 = vmatpush.bf16.msra.mxu0 %v7683_v26  ;;  %2633 = vmatpush.bf16.msra.mxu1 %v7684_v33  ;;  %v2385_v41 = vpop.f32.mrf.mxu2  ;;  %v7707_v26 = vld [vmem:[#allocation86_spill] sm:$0xff]  ;;  %v7708_v33 = vld [vmem:[#allocation87_spill] sm:$0xff] }
 0x1b6   :  { %v2386_v12 = vadd.f32 %v2385_v41, %v2373_v11  ;;  %v2398_v20 = vpop.f32.mrf.mxu3  ;;  %v7714_v11 = vld [vmem:[#allocation93_spill] sm:$0xff] }
 0x1b7   :  { %2645 = vmatpush.bf16.msra.mxu2 %v7685_v34  ;;  %v7722_v41 = vld [vmem:[#allocation101_spill] sm:$0xff] }
 0x1b8   :  { %2658 = vmatpush.bf16.msra.mxu3 %v7686_v40  ;;  %v6632_v62 = vadd.f32 %v2398_v20, %v2386_v12  ;;  %v7723_v12 = vld [vmem:[#allocation103_spill] sm:$0xff]  ;;  %v7724_v20 = vld [vmem:[#allocation104_spill] sm:$0xff] }
 0x1b9   :  { %2621 = vmatpush.bf16.msra.mxu0 %v7687_v57  ;;  %2634 = vmatpush.bf16.msra.mxu1 %v7688_v59  ;;  %v7712_v57 = vld [vmem:[#allocation91_spill] sm:$0xff]  ;;  %v7713_v59 = vld [vmem:[#allocation92_spill] sm:$0xff] }
 0x1bb   :  { %2646 = vmatpush.bf16.msra.mxu2 %v7689_v1  ;;  %v7715_v1 = vld [vmem:[#allocation94_spill] sm:$0xff] }
 0x1bc   :  { %2659 = vmatpush.bf16.msra.mxu3 %v7690_v15  ;;  %v7376_v15 = vperm.slane %v6298_v27, 3 }
 0x1bd   :  { %2622 = vmatpush.bf16.msra.mxu0 %v7691_v31  ;;  %2635 = vmatpush.bf16.msra.mxu1 %v7692_v55  ;;  %v2387_v34 = vpop.f32.mrf.mxu2  ;;  %v7716_v31 = vld [vmem:[#allocation95_spill] sm:$0xff]  ;;  %v7717_v55 = vld [vmem:[#allocation96_spill] sm:$0xff] }
 0x1be   :  { %v2400_v40 = vpop.f32.mrf.mxu3 }
 0x1bf   :  { %2647 = vmatpush.bf16.msra.mxu2 %v7693_v8  ;;  %v7718_v8 = vld [vmem:[#allocation97_spill] sm:$0xff]  ;;  %v7731_v40 = vld [vmem:[#allocation112_spill] sm:$0xff] }
 0x1c0   :  { %2660 = vmatpush.bf16.msra.mxu3 %v7694_v6 }
 0x1c1   :  { %2623 = vmatpush.bf16.msra.mxu0 %v7695_v0  ;;  %2636 = vmatpush.bf16.msra.mxu1 %v7696_v58  ;;  %v7719_v0 = vld [vmem:[#allocation98_spill] sm:$0xff]  ;;  %v7720_v58 = vld [vmem:[#allocation99_spill] sm:$0xff] }
 0x1c3   :  { %2648 = vmatpush.bf16.msra.mxu2 %v7697_v30 }
 0x1c4   :  { %2661 = vmatpush.bf16.msra.mxu3 %v7698_v23  ;;  %v7721_v23 = vld [vmem:[#allocation100_spill] sm:$0xff] }
 0x1c5   :  { %2624 = vmatpush.bf16.msra.mxu0 %v7699_v13  ;;  %2637 = vmatpush.bf16.msra.mxu1 %v7700_v61  ;;  %v7725_v13 = vld [vmem:[#allocation106_spill] sm:$0xff]  ;;  %v7726_v61 = vld [vmem:[#allocation107_spill] sm:$0xff] }
 0x1c7   :  { %2649 = vmatpush.bf16.msra.mxu2 %v7701_v9 }
 0x1c8   :  { %2662 = vmatpush.bf16.msra.mxu3 %v7702_v2 }
 0x1c9   :  { %2625 = vmatpush.bf16.msra.mxu0 %v7703_v4  ;;  %2638 = vmatpush.bf16.msra.mxu1 %v7704_v14  ;;  %v2411_v6 = vpop.f32.mrf.mxu0  ;;  %v7727_v4 = vld [vmem:[#allocation108_spill] sm:$0xff]  ;;  %v7728_v14 = vld [vmem:[#allocation109_spill] sm:$0xff] }
 0x1ca   :  { %v2412_v42 = vadd.f32 %v2411_v6, %v7376_v15  ;;  %v5325_v15 = vld [vmem:[#allocation11 + $0x1e4] sm:$0xf] }
 0x1cb   :  { %2650 = vmatpush.bf16.msra.mxu2 %v7707_v26  ;;  %v2424_v18 = vpop.f32.mrf.mxu1 }
 0x1cc   :  { %2663 = vmatpush.bf16.msra.mxu3 %v7708_v33  ;;  %2626 = vmatmul.bf16.vlgmr.msra.gmra.mxu0 %v6538_v38  ;;  %v2425_v30 = vadd.f32 %v2424_v18, %v2412_v42  ;;  %v7741_v18 = vld [vmem:[#allocation122_spill] sm:$0xff] }
 0x1cd   :  { %2670 = vmatpush.bf16.msrb.mxu0 %v7705_v16  ;;  %2683 = vmatpush.bf16.msrb.mxu1 %v7706_v22  ;;  %v7729_v16 = vld [vmem:[#allocation110_spill] sm:$0xff]  ;;  %v7730_v22 = vld [vmem:[#allocation111_spill] sm:$0xff] }
 0x1ce   :  { %2639 = vmatmul.bf16.vlgmr.msra.gmra.mxu1 %v6542_v46 }
 0x1cf   :  { %2651 = vmatpush.bf16.msra.mxu2 %v7711_v52  ;;  %v7733_v52 = vld [vmem:[#allocation114_spill] sm:$0xff] }
 0x1d0   :  { %2664 = vmatpush.bf16.msra.mxu3 %v7712_v57  ;;  %v7734_v57 = vld [vmem:[#allocation115_spill] sm:$0xff] }
 0x1d1   :  { %2671 = vmatpush.bf16.msrb.mxu0 %v7709_v45  ;;  %2684 = vmatpush.bf16.msrb.mxu1 %v7710_v50  ;;  %v2413_v9 = vpop.f32.mrf.mxu0  ;;  %v7732_v45 = vld [vmem:[#allocation113_spill] sm:$0xff] }
 0x1d2   :  { %2652 = vmatmul.bf16.vlgmr.msra.gmra.mxu2 %v6554_v17 }
 0x1d3   :  { %2696 = vmatpush.bf16.msrb.mxu2 %v7713_v59  ;;  %2665 = vmatmul.bf16.vlgmr.msra.gmra.mxu3 %v6558_v43  ;;  %v2426_v2 = vpop.f32.mrf.mxu1  ;;  %v7735_v59 = vld [vmem:[#allocation116_spill] sm:$0xff] }
 0x1d4   :  { %2709 = vmatpush.bf16.msrb.mxu3 %v7714_v11  ;;  %v7736_v11 = vld [vmem:[#allocation117_spill] sm:$0xff] }
 0x1d5   :  { %2672 = vmatpush.bf16.msrb.mxu0 %v7715_v1  ;;  %2685 = vmatpush.bf16.msrb.mxu1 %v7716_v31  ;;  %v2437_v26 = vpop.f32.mrf.mxu2  ;;  %v7737_v1 = vld [vmem:[#allocation118_spill] sm:$0xff]  ;;  %v7738_v31 = vld [vmem:[#allocation119_spill] sm:$0xff] }
 0x1d6   :  { %v2438_v33 = vadd.f32 %v2437_v26, %v2425_v30  ;;  %v2450_v34 = vpop.f32.mrf.mxu3  ;;  %v7744_v30 = vld [vmem:[#allocation125_spill] sm:$0xff]  ;;  %v7753_v26 = vld [vmem:[#allocation136_spill] sm:$0xff] }
 0x1d7   :  { %2697 = vmatpush.bf16.msrb.mxu2 %v7717_v55  ;;  %v7739_v55 = vld [vmem:[#allocation120_spill] sm:$0xff] }
 0x1d8   :  { %2710 = vmatpush.bf16.msrb.mxu3 %v7718_v8  ;;  %v2451_v50 = vadd.f32 %v2450_v34, %v2438_v33  ;;  %v7740_v8 = vld [vmem:[#allocation121_spill] sm:$0xff]  ;;  %v7755_v34 = vld [vmem:[#allocation139_spill] sm:$0xff] }
 0x1d9   :  { %2673 = vmatpush.bf16.msrb.mxu0 %v7719_v0  ;;  %2686 = vmatpush.bf16.msrb.mxu1 %v7720_v58  ;;  %v7742_v0 = vld [vmem:[#allocation123_spill] sm:$0xff]  ;;  %v7743_v58 = vld [vmem:[#allocation124_spill] sm:$0xff]  ;;  %v7754_v33 = vld [vmem:[#allocation137_spill] sm:$0xff] }
 0x1db   :  { %2698 = vmatpush.bf16.msrb.mxu2 %v7721_v23  ;;  %v7745_v23 = vld [vmem:[#allocation126_spill] sm:$0xff] }
 0x1dc   :  { %2711 = vmatpush.bf16.msrb.mxu3 %v7722_v41  ;;  %v7746_v41 = vld [vmem:[#allocation127_spill] sm:$0xff] }
 0x1dd   :  { %2674 = vmatpush.bf16.msrb.mxu0 %v7723_v12  ;;  %2687 = vmatpush.bf16.msrb.mxu1 %v7724_v20  ;;  %v2439_v6 = vpop.f32.mrf.mxu2  ;;  %v7747_v12 = vld [vmem:[#allocation128_spill] sm:$0xff]  ;;  %v7748_v20 = vld [vmem:[#allocation129_spill] sm:$0xff] }
 0x1de   :  { %v2452_v42 = vpop.f32.mrf.mxu3 }
 0x1df   :  { %2699 = vmatpush.bf16.msrb.mxu2 %v7725_v13  ;;  %v7749_v13 = vld [vmem:[#allocation130_spill] sm:$0xff]  ;;  %v7763_v42 = vld [vmem:[#allocation148_spill] sm:$0xff] }
 0x1e0   :  { %2712 = vmatpush.bf16.msrb.mxu3 %v7726_v61  ;;  %v7750_v61 = vld [vmem:[#allocation131_spill] sm:$0xff] }
 0x1e1   :  { %2675 = vmatpush.bf16.msrb.mxu0 %v7727_v4  ;;  %2688 = vmatpush.bf16.msrb.mxu1 %v7728_v14  ;;  %v7751_v14 = vld [vmem:[#allocation133_spill] sm:$0xff] }
 0x1e3   :  { %2700 = vmatpush.bf16.msrb.mxu2 %v7729_v16  ;;  %v7752_v16 = vld [vmem:[#allocation134_spill] sm:$0xff] }
 0x1e4   :  { %2713 = vmatpush.bf16.msrb.mxu3 %v7730_v22 }
 0x1e5   :  { %2676 = vmatpush.bf16.msrb.mxu0 %v7731_v40  ;;  %2689 = vmatpush.bf16.msrb.mxu1 %v7732_v45  ;;  %v7756_v40 = vld [vmem:[#allocation140_spill] sm:$0xff]  ;;  %v7757_v45 = vld [vmem:[#allocation142_spill] sm:$0xff] }
 0x1e7   :  { %2701 = vmatpush.bf16.msrb.mxu2 %v7733_v52  ;;  %v7758_v52 = vld [vmem:[#allocation143_spill] sm:$0xff] }
 0x1e8   :  { %2714 = vmatpush.bf16.msrb.mxu3 %v7734_v57 }
 0x1e9   :  { %2677 = vmatpush.bf16.msrb.mxu0 %v7735_v59  ;;  %2690 = vmatpush.bf16.msrb.mxu1 %v7736_v11  ;;  %v2463_v9 = vpop.f32.mrf.mxu0  ;;  %v7759_v59 = vld [vmem:[#allocation144_spill] sm:$0xff]  ;;  %v7760_v11 = vld [vmem:[#allocation145_spill] sm:$0xff] }
 0x1ea   :  { %v2464_v2 = vadd.f32 %v2463_v9, %v2451_v50 }
 0x1eb   :  { %2702 = vmatpush.bf16.msrb.mxu2 %v7739_v55  ;;  %v2476_v4 = vpop.f32.mrf.mxu1 }
 0x1ec   :  { %2715 = vmatpush.bf16.msrb.mxu3 %v7740_v8  ;;  %2678 = vmatmul.bf16.vlgmr.msrb.gmra.mxu0 %v6589_v48  ;;  %v2477_v22 = vadd.f32 %v2476_v4, %v2464_v2  ;;  %v7773_v4 = vld [vmem:[#allocation158_spill] sm:$0xff] }
 0x1ed   :  { %2722 = vmatpush.bf16.msra.mxu0 %v7737_v1  ;;  %2735 = vmatpush.bf16.msra.mxu1 %v7738_v31  ;;  %v7761_v1 = vld [vmem:[#allocation146_spill] sm:$0xff]  ;;  %v7762_v31 = vld [vmem:[#allocation147_spill] sm:$0xff] }
 0x1ee   :  { %2691 = vmatmul.bf16.vlgmr.msrb.gmra.mxu1 %v6593_v44 }
 0x1ef   :  { %2703 = vmatpush.bf16.msrb.mxu2 %v7743_v58  ;;  %v7765_v58 = vld [vmem:[#allocation150_spill] sm:$0xff] }
 0x1f0   :  { %2716 = vmatpush.bf16.msrb.mxu3 %v7744_v30  ;;  %v7766_v30 = vld [vmem:[#allocation151_spill] sm:$0xff] }
 0x1f1   :  { %2723 = vmatpush.bf16.msra.mxu0 %v7741_v18  ;;  %2736 = vmatpush.bf16.msra.mxu1 %v7742_v0  ;;  %v2465_v57 = vpop.f32.mrf.mxu0  ;;  %v7764_v18 = vld [vmem:[#allocation149_spill] sm:$0xff] }
 0x1f2   :  { %2704 = vmatmul.bf16.vlgmr.msrb.gmra.mxu2 %v6605_v10 }
 0x1f3   :  { %2748 = vmatpush.bf16.msra.mxu2 %v7745_v23  ;;  %2717 = vmatmul.bf16.vlgmr.msrb.gmra.mxu3 %v6609_v21  ;;  %v2478_v50 = vpop.f32.mrf.mxu1  ;;  %v7767_v23 = vld [vmem:[#allocation152_spill] sm:$0xff] }
 0x1f4   :  { %2761 = vmatpush.bf16.msra.mxu3 %v7746_v41  ;;  %v7768_v41 = vld [vmem:[#allocation153_spill] sm:$0xff] }
 0x1f5   :  { %2724 = vmatpush.bf16.msra.mxu0 %v7747_v12  ;;  %2737 = vmatpush.bf16.msra.mxu1 %v7748_v20  ;;  %v2489_v55 = vpop.f32.mrf.mxu2  ;;  %v7769_v12 = vld [vmem:[#allocation154_spill] sm:$0xff]  ;;  %v7770_v20 = vld [vmem:[#allocation155_spill] sm:$0xff] }
 0x1f6   :  { %v2490_v8 = vadd.f32 %v2489_v55, %v2477_v22  ;;  %v2502_v6 = vpop.f32.mrf.mxu3  ;;  %v7776_v22 = vld [vmem:[#allocation161_spill] sm:$0xff]  ;;  %v7787_v55 = vld [vmem:[#allocation172_spill] sm:$0xff] }
 0x1f7   :  { %2749 = vmatpush.bf16.msra.mxu2 %v7749_v13  ;;  %v7771_v13 = vld [vmem:[#allocation156_spill] sm:$0xff] }
 0x1f8   :  { %2762 = vmatpush.bf16.msra.mxu3 %v7750_v61  ;;  %v6709_v0 = vadd.f32 %v2502_v6, %v2490_v8  ;;  %v7772_v61 = vld [vmem:[#allocation157_spill] sm:$0xff]  ;;  %v7789_v6 = vld [vmem:[#allocation174_spill] sm:$0xff] }
 0x1f9   :  { %2725 = vmatpush.bf16.msra.mxu0 %v7751_v14  ;;  %2738 = vmatpush.bf16.msra.mxu1 %v7752_v16  ;;  %v7774_v14 = vld [vmem:[#allocation159_spill] sm:$0xff]  ;;  %v7775_v16 = vld [vmem:[#allocation160_spill] sm:$0xff]  ;;  %v7788_v8 = vld [vmem:[#allocation173_spill] sm:$0xff] }
 0x1fb   :  { %2750 = vmatpush.bf16.msra.mxu2 %v7753_v26  ;;  %v7777_v26 = vld [vmem:[#allocation162_spill] sm:$0xff] }
 0x1fc   :  { %2763 = vmatpush.bf16.msra.mxu3 %v7754_v33  ;;  %v7778_v33 = vld [vmem:[#allocation163_spill] sm:$0xff] }
 0x1fd   :  { %2726 = vmatpush.bf16.msra.mxu0 %v7755_v34  ;;  %2739 = vmatpush.bf16.msra.mxu1 %v7756_v40  ;;  %v2491_v9 = vpop.f32.mrf.mxu2  ;;  %v7779_v34 = vld [vmem:[#allocation164_spill] sm:$0xff]  ;;  %v7780_v40 = vld [vmem:[#allocation165_spill] sm:$0xff] }
 0x1fe   :  { %v2504_v2 = vpop.f32.mrf.mxu3  ;;  %v7796_v9 = vld [vmem:[#allocation181_spill] sm:$0xff] }
 0x1ff   :  { %2751 = vmatpush.bf16.msra.mxu2 %v7757_v45  ;;  %v7781_v45 = vld [vmem:[#allocation166_spill] sm:$0xff] }
 0x200   :  { %2764 = vmatpush.bf16.msra.mxu3 %v7758_v52  ;;  %v7782_v52 = vld [vmem:[#allocation167_spill] sm:$0xff]  ;;  %v7797_v2 = vld [vmem:[#allocation182_spill] sm:$0xff] }
 0x201   :  { %2727 = vmatpush.bf16.msra.mxu0 %v7759_v59  ;;  %2740 = vmatpush.bf16.msra.mxu1 %v7760_v11  ;;  %v7783_v59 = vld [vmem:[#allocation168_spill] sm:$0xff]  ;;  %v7784_v11 = vld [vmem:[#allocation169_spill] sm:$0xff] }
 0x203   :  { %2752 = vmatpush.bf16.msra.mxu2 %v7761_v1  ;;  %v7785_v1 = vld [vmem:[#allocation170_spill] sm:$0xff] }
 0x204   :  { %2765 = vmatpush.bf16.msra.mxu3 %v7762_v31  ;;  %v7786_v31 = vld [vmem:[#allocation171_spill] sm:$0xff] }
 0x205   :  { %2728 = vmatpush.bf16.msra.mxu0 %v7763_v42  ;;  %2741 = vmatpush.bf16.msra.mxu1 %v7764_v18  ;;  %v7790_v42 = vld [vmem:[#allocation175_spill] sm:$0xff] }
 0x207   :  { %2753 = vmatpush.bf16.msra.mxu2 %v7765_v58 }
 0x208   :  { %2766 = vmatpush.bf16.msra.mxu3 %v7766_v30  ;;  %v7791_v30 = vld [vmem:[#allocation176_spill] sm:$0xff] }
 0x209   :  { %2729 = vmatpush.bf16.msra.mxu0 %v7767_v23  ;;  %2742 = vmatpush.bf16.msra.mxu1 %v7768_v41  ;;  %v2523_v57 = vpop.f32.mrf.mxu0  ;;  %v7792_v23 = vld [vmem:[#allocation177_spill] sm:$0xff]  ;;  %v7793_v41 = vld [vmem:[#allocation178_spill] sm:$0xff] }
 0x20b   :  { %2754 = vmatpush.bf16.msra.mxu2 %v7771_v13  ;;  %v2536_v50 = vpop.f32.mrf.mxu1 }
 0x20c   :  { %2767 = vmatpush.bf16.msra.mxu3 %v7772_v61  ;;  %2730 = vmatmul.bf16.vlgmr.msra.gmra.mxu0 %v6538_v38  ;;  %v7795_v61 = vld [vmem:[#allocation180_spill] sm:$0xff] }
 0x20d   :  { %2774 = vmatpush.bf16.msrb.mxu0 %v7769_v12  ;;  %2787 = vmatpush.bf16.msrb.mxu1 %v7770_v20  ;;  %v7794_v12 = vld [vmem:[#allocation179_spill] sm:$0xff] }
 0x20e   :  { %2743 = vmatmul.bf16.vlgmr.msra.gmra.mxu1 %v6542_v46 }
 0x20f   :  { %2755 = vmatpush.bf16.msra.mxu2 %v7775_v16  ;;  %v7800_v16 = vperm.slane %v6298_v27, 0 }
 0x210   :  { %2768 = vmatpush.bf16.msra.mxu3 %v7776_v22 }
 0x211   :  { %2775 = vmatpush.bf16.msrb.mxu0 %v7773_v4  ;;  %2788 = vmatpush.bf16.msrb.mxu1 %v7774_v14  ;;  %v2525_v18 = vpop.f32.mrf.mxu0  ;;  %v7798_v4 = vld [vmem:[#allocation183_spill] sm:$0xff]  ;;  %v7799_v14 = vld [vmem:[#allocation184_spill] sm:$0xff]  ;;  %v2524_v22 = vadd.f32 %v2523_v57, %v7800_v16 }
 0x212   :  { %2756 = vmatmul.bf16.vlgmr.msra.gmra.mxu2 %v6554_v17  ;;  %v7807_v57 = vld [vmem:[#allocation191_spill] sm:$0xff]  ;;  %v7812_v18 = vld [vmem:[#allocation196_spill] sm:$0xff] }
 0x213   :  { %2800 = vmatpush.bf16.msrb.mxu2 %v7777_v26  ;;  %2769 = vmatmul.bf16.vlgmr.msra.gmra.mxu3 %v6558_v43  ;;  %v2538_v58 = vpop.f32.mrf.mxu1  ;;  %v7801_v26 = vld [vmem:[#allocation185_spill] sm:$0xff]  ;;  %v7820_v16 = vld [vmem:[#allocation204_spill] sm:$0xff] }
 0x214   :  { %2813 = vmatpush.bf16.msrb.mxu3 %v7778_v33  ;;  %v7802_v33 = vld [vmem:[#allocation186_spill] sm:$0xff] }
 0x215   :  { %2776 = vmatpush.bf16.msrb.mxu0 %v7779_v34  ;;  %2789 = vmatpush.bf16.msrb.mxu1 %v7780_v40  ;;  %v2549_v20 = vpop.f32.mrf.mxu2  ;;  %v7803_v34 = vld [vmem:[#allocation187_spill] sm:$0xff]  ;;  %v7804_v40 = vld [vmem:[#allocation188_spill] sm:$0xff] }
 0x216   :  { %v2562_v13 = vpop.f32.mrf.mxu3 }
 0x217   :  { %2801 = vmatpush.bf16.msrb.mxu2 %v7781_v45  ;;  %v7805_v45 = vld [vmem:[#allocation189_spill] sm:$0xff] }
 0x218   :  { %2814 = vmatpush.bf16.msrb.mxu3 %v7782_v52 }
 0x219   :  { %2777 = vmatpush.bf16.msrb.mxu0 %v7783_v59  ;;  %2790 = vmatpush.bf16.msrb.mxu1 %v7784_v11  ;;  %v2537_v11 = vadd.f32 %v2536_v50, %v2524_v22  ;;  %v7813_v50 = vld [vmem:[#allocation197_spill] sm:$0xff] }
 0x21a   :  { %v7821_v22 = vld [vmem:[#allocation205_spill] sm:$0xff] }
 0x21b   :  { %2802 = vmatpush.bf16.msrb.mxu2 %v7785_v1  ;;  %v7806_v1 = vld [vmem:[#allocation190_spill] sm:$0xff] }
 0x21c   :  { %2815 = vmatpush.bf16.msrb.mxu3 %v7786_v31  ;;  %v7808_v31 = vld [vmem:[#allocation192_spill] sm:$0xff] }
 0x21d   :  { %2778 = vmatpush.bf16.msrb.mxu0 %v7787_v55  ;;  %2791 = vmatpush.bf16.msrb.mxu1 %v7788_v8  ;;  %v2551_v52 = vpop.f32.mrf.mxu2  ;;  %v2550_v55 = vadd.f32 %v2549_v20, %v2537_v11  ;;  %v7809_v8 = vld [vmem:[#allocation193_spill] sm:$0xff] }
 0x21e   :  { %v2564_v59 = vpop.f32.mrf.mxu3  ;;  %v7826_v52 = vld [vmem:[#allocation210_spill] sm:$0xff] }
 0x21f   :  { %2803 = vmatpush.bf16.msrb.mxu2 %v7789_v6  ;;  %v7810_v6 = vld [vmem:[#allocation194_spill] sm:$0xff]  ;;  %v2563_v58 = vadd.f32 %v2562_v13, %v2550_v55  ;;  %v7827_v59 = vld [vmem:[#allocation211_spill] sm:$0xff] }
 0x220   :  { %2816 = vmatpush.bf16.msrb.mxu3 %v7790_v42  ;;  %v7811_v42 = vld [vmem:[#allocation195_spill] sm:$0xff]  ;;  %v7822_v13 = vld [vmem:[#allocation206_spill] sm:$0xff] }
 0x221   :  { %2779 = vmatpush.bf16.msrb.mxu0 %v7791_v30  ;;  %2792 = vmatpush.bf16.msrb.mxu1 %v7792_v23  ;;  %v7814_v30 = vld [vmem:[#allocation198_spill] sm:$0xff]  ;;  %v7815_v23 = vld [vmem:[#allocation199_spill] sm:$0xff] }
 0x223   :  { %2804 = vmatpush.bf16.msrb.mxu2 %v7793_v41 }
 0x224   :  { %2817 = vmatpush.bf16.msrb.mxu3 %v7794_v12 }
 0x225   :  { %2780 = vmatpush.bf16.msrb.mxu0 %v7795_v61  ;;  %2793 = vmatpush.bf16.msrb.mxu1 %v7796_v9  ;;  %v7816_v61 = vld [vmem:[#allocation200_spill] sm:$0xff]  ;;  %v7817_v9 = vld [vmem:[#allocation201_spill] sm:$0xff] }
 0x227   :  { %2805 = vmatpush.bf16.msrb.mxu2 %v7797_v2 }
 0x228   :  { %2818 = vmatpush.bf16.msrb.mxu3 %v7798_v4  ;;  %v7818_v4 = vld [vmem:[#allocation202_spill] sm:$0xff] }
 0x229   :  { %2781 = vmatpush.bf16.msrb.mxu0 %v7799_v14  ;;  %2794 = vmatpush.bf16.msrb.mxu1 %v7801_v26  ;;  %v2575_v41 = vpop.f32.mrf.mxu0  ;;  %v7819_v14 = vld [vmem:[#allocation203_spill] sm:$0xff] }
 0x22a   :  { %v2576_v12 = vadd.f32 %v2575_v41, %v2563_v58  ;;  %v7823_v26 = vld [vmem:[#allocation207_spill] sm:$0xff]  ;;  %v7842_v41 = vld [vmem:[#allocation226_spill] sm:$0xff] }
 0x22b   :  { %2806 = vmatpush.bf16.msrb.mxu2 %v7804_v40  ;;  %v2588_v20 = vpop.f32.mrf.mxu1  ;;  %v7824_v40 = vld [vmem:[#allocation208_spill] sm:$0xff] }
 0x22c   :  { %2819 = vmatpush.bf16.msrb.mxu3 %v7805_v45  ;;  %2782 = vmatmul.bf16.vlgmr.msrb.gmra.mxu0 %v6589_v48  ;;  %v2589_v2 = vadd.f32 %v2588_v20, %v2576_v12  ;;  %v7825_v45 = vld [vmem:[#allocation209_spill] sm:$0xff]  ;;  %v7843_v12 = vld [vmem:[#allocation227_spill] sm:$0xff] }
 0x22d   :  { %2826 = vmatpush.bf16.msra.mxu0 %v7802_v33  ;;  %2839 = vmatpush.bf16.msra.mxu1 %v7803_v34  ;;  %v7845_v20 = vld [vmem:[#allocation229_spill] sm:$0xff] }
 0x22e   :  { %2795 = vmatmul.bf16.vlgmr.msrb.gmra.mxu1 %v6593_v44 }
 0x22f   :  { %2807 = vmatpush.bf16.msrb.mxu2 %v7808_v31  ;;  %v7828_v31 = vld [vmem:[#allocation212_spill] sm:$0xff] }
 0x230   :  { %2820 = vmatpush.bf16.msrb.mxu3 %v7809_v8  ;;  %v7829_v8 = vld [vmem:[#allocation213_spill] sm:$0xff] }
 0x231   :  { %2827 = vmatpush.bf16.msra.mxu0 %v7806_v1  ;;  %2840 = vmatpush.bf16.msra.mxu1 %v7807_v57  ;;  %v2577_v33 = vpop.f32.mrf.mxu0 }
 0x232   :  { %2808 = vmatmul.bf16.vlgmr.msrb.gmra.mxu2 %v6605_v10  ;;  %v4857_v33 = vld [vmem:[#allocation11 + $0xf0] sm:$0xf] }
 0x233   :  { %2852 = vmatpush.bf16.msra.mxu2 %v7810_v6  ;;  %2821 = vmatmul.bf16.vlgmr.msrb.gmra.mxu3 %v6609_v21  ;;  %v2590_v34 = vpop.f32.mrf.mxu1  ;;  %v7830_v6 = vld [vmem:[#allocation214_spill] sm:$0xff] }
 0x234   :  { %2865 = vmatpush.bf16.msra.mxu3 %v7811_v42  ;;  %v7831_v42 = vld [vmem:[#allocation215_spill] sm:$0xff] }
 0x235   :  { %2828 = vmatpush.bf16.msra.mxu0 %v7812_v18  ;;  %2841 = vmatpush.bf16.msra.mxu1 %v7813_v50  ;;  %v2601_v11 = vpop.f32.mrf.mxu2  ;;  %v7832_v18 = vld [vmem:[#allocation216_spill] sm:$0xff] }
 0x236   :  { %v2602_v1 = vadd.f32 %v2601_v11, %v2589_v2  ;;  %v2614_v57 = vpop.f32.mrf.mxu3  ;;  %v5296_v34 = vld [vmem:[#allocation11 + $0xf4] sm:$0xf0] }
 0x237   :  { %2853 = vmatpush.bf16.msra.mxu2 %v7814_v30 }
 0x238   :  { %2866 = vmatpush.bf16.msra.mxu3 %v7815_v23  ;;  %v6785_v55 = vadd.f32 %v2614_v57, %v2602_v1  ;;  %v7841_v23 = vld [vmem:[#allocation224_spill] sm:$0xff]  ;;  %v5278_v57 = vld [vmem:[#allocation11 + $0x64] sm:$0xf0] }
 0x239   :  { %2829 = vmatpush.bf16.msra.mxu0 %v7816_v61  ;;  %2842 = vmatpush.bf16.msra.mxu1 %v7817_v9  ;;  %v7846_v61 = vld [vmem:[#allocation230_spill] sm:$0xff]  ;;  %v7847_v9 = vld [vmem:[#allocation231_spill] sm:$0xff]  ;;  %v4785_v1 = vld [vmem:[#allocation11 + $0x60] sm:$0xf] }
 0x23b   :  { %2854 = vmatpush.bf16.msra.mxu2 %v7818_v4 }
 0x23c   :  { %2867 = vmatpush.bf16.msra.mxu3 %v7819_v14  ;;  %v7848_v14 = vld [vmem:[#allocation232_spill] sm:$0xff] }
 0x23d   :  { %2830 = vmatpush.bf16.msra.mxu0 %v7820_v16  ;;  %2843 = vmatpush.bf16.msra.mxu1 %v7821_v22  ;;  %v2603_v50 = vpop.f32.mrf.mxu2  ;;  %v7849_v16 = vld [vmem:[#allocation233_spill] sm:$0xff]  ;;  %v5280_v22 = vld [vmem:[#allocation11 + $0x74] sm:$0xf0] }
 0x23f   :  { %2855 = vmatpush.bf16.msra.mxu2 %v7822_v13  ;;  %v7850_v13 = vld [vmem:[#allocation234_spill] sm:$0xff] }
 0x240   :  { %2868 = vmatpush.bf16.msra.mxu3 %v7823_v26 }
 0x241   :  { %2831 = vmatpush.bf16.msra.mxu0 %v7824_v40  ;;  %2844 = vmatpush.bf16.msra.mxu1 %v7825_v45 }
 0x243   :  { %2856 = vmatpush.bf16.msra.mxu2 %v7826_v52  ;;  %v7851_v52 = vld [vmem:[#allocation235_spill] sm:$0xff] }
 0x244   :  { %2869 = vmatpush.bf16.msra.mxu3 %v7827_v59 }
 0x245   :  { %2832 = vmatpush.bf16.msra.mxu0 %v7828_v31  ;;  %2845 = vmatpush.bf16.msra.mxu1 %v6368_v36  ;;  %v2616_v36 = vpop.f32.mrf.mxu3  ;;  %v4849_v31 = vld [vmem:[#allocation11 + $0xe0] sm:$0xf] }
 0x246   :  { %v5276_v36 = vld [vmem:[#allocation11 + $0x54] sm:$0xf0] }
 0x247   :  { %2857 = vmatpush.bf16.msra.mxu2 %v6371_v63  ;;  %v7835_v63 = vld [vmem:[#allocation219_spill] sm:$0xff] }
 0x248   :  { %2870 = vmatpush.bf16.msra.mxu3 %v6374_v39  ;;  %v7833_v39 = vld [vmem:[#allocation217_spill] sm:$0xff] }
 0x249   :  { %2833 = vmatpush.bf16.msra.mxu0 %v6377_v7  ;;  %2846 = vmatpush.bf16.msra.mxu1 %v7829_v8  ;;  %v7834_v7 = vld [vmem:[#allocation218_spill] sm:$0xff] }
 0x24a   :  { %v5294_v8 = vld [vmem:[#allocation11 + $0xe4] sm:$0xf0] }
 0x24b   :  { %2858 = vmatpush.bf16.msra.mxu2 %v7831_v42  ;;  %v2640_v30 = vpop.f32.mrf.mxu1  ;;  %v5312_v42 = vld [vmem:[#allocation11 + $0x174] sm:$0xf0]  ;;  %v6840_v50 = vor.u32 %v5294_v8, %v4849_v31  ;;  %v4889_v8 = vld [vmem:[#allocation11 + $0x130] sm:$0xf] }
 0x24c   :  { %2871 = vmatpush.bf16.msra.mxu3 %v7832_v18  ;;  %2834 = vmatmul.bf16.vlgmr.msra.gmra.mxu0 %v6538_v38  ;;  %v7837_v38 = vld [vmem:[#allocation221_spill] sm:$0xff]  ;;  %v4985_v18 = vld [vmem:[#allocation11 + $0x1f0] sm:$0xf] }
 0x24d   :  { %2878 = vmatpush.bf16.msrb.mxu0 %v7830_v6  ;;  %2891 = vmatpush.bf16.msrb.mxu1 %v6385_v60  ;;  %v7836_v60 = vld [vmem:[#allocation220_spill] sm:$0xff]  ;;  %v4921_v6 = vld [vmem:[#allocation11 + $0x170] sm:$0xf] }
 0x24e   :  { %2847 = vmatmul.bf16.vlgmr.msra.gmra.mxu1 %v6542_v46  ;;  %v7838_v46 = vld [vmem:[#allocation222_spill] sm:$0xff] }
 0x24f   :  { %2859 = vmatpush.bf16.msra.mxu2 %v6401_v29  ;;  %v7840_v29 = vperm.slane %v6298_v27, 1 }
 0x250   :  { %2872 = vmatpush.bf16.msra.mxu3 %v7833_v39  ;;  %v4841_v39 = vld [vmem:[#allocation11 + $0xd0] sm:$0xf] }
 0x251   :  { %2879 = vmatpush.bf16.msrb.mxu0 %v6395_v35  ;;  %2892 = vmatpush.bf16.msrb.mxu1 %v6399_v54  ;;  %v7839_v35 = vld [vmem:[#allocation223_spill] sm:$0xff]  ;;  %v2627_v54 = vpop.f32.mrf.mxu0 }
 0x252   :  { %2860 = vmatmul.bf16.vlgmr.msra.gmra.mxu2 %v6554_v17  ;;  %v2628_v58 = vadd.f32 %v2627_v54, %v7840_v29  ;;  %v4769_v54 = vld [vmem:[#allocation11 + $0x40] sm:$0xf]  ;;  %v5274_v29 = vld [vmem:[#allocation11 + $0x44] sm:$0xf0] }
 0x253   :  { %2904 = vmatpush.bf16.msrb.mxu2 %v7834_v7  ;;  %2873 = vmatmul.bf16.vlgmr.msra.gmra.mxu3 %v6558_v43  ;;  %v7844_v43 = vld [vmem:[#allocation228_spill] sm:$0xff]  ;;  %v2642_v4 = vpop.f32.mrf.mxu1 }
 0x254   :  { %2917 = vmatpush.bf16.msrb.mxu3 %v7835_v63  ;;  %v2641_v17 = vadd.f32 %v2640_v30, %v2628_v58  ;;  %v5292_v7 = vld [vmem:[#allocation11 + $0xd4] sm:$0xf0]  ;;  %v4833_v58 = vld [vmem:[#allocation11 + $0xc0] sm:$0xf]  ;;  %v5290_v30 = vld [vmem:[#allocation11 + $0xc4] sm:$0xf0] }
 0x255   :  { %2880 = vmatpush.bf16.msrb.mxu0 %v7836_v60  ;;  %2893 = vmatpush.bf16.msrb.mxu1 %v7837_v38  ;;  %v2653_v26 = vpop.f32.mrf.mxu2  ;;  %v4913_v38 = vld [vmem:[#allocation11 + $0x160] sm:$0xf] }
 0x256   :  { %v2654_v40 = vadd.f32 %v2653_v26, %v2641_v17  ;;  %v2666_v45 = vpop.f32.mrf.mxu3  ;;  %v4905_v17 = vld [vmem:[#allocation11 + $0x150] sm:$0xf]  ;;  %v4961_v26 = vld [vmem:[#allocation11 + $0x1c0] sm:$0xf] }
 0x257   :  { %2905 = vmatpush.bf16.msrb.mxu2 %v7838_v46 }
 0x258   :  { %2918 = vmatpush.bf16.msrb.mxu3 %v7839_v35  ;;  %v6827_v11 = vadd.f32 %v2666_v45, %v2654_v40  ;;  %v4977_v35 = vld [vmem:[#allocation11 + $0x1e0] sm:$0xf]  ;;  %v5270_v45 = vld [vmem:[#allocation11 + $0x24] sm:$0xf0] }
 0x259   :  { %2881 = vmatpush.bf16.msrb.mxu0 %v7841_v23  ;;  %2894 = vmatpush.bf16.msrb.mxu1 %v6433_v5  ;;  %v2629_v2 = vpop.f32.mrf.mxu0  ;;  %v4793_v5 = vld [vmem:[#allocation11 + $0x70] sm:$0xf]  ;;  %v4753_v40 = vld [vmem:[#allocation11 + $0x20] sm:$0xf] }
 0x25a   :  { %v6825_v59 = vor.u32 %v5280_v22, %v4793_v5  ;;  %v4825_v2 = vld [vmem:[#allocation11 + $0xb0] sm:$0xf]  ;;  %v5306_v5 = vld [vmem:[#allocation11 + $0x144] sm:$0xf0] }
 0x25b   :  { %2906 = vmatpush.bf16.msrb.mxu2 %v7842_v41  ;;  %v5308_v41 = vld [vmem:[#allocation11 + $0x154] sm:$0xf0] }
 0x25c   :  { %2919 = vmatpush.bf16.msrb.mxu3 %v7843_v12  ;;  %v4969_v12 = vld [vmem:[#allocation11 + $0x1d0] sm:$0xf] }
 0x25d   :  { %2882 = vmatpush.bf16.msrb.mxu0 %v7844_v43  ;;  %2895 = vmatpush.bf16.msrb.mxu1 %v7845_v20  ;;  %v6869_v43 = vor.u32 %v5290_v30, %v4833_v58  ;;  %v4761_v20 = vld [vmem:[#allocation11 + $0x30] sm:$0xf]  ;;  %v4945_v58 = vld [vmem:[#allocation11 + $0x1a0] sm:$0xf]  ;;  %v5318_v30 = vld [vmem:[#allocation11 + $0x1a4] sm:$0xf0] }
 0x25e   :  { %v2668_v63 = vpop.f32.mrf.mxu3 }
 0x25f   :  { %2907 = vmatpush.bf16.msrb.mxu2 %v7846_v61  ;;  %v5272_v61 = vld [vmem:[#allocation11 + $0x34] sm:$0xf0] }
 0x260   :  { %2920 = vmatpush.bf16.msrb.mxu3 %v7847_v9  ;;  %v6872_v9 = vor.u32 %v5308_v41, %v4905_v17  ;;  %v5284_v63 = vld [vmem:[#allocation11 + $0x94] sm:$0xf0]  ;;  %v4737_v17 = vld [vmem:[#allocation11] sm:$0xf] }
 0x261   :  { %2883 = vmatpush.bf16.msrb.mxu0 %v7848_v14  ;;  %2896 = vmatpush.bf16.msrb.mxu1 %v7849_v16  ;;  %v4897_v16 = vld [vmem:[#allocation11 + $0x140] sm:$0xf] }
 0x263   :  { %2908 = vmatpush.bf16.msrb.mxu2 %v6464_v53  ;;  %v6830_v53 = vor.u32 %v5296_v34, %v4857_v33  ;;  %v5322_v33 = vld [vmem:[#allocation11 + $0x1c4] sm:$0xf0] }
 0x264   :  { %2921 = vmatpush.bf16.msrb.mxu3 %v7850_v13  ;;  %v6879_v13 = vor.u32 %v5272_v61, %v4761_v20  ;;  %v6890_v31 = vor.u32 %v5322_v33, %v4961_v26  ;;  %v5282_v20 = vld [vmem:[#allocation11 + $0x84] sm:$0xf0]  ;;  %v5300_v26 = vld [vmem:[#allocation11 + $0x114] sm:$0xf0] }
 0x265   :  { %2884 = vmatpush.bf16.msrb.mxu0 %v7851_v52  ;;  %2897 = vmatpush.bf16.msrb.mxu1 %v6473_v25  ;;  %v6836_v25 = vor.u32 %v5278_v57, %v4785_v1  ;;  %v6887_v1 = vor.u32 %v5306_v5, %v4897_v16  ;;  %v5286_v57 = vld [vmem:[#allocation11 + $0xa4] sm:$0xf0]  ;;  %v6916_v5 = vor.u32 %v5318_v30, %v4945_v58  ;;  %v4929_v58 = vld [vmem:[#allocation11 + $0x180] sm:$0xf] }
 0x266   :  { %v5314_v30 = vld [vmem:[#allocation11 + $0x184] sm:$0xf0] }
 0x267   :  { %2909 = vmatpush.bf16.msrb.mxu2 %v6476_v47  ;;  %v5328_v47 = vld [vmem:[#allocation11 + $0x1f4] sm:$0xf0] }
 0x268   :  { %2922 = vmatpush.bf16.msrb.mxu3 %v6479_v37  ;;  %v4777_v37 = vld [vmem:[#allocation11 + $0x50] sm:$0xf]  ;;  %v6847_v60 = vor.u32 %v5328_v47, %v4985_v18  ;;  %v5320_v47 = vld [vmem:[#allocation11 + $0x1b4] sm:$0xf0] }
 0x269   :  { %2885 = vmatpush.bf16.msrb.mxu0 %v6482_v32  ;;  %2898 = vmatpush.bf16.msrb.mxu1 %v6485_v49  ;;  %v2655_v32 = vpop.f32.mrf.mxu2  ;;  %v6844_v49 = vor.u32 %v5312_v42, %v4921_v6  ;;  %v6850_v46 = vor.u32 %v5276_v36, %v4777_v37  ;;  %v2679_v4 = vpop.f32.mrf.mxu0  ;;  %v5304_v6 = vld [vmem:[#allocation11 + $0x134] sm:$0xf0]  ;;  %v6893_v42 = vor.u32 %v5270_v45, %v4753_v40  ;;  %v4953_v18 = vld [vmem:[#allocation11 + $0x1b0] sm:$0xf] }
 0x26a   :  { %v4745_v36 = vld [vmem:[#allocation11 + $0x10] sm:$0xf]  ;;  %v5268_v32 = vld [vmem:[#allocation11 + $0x14] sm:$0xf0] }
 0x26b   :  { %2910 = vmatpush.bf16.msrb.mxu2 %v6488_v51  ;;  %v5310_v51 = vld [vmem:[#allocation11 + $0x164] sm:$0xf0]  ;;  %v2692_v22 = vpop.f32.mrf.mxu1  ;;  %v4937_v45 = vld [vmem:[#allocation11 + $0x190] sm:$0xf] }
 0x26c   :  { %2923 = vmatpush.bf16.msrb.mxu3 %v6491_v56  ;;  %2886 = vmatmul.bf16.vlgmr.msrb.gmra.mxu0 %v6589_v48  ;;  %v5326_v56 = vld [vmem:[#allocation11 + $0x1e4] sm:$0xf0]  ;;  %v6854_v48 = vor.u32 %v5292_v7, %v4841_v39  ;;  %v6899_v39 = vor.u32 %v5304_v6, %v4889_v8  ;;  %v4809_v7 = vld [vmem:[#allocation11 + $0x90] sm:$0xf]  ;;  %v2507_v6 = vmax.f32 %v6533_v28, 0.0 }
 0x26d   :  { %3263 = vmatpush.bf16.msra.mxu0 %v6825_v59  ;;  %3276 = vmatpush.bf16.msra.mxu1 %v6830_v53  ;;  %v6861_v23 = vor.u32 %v5326_v56, %v4977_v35  ;;  %v4881_v35 = vld [vmem:[#allocation11 + $0x120] sm:$0xf]  ;;  %v5302_v56 = vld [vmem:[#allocation11 + $0x124] sm:$0xf0]  ;;  %v6908_v41 = vor.u32 %v5284_v63, %v4809_v7  ;;  %v4787_v63 = vld [vmem:[#allocation11 + $0x68] sm:$0xf0] }
 0x26e   :  { %2899 = vmatmul.bf16.vlgmr.msrb.gmra.mxu1 %v6593_v44  ;;  %v6858_v44 = vor.u32 %v5310_v51, %v4913_v38  ;;  %v6902_v51 = vor.u32 %v5320_v47, %v4953_v18  ;;  %v6911_v61 = vor.u32 %v5302_v56, %v4881_v35  ;;  %v4851_v35 = vld [vmem:[#allocation11 + $0xe8] sm:$0xf0]  ;;  %v4865_v28 = vld [vmem:[#allocation11 + $0x100] sm:$0xf] }
 0x26f   :  { %2911 = vmatpush.bf16.msrb.mxu2 %v6498_v3  ;;  %v6865_v3 = vor.u32 %v5274_v29, %v4769_v54  ;;  %v6905_v29 = vor.u32 %v5268_v32, %v4745_v36  ;;  %v5277_v36 = vld [vmem:[#allocation11 + $0x64] sm:$0xf] }
 0x270   :  { %2924 = vmatpush.bf16.msrb.mxu3 %v6502_v24  ;;  %v5324_v24 = vld [vmem:[#allocation11 + $0x1d4] sm:$0xf0] }
 0x271   :  { %3264 = vmatpush.bf16.msra.mxu0 %v6836_v25  ;;  %3277 = vmatpush.bf16.msra.mxu1 %v6840_v50  ;;  %v6875_v14 = vor.u32 %v5324_v24, %v4969_v12  ;;  %v2681_v38 = vpop.f32.mrf.mxu0  ;;  %v5266_v12 = vld [vmem:[#allocation11 + $0x4] sm:$0xf0]  ;;  %v4801_v24 = vld [vmem:[#allocation11 + $0x80] sm:$0xf] }
 0x272   :  { %2912 = vmatmul.bf16.vlgmr.msrb.gmra.mxu2 %v6605_v10  ;;  %v5288_v10 = vld [vmem:[#allocation11 + $0xb4] sm:$0xf0]  ;;  %v6921_v40 = vor.u32 %v5266_v12, %v4737_v17  ;;  %v6926_v18 = vor.u32 %v5282_v20, %v4801_v24  ;;  %v5293_v38 = vld [vmem:[#allocation11 + $0xe4] sm:$0xf]  ;;  %v5311_v17 = vld [vmem:[#allocation11 + $0x174] sm:$0xf]  ;;  %v6943_v20 = vor.u32 %v5277_v36, %v4787_v63 }
 0x273   :  { %3289 = vmatpush.bf16.msra.mxu2 %v6844_v49  ;;  %2925 = vmatmul.bf16.vlgmr.msrb.gmra.mxu3 %v6609_v21  ;;  %v2680_v21 = vadd.f32 %v2679_v4, %v6827_v11  ;;  %v6882_v34 = vor.u32 %v5288_v10, %v4825_v2  ;;  %v4817_v11 = vld [vmem:[#allocation11 + $0xa0] sm:$0xf]  ;;  %v2694_v54 = vpop.f32.mrf.mxu1  ;;  %v5279_v2 = vld [vmem:[#allocation11 + $0x74] sm:$0xf]  ;;  %v4795_v10 = vld [vmem:[#allocation11 + $0x78] sm:$0xf0] }
 0x274   :  { %3302 = vmatpush.bf16.msra.mxu3 %v6847_v60  ;;  %v6896_v37 = vor.u32 %v5286_v57, %v4817_v11  ;;  %v5295_v4 = vld [vmem:[#allocation11 + $0xf4] sm:$0xf]  ;;  %v5316_v11 = vld [vmem:[#allocation11 + $0x194] sm:$0xf0]  ;;  %v7852_v57 = vld [vmem:[#allocation225_spill] sm:$0xff]  ;;  %v6928_v47 = vor.u32 %v5279_v2, %v4795_v10  ;;  %7853 = vst [vmem:[#allocation17_spill] sm:$0xff] %v6943_v20 }
 0x275   :  { %3265 = vmatpush.bf16.msra.mxu0 %v6850_v46  ;;  %3278 = vmatpush.bf16.msra.mxu1 %v6854_v48  ;;  %v6884_v52 = vadd.f32 %v2692_v22, %v2680_v21  ;;  %v6914_v16 = vpop.f32.mrf.mxu2  ;;  %v4859_v21 = vld [vmem:[#allocation11 + $0xf8] sm:$0xf0]  ;;  %v4873_v22 = vld [vmem:[#allocation11 + $0x110] sm:$0xf]  ;;  %v2506_v8 = vmax.f32 %v7852_v57, 0.0  ;;  %v6936_v56 = vor.u32 %v5316_v11, %v4937_v45  ;;  %v2508_v11 = vmax.f32 %v6632_v62, 0.0 }
 0x276   :  { %v6918_v33 = vpop.f32.mrf.mxu3  ;;  %v6931_v32 = vor.u32 %v5295_v4, %v4859_v21  ;;  %v6933_v7 = vor.u32 %v5300_v26, %v4873_v22  ;;  %v5298_v54 = vld [vmem:[#allocation11 + $0x104] sm:$0xf0]  ;;  %v4923_v12 = vld [vmem:[#allocation11 + $0x178] sm:$0xf0]  ;;  %v5327_v2 = vld [vmem:[#allocation11 + $0x1f4] sm:$0xf]  ;;  %v6945_v4 = vpack.c.bf16 %v2507_v6, %v2507_v6  ;;  %v6949_v21 = vor.u32 %v5293_v38, %v4851_v35 }
 0x277   :  { %3290 = vmatpush.bf16.msra.mxu2 %v6858_v44  ;;  %v6939_v24 = vpack.c.bf16 %v2506_v8, %v2506_v8  ;;  %v4987_v10 = vld [vmem:[#allocation11 + $0x1f8] sm:$0xf0]  ;;  %v6951_v22 = vor.u32 %v5298_v54, %v4865_v28  ;;  %v5275_v26 = vld [vmem:[#allocation11 + $0x54] sm:$0xf]  ;;  %v6956_v8 = vor.u32 %v5314_v30, %v4929_v58  ;;  %v6958_v6 = vor.u32 %v5311_v17, %v4923_v12  ;;  %v5309_v54 = vld [vmem:[#allocation11 + $0x164] sm:$0xf] }
 0x278   :  { %3303 = vmatpush.bf16.msra.mxu3 %v6861_v23  ;;  %7854 = vst [vmem:[#allocation20_spill] sm:$0xff] %v6949_v21  ;;  %v4779_v45 = vld [vmem:[#allocation11 + $0x58] sm:$0xf0]  ;;  %v5291_v36 = vld [vmem:[#allocation11 + $0xd4] sm:$0xf]  ;;  %v2509_v38 = vmax.f32 %v6709_v0, 0.0  ;;  %v6962_v28 = vor.u32 %v5327_v2, %v4987_v10  ;;  %v6971_v12 = vpack.c.bf16 %v2508_v11, %v2508_v11 }
 0x279   :  { %3266 = vmatpush.bf16.msra.mxu0 %v6865_v3  ;;  %3279 = vmatpush.bf16.msra.mxu1 %v6869_v43  ;;  %7855 = vst [vmem:[#allocation21_spill] sm:$0xff] %v6951_v22  ;;  %v4843_v63 = vld [vmem:[#allocation11 + $0xd8] sm:$0xf0]  ;;  %v4915_v62 = vld [vmem:[#allocation11 + $0x168] sm:$0xf0] }
 0x27a   :  { %7856 = vst [vmem:[#allocation22_spill] sm:$0xff] %v6956_v8  ;;  %v4979_v58 = vld [vmem:[#allocation11 + $0x1e8] sm:$0xf0]  ;;  %v6969_v30 = vor.u32 %v5291_v36, %v4843_v63  ;;  %v5273_v0 = vld [vmem:[#allocation11 + $0x44] sm:$0xf]  ;;  %v6975_v2 = vor.u32 %v5309_v54, %v4915_v62 }
 0x27b   :  { %3291 = vmatpush.bf16.msra.mxu2 %v6872_v9  ;;  %7857 = vst [vmem:[#allocation23_spill] sm:$0xff] %v6958_v6  ;;  %v4771_v17 = vld [vmem:[#allocation11 + $0x48] sm:$0xf0]  ;;  %v5289_v10 = vld [vmem:[#allocation11 + $0xc4] sm:$0xf] }
 0x27c   :  { %3304 = vmatpush.bf16.msra.mxu3 %v6875_v14  ;;  %7858 = vst [vmem:[#allocation18_spill] sm:$0xff] %v6962_v28  ;;  %v5307_v36 = vld [vmem:[#allocation11 + $0x154] sm:$0xf]  ;;  %v4907_v63 = vld [vmem:[#allocation11 + $0x158] sm:$0xf0]  ;;  %v6984_v11 = vor.u32 %v5273_v0, %v4771_v17 }
 0x27d   :  { %3267 = vmatpush.bf16.msra.mxu0 %v6879_v13  ;;  %3280 = vmatpush.bf16.msra.mxu1 %v6882_v34  ;;  %v2707_v57 = vpop.f32.mrf.mxu2  ;;  %7860 = vst [vmem:[#allocation19_spill] sm:$0xff] %v6969_v30  ;;  %v5271_v54 = vld [vmem:[#allocation11 + $0x34] sm:$0xf]  ;;  %v4763_v62 = vld [vmem:[#allocation11 + $0x38] sm:$0xf0] }
 0x27e   :  { %v2720_v35 = vpop.f32.mrf.mxu3  ;;  %v6965_v57 = vor.u32 %v5275_v26, %v4779_v45  ;;  %7861 = vst [vmem:[#allocation105_spill] sm:$0xff] %v6975_v2  ;;  %v4835_v26 = vld [vmem:[#allocation11 + $0xc8] sm:$0xf0]  ;;  %v6977_v45 = vpack.c.bf16 %v2509_v38, %v2509_v38 }
 0x27f   :  { %3292 = vmatpush.bf16.msra.mxu2 %v6887_v1  ;;  %v6980_v35 = vor.u32 %v5325_v15, %v4979_v58  ;;  %7863 = vst [vmem:[#allocation29_spill] sm:$0xff] %v6984_v11  ;;  %v6988_v38 = vor.u32 %v5289_v10, %v4835_v26  ;;  %v6991_v15 = vor.u32 %v5307_v36, %v4907_v63  ;;  %v5287_v58 = vld [vmem:[#allocation11 + $0xb4] sm:$0xf]  ;;  %v5321_v26 = vld [vmem:[#allocation11 + $0x1c4] sm:$0xf] }
 0x280   :  { %3305 = vmatpush.bf16.msra.mxu3 %v6890_v31  ;;  %7859 = vst [vmem:[#allocation102_spill] sm:$0xff] %v6965_v57  ;;  %v7001_v10 = vor.u32 %v5271_v54, %v4763_v62  ;;  %v5269_v63 = vld [vmem:[#allocation11 + $0x24] sm:$0xf]  ;;  %v5303_v54 = vld [vmem:[#allocation11 + $0x134] sm:$0xf] }
 0x281   :  { %3268 = vmatpush.bf16.msra.mxu0 %v6893_v42  ;;  %3281 = vmatpush.bf16.msra.mxu1 %v6896_v37  ;;  %7862 = vst [vmem:[#allocation28_spill] sm:$0xff] %v6980_v35  ;;  %v4891_v62 = vld [vmem:[#allocation11 + $0x138] sm:$0xf0] }
 0x282   :  { %7864 = vst [vmem:[#allocation24_spill] sm:$0xff] %v6988_v38 }
 0x283   :  { %3293 = vmatpush.bf16.msra.mxu2 %v6899_v39  ;;  %7865 = vst [vmem:[#allocation25_spill] sm:$0xff] %v6991_v15 }
 0x284   :  { %3306 = vmatpush.bf16.msra.mxu3 %v6902_v51  ;;  %7867 = vst [vmem:[#allocation27_spill] sm:$0xff] %v7001_v10 }
 0x285   :  { %3269 = vmatpush.bf16.msra.mxu0 %v6905_v29  ;;  %3282 = vmatpush.bf16.msra.mxu1 %v6908_v41 }
 0x287   :  { %3294 = vmatpush.bf16.msra.mxu2 %v6911_v61 }
 0x288   :  { %3307 = vmatpush.bf16.msra.mxu3 %v6916_v5 }
 0x289   :  { %3270 = vmatpush.bf16.msra.mxu0 %v6921_v40  ;;  %3283 = vmatpush.bf16.msra.mxu1 %v6926_v18  ;;  %v6994_v0 = vpop.f32.mrf.mxu0 }
 0x28b   :  { %3295 = vmatpush.bf16.msra.mxu2 %v6933_v7 }
 0x28c   :  { %3308 = vmatpush.bf16.msra.mxu3 %v6936_v56  ;;  %3271 = vmatmul.bf16.vlgmr.msra.gmra.mxu0 %v6939_v24 }
 0x28d   :  { %3315 = vmatpush.bf16.msrb.mxu0 %v6928_v47  ;;  %3328 = vmatpush.bf16.msrb.mxu1 %v6931_v32 }
 0x28e   :  { %3284 = vmatmul.bf16.vlgmr.msra.gmra.mxu1 %v6945_v4 }
 0x28f   :  { %3296 = vmatpush.bf16.msra.mxu2 %v6951_v22  ;;  %v6998_v22 = vpop.f32.mrf.mxu1 }
 0x290   :  { %3309 = vmatpush.bf16.msra.mxu3 %v6956_v8  ;;  %v4971_v8 = vld [vmem:[#allocation11 + $0x1d8] sm:$0xf0] }
 0x291   :  { %3316 = vmatpush.bf16.msrb.mxu0 %v6943_v20  ;;  %3329 = vmatpush.bf16.msrb.mxu1 %v6949_v21  ;;  %v6996_v17 = vor.u32 %v5323_v19, %v4971_v8  ;;  %v5285_v8 = vld [vmem:[#allocation11 + $0xa4] sm:$0xf] }
 0x292   :  { %3297 = vmatmul.bf16.vlgmr.msra.gmra.mxu2 %v6971_v12 }
 0x293   :  { %3341 = vmatpush.bf16.msrb.mxu2 %v6958_v6  ;;  %3310 = vmatmul.bf16.vlgmr.msra.gmra.mxu3 %v6977_v45  ;;  %7866 = vst [vmem:[#allocation26_spill] sm:$0xff] %v6996_v17  ;;  %v4899_v6 = vld [vmem:[#allocation11 + $0x148] sm:$0xf0] }
 0x294   :  { %3354 = vmatpush.bf16.msrb.mxu3 %v6962_v28  ;;  %v4827_v28 = vld [vmem:[#allocation11 + $0xb8] sm:$0xf0] }
 0x295   :  { %3317 = vmatpush.bf16.msrb.mxu0 %v6965_v57  ;;  %3330 = vmatpush.bf16.msrb.mxu1 %v6969_v30  ;;  %v5305_v57 = vld [vmem:[#allocation11 + $0x144] sm:$0xf]  ;;  %v7004_v36 = vor.u32 %v5287_v58, %v4827_v28  ;;  %v4819_v30 = vld [vmem:[#allocation11 + $0xa8] sm:$0xf0]  ;;  %v5319_v28 = vld [vmem:[#allocation11 + $0x1b4] sm:$0xf] }
 0x296   :  { %v7007_v19 = vor.u32 %v5305_v57, %v4899_v6  ;;  %v4955_v58 = vld [vmem:[#allocation11 + $0x1b8] sm:$0xf0]  ;;  %v5267_v6 = vld [vmem:[#allocation11 + $0x14] sm:$0xf] }
 0x297   :  { %3342 = vmatpush.bf16.msrb.mxu2 %v6975_v2  ;;  %v4963_v2 = vld [vmem:[#allocation11 + $0x1c8] sm:$0xf0]  ;;  %7868 = vst [vmem:[#allocation32_spill] sm:$0xff] %v7004_v36  ;;  %v4747_v57 = vld [vmem:[#allocation11 + $0x18] sm:$0xf0]  ;;  %v2746_v20 = vpop.f32.mrf.mxu1 }
 0x298   :  { %3355 = vmatpush.bf16.msrb.mxu3 %v6980_v35  ;;  %v4755_v35 = vld [vmem:[#allocation11 + $0x28] sm:$0xf0]  ;;  %7869 = vst [vmem:[#allocation33_spill] sm:$0xff] %v7007_v19  ;;  %v7010_v21 = vor.u32 %v5321_v26, %v4963_v2  ;;  %v5283_v2 = vld [vmem:[#allocation11 + $0x94] sm:$0xf]  ;;  %v2757_v20 = vpop.f32.mrf.mxu2 }
 0x299   :  { %3318 = vmatpush.bf16.msrb.mxu0 %v6984_v11  ;;  %3331 = vmatpush.bf16.msrb.mxu1 %v6988_v38  ;;  %v7013_v11 = vor.u32 %v5269_v63, %v4755_v35  ;;  %v7016_v38 = vor.u32 %v5285_v8, %v4819_v30  ;;  %v4811_v26 = vld [vmem:[#allocation11 + $0x98] sm:$0xf0]  ;;  %v5301_v35 = vld [vmem:[#allocation11 + $0x124] sm:$0xf]  ;;  %v4883_v63 = vld [vmem:[#allocation11 + $0x128] sm:$0xf0]  ;;  %v7025_v30 = vor.u32 %v5267_v6, %v4747_v57 }
 0x29a   :  { %7870 = vst [vmem:[#allocation30_spill] sm:$0xff] %v7010_v21  ;;  %v5317_v8 = vld [vmem:[#allocation11 + $0x1a4] sm:$0xf]  ;;  %v5299_v6 = vld [vmem:[#allocation11 + $0x114] sm:$0xf] }
 0x29b   :  { %3343 = vmatpush.bf16.msrb.mxu2 %v6991_v15  ;;  %7871 = vst [vmem:[#allocation31_spill] sm:$0xff] %v7013_v11  ;;  %v7019_v15 = vor.u32 %v5303_v54, %v4891_v62  ;;  %v7028_v54 = vor.u32 %v5283_v2, %v4811_v26  ;;  %v5265_v62 = vld [vmem:[#allocation11 + $0x4] sm:$0xf]  ;;  %v4875_v57 = vld [vmem:[#allocation11 + $0x118] sm:$0xf0] }
 0x29c   :  { %3356 = vmatpush.bf16.msrb.mxu3 %v6996_v17  ;;  %7872 = vst [vmem:[#allocation36_spill] sm:$0xff] %v7016_v38  ;;  %v2733_v17 = vpop.f32.mrf.mxu0  ;;  %v5315_v26 = vld [vmem:[#allocation11 + $0x194] sm:$0xf] }
 0x29d   :  { %3319 = vmatpush.bf16.msrb.mxu0 %v7001_v10  ;;  %3332 = vmatpush.bf16.msrb.mxu1 %v7004_v36  ;;  %v7022_v10 = vor.u32 %v5319_v28, %v4955_v58  ;;  %v4947_v36 = vld [vmem:[#allocation11 + $0x1a8] sm:$0xf0]  ;;  %v7031_v17 = vor.u32 %v5301_v35, %v4883_v63  ;;  %v5281_v28 = vld [vmem:[#allocation11 + $0x84] sm:$0xf]  ;;  %v7043_v63 = vor.u32 %v5299_v6, %v4875_v57 }
 0x29e   :  { %v4803_v58 = vld [vmem:[#allocation11 + $0x88] sm:$0xf0] }
 0x29f   :  { %3344 = vmatpush.bf16.msrb.mxu2 %v7007_v19  ;;  %7873 = vst [vmem:[#allocation37_spill] sm:$0xff] %v7022_v10  ;;  %v4739_v19 = vld [vmem:[#allocation11 + $0x8] sm:$0xf0]  ;;  %v7040_v35 = vor.u32 %v5281_v28, %v4803_v58 }
 0x2a0   :  { %3357 = vmatpush.bf16.msrb.mxu3 %v7010_v21  ;;  %v2770_v21 = vpop.f32.mrf.mxu3  ;;  %v7037_v2 = vor.u32 %v5265_v62, %v4739_v19  ;;  %v5313_v19 = vld [vmem:[#allocation11 + $0x184] sm:$0xf]  ;;  %v4931_v62 = vld [vmem:[#allocation11 + $0x188] sm:$0xf0] }
 0x2a1   :  { %3320 = vmatpush.bf16.msrb.mxu0 %v7013_v11  ;;  %3333 = vmatpush.bf16.msrb.mxu1 %v7016_v38  ;;  %v7034_v11 = vor.u32 %v5317_v8, %v4947_v36  ;;  %v4939_v38 = vld [vmem:[#allocation11 + $0x198] sm:$0xf0]  ;;  %v5297_v8 = vld [vmem:[#allocation11 + $0x104] sm:$0xf]  ;;  %v7057_v58 = vor.u32 %v5313_v19, %v4931_v62  ;;  %v7892_v57 = vld [vmem:[#allocation30_spill] sm:$0xff] }
 0x2a2   :  { %v7046_v36 = vor.u32 %v5315_v26, %v4939_v38  ;;  %v2759_v38 = vpop.f32.mrf.mxu2 }
 0x2a3   :  { %3345 = vmatpush.bf16.msrb.mxu2 %v7019_v15  ;;  %v7894_v19 = vld [vmem:[#allocation36_spill] sm:$0xff] }
 0x2a4   :  { %3358 = vmatpush.bf16.msrb.mxu3 %v7022_v10  ;;  %v4867_v10 = vld [vmem:[#allocation11 + $0x108] sm:$0xf0] }
 0x2a5   :  { %3321 = vmatpush.bf16.msrb.mxu0 %v7025_v30  ;;  %3334 = vmatpush.bf16.msrb.mxu1 %v7028_v54  ;;  %v7053_v28 = vor.u32 %v5297_v8, %v4867_v10  ;;  %v7891_v10 = vld [vmem:[#allocation33_spill] sm:$0xff]  ;;  %v7893_v8 = vld [vmem:[#allocation31_spill] sm:$0xff] }
 0x2a6   :  { %v7895_v38 = vld [vmem:[#allocation37_spill] sm:$0xff] }
 0x2a7   :  { %3346 = vmatpush.bf16.msrb.mxu2 %v7031_v17 }
 0x2a8   :  { %3359 = vmatpush.bf16.msrb.mxu3 %v7034_v11  ;;  %v2772_v6 = vpop.f32.mrf.mxu3 }
 0x2a9   :  { %3322 = vmatpush.bf16.msrb.mxu0 %v7037_v2  ;;  %3335 = vmatpush.bf16.msrb.mxu1 %v7040_v35 }
 0x2ab   :  { %3347 = vmatpush.bf16.msrb.mxu2 %v7043_v63 }
 0x2ac   :  { %3360 = vmatpush.bf16.msrb.mxu3 %v7046_v36  ;;  %3323 = vmatmul.bf16.vlgmr.msrb.gmra.mxu0 %v6939_v24 }
 0x2ad   :  { %3369 = vmatpush.bf16.msra.mxu0 %v6825_v59  ;;  %3382 = vmatpush.bf16.msra.mxu1 %v6830_v53  ;;  %v7874_v59 = vperm.slane %v6298_v27, 2 }
 0x2ae   :  { %3336 = vmatmul.bf16.vlgmr.msrb.gmra.mxu1 %v6945_v4  ;;  %v2796_v4 = vpop.f32.mrf.mxu1 }
 0x2af   :  { %3348 = vmatpush.bf16.msrb.mxu2 %v7053_v28  ;;  %v2732_v53 = vadd.f32 %v6994_v0, %v7874_v59  ;;  %v7890_v0 = vld [vmem:[#allocation32_spill] sm:$0xff] }
 0x2b0   :  { %3361 = vmatpush.bf16.msrb.mxu3 %v7057_v58 }
 0x2b1   :  { %3370 = vmatpush.bf16.msra.mxu0 %v6836_v25  ;;  %3383 = vmatpush.bf16.msra.mxu1 %v6840_v50  ;;  %v2745_v25 = vadd.f32 %v6998_v22, %v2732_v53  ;;  %v2783_v50 = vpop.f32.mrf.mxu0  ;;  %v7887_v22 = vld [vmem:[#allocation25_spill] sm:$0xff] }
 0x2b2   :  { %3349 = vmatmul.bf16.vlgmr.msrb.gmra.mxu2 %v6971_v12  ;;  %v7888_v12 = vld [vmem:[#allocation26_spill] sm:$0xff] }
 0x2b3   :  { %3395 = vmatpush.bf16.msra.mxu2 %v6844_v49  ;;  %3362 = vmatmul.bf16.vlgmr.msrb.gmra.mxu3 %v6977_v45  ;;  %v2758_v24 = vadd.f32 %v2757_v20, %v2745_v25  ;;  %v7889_v45 = vld [vmem:[#allocation27_spill] sm:$0xff] }
 0x2b4   :  { %3408 = vmatpush.bf16.msra.mxu3 %v6847_v60  ;;  %v2706_v60 = vadd.f32 %v6914_v16, %v6884_v52  ;;  %v7879_v16 = vld [vmem:[#allocation22_spill] sm:$0xff] }
 0x2b5   :  { %3371 = vmatpush.bf16.msra.mxu0 %v6850_v46  ;;  %3384 = vmatpush.bf16.msra.mxu1 %v6854_v48  ;;  %v2771_v49 = vadd.f32 %v2770_v21, %v2758_v24  ;;  %v7886_v21 = vld [vmem:[#allocation24_spill] sm:$0xff] }
 0x2b7   :  { %3396 = vmatpush.bf16.msra.mxu2 %v6858_v44  ;;  %v2784_v46 = vadd.f32 %v2783_v50, %v2771_v49  ;;  %v2798_v44 = vpop.f32.mrf.mxu1 }
 0x2b8   :  { %3409 = vmatpush.bf16.msra.mxu3 %v6861_v23  ;;  %v2719_v23 = vadd.f32 %v6918_v33, %v2706_v60  ;;  %v7881_v33 = vld [vmem:[#allocation102_spill] sm:$0xff] }
 0x2b9   :  { %3372 = vmatpush.bf16.msra.mxu0 %v6865_v3  ;;  %3385 = vmatpush.bf16.msra.mxu1 %v6869_v43  ;;  %v2785_v48 = vpop.f32.mrf.mxu0  ;;  %v2797_v3 = vadd.f32 %v2796_v4, %v2784_v46  ;;  %v2809_v43 = vpop.f32.mrf.mxu2 }
 0x2bb   :  { %3397 = vmatpush.bf16.msra.mxu2 %v6872_v9  ;;  %v2810_v9 = vadd.f32 %v2809_v43, %v2797_v3 }
 0x2bc   :  { %3410 = vmatpush.bf16.msra.mxu3 %v6875_v14  ;;  %v2822_v14 = vpop.f32.mrf.mxu3 }
 0x2bd   :  { %3373 = vmatpush.bf16.msra.mxu0 %v6879_v13  ;;  %3386 = vmatpush.bf16.msra.mxu1 %v6882_v34  ;;  %v2930_v13 = vmax.f32 %v6785_v55, 0.0  ;;  %v2931_v34 = vmax.f32 %v2719_v23, 0.0  ;;  %v2823_v52 = vadd.f32 %v2822_v14, %v2810_v9 }
 0x2bf   :  { %3398 = vmatpush.bf16.msra.mxu2 %v6887_v1  ;;  %v2934_v1 = vpack.c.bf16 %v2930_v13, %v2930_v13  ;;  %v2932_v55 = vmax.f32 %v2823_v52, 0.0 }
 0x2c0   :  { %3411 = vmatpush.bf16.msra.mxu3 %v6890_v31  ;;  %v2935_v31 = vpack.c.bf16 %v2931_v34, %v2931_v34 }
 0x2c1   :  { %3374 = vmatpush.bf16.msra.mxu0 %v6893_v42  ;;  %3387 = vmatpush.bf16.msra.mxu1 %v6896_v37  ;;  %v2811_v42 = vpop.f32.mrf.mxu2 }
 0x2c3   :  { %3399 = vmatpush.bf16.msra.mxu2 %v6899_v39  ;;  %v7875_v39 = vld [vmem:[#allocation17_spill] sm:$0xff] }
 0x2c4   :  { %3412 = vmatpush.bf16.msra.mxu3 %v6902_v51  ;;  %v2824_v37 = vpop.f32.mrf.mxu3  ;;  %v7876_v51 = vld [vmem:[#allocation20_spill] sm:$0xff] }
 0x2c5   :  { %3375 = vmatpush.bf16.msra.mxu0 %v6905_v29  ;;  %3388 = vmatpush.bf16.msra.mxu1 %v6908_v41  ;;  %v7877_v29 = vld [vmem:[#allocation21_spill] sm:$0xff]  ;;  %v2936_v41 = vpack.c.bf16 %v2932_v55, %v2932_v55 }
 0x2c7   :  { %3400 = vmatpush.bf16.msra.mxu2 %v6911_v61  ;;  %v7878_v61 = vld [vmem:[#allocation23_spill] sm:$0xff] }
 0x2c8   :  { %3413 = vmatpush.bf16.msra.mxu3 %v6916_v5  ;;  %v7880_v5 = vld [vmem:[#allocation18_spill] sm:$0xff] }
 0x2c9   :  { %3376 = vmatpush.bf16.msra.mxu0 %v6921_v40  ;;  %3389 = vmatpush.bf16.msra.mxu1 %v6926_v18  ;;  %v7882_v40 = vld [vmem:[#allocation19_spill] sm:$0xff]  ;;  %v7883_v18 = vld [vmem:[#allocation105_spill] sm:$0xff] }
 0x2cb   :  { %3401 = vmatpush.bf16.msra.mxu2 %v6933_v7  ;;  %v2848_v7 = vpop.f32.mrf.mxu1 }
 0x2cc   :  { %3377 = vmatmul.bf16.vlgmr.msra.gmra.mxu0 %v2934_v1  ;;  %3414 = vmatpush.bf16.msra.mxu3 %v6936_v56  ;;  %v7885_v56 = vld [vmem:[#allocation29_spill] sm:$0xff] }
 0x2cd   :  { %3421 = vmatpush.bf16.msrb.mxu0 %v6928_v47  ;;  %3434 = vmatpush.bf16.msrb.mxu1 %v6931_v32  ;;  %v2835_v47 = vpop.f32.mrf.mxu0  ;;  %v7884_v32 = vld [vmem:[#allocation28_spill] sm:$0xff] }
 0x2ce   :  { %3390 = vmatmul.bf16.vlgmr.msra.gmra.mxu1 %v2935_v31 }
 0x2cf   :  { %3402 = vmatpush.bf16.msra.mxu2 %v7877_v29 }
 0x2d0   :  { %3415 = vmatpush.bf16.msra.mxu3 %v7879_v16 }
 0x2d1   :  { %3422 = vmatpush.bf16.msrb.mxu0 %v7875_v39  ;;  %3435 = vmatpush.bf16.msrb.mxu1 %v7876_v51 }
 0x2d2   :  { %3403 = vmatmul.bf16.vlgmr.msra.gmra.mxu2 %v2936_v41 }
 0x2d3   :  { %3447 = vmatpush.bf16.msrb.mxu2 %v7878_v61  ;;  %v2850_v26 = vpop.f32.mrf.mxu1 }
 0x2d4   :  { %3460 = vmatpush.bf16.msrb.mxu3 %v7880_v5 }
 0x2d5   :  { %3423 = vmatpush.bf16.msrb.mxu0 %v7881_v33  ;;  %3436 = vmatpush.bf16.msrb.mxu1 %v7882_v40  ;;  %v2837_v20 = vpop.f32.mrf.mxu0  ;;  %v2861_v62 = vpop.f32.mrf.mxu2 }
 0x2d6   :  { %v2874_v6 = vpop.f32.mrf.mxu3 }
 0x2d7   :  { %3448 = vmatpush.bf16.msrb.mxu2 %v7883_v18 }
 0x2d8   :  { %3461 = vmatpush.bf16.msrb.mxu3 %v7884_v32 }
 0x2d9   :  { %3424 = vmatpush.bf16.msrb.mxu0 %v7885_v56  ;;  %3437 = vmatpush.bf16.msrb.mxu1 %v7886_v21 }
 0x2db   :  { %3449 = vmatpush.bf16.msrb.mxu2 %v7887_v22 }
 0x2dc   :  { %3462 = vmatpush.bf16.msrb.mxu3 %v7888_v12 }
 0x2dd   :  { %3425 = vmatpush.bf16.msrb.mxu0 %v7889_v45  ;;  %3438 = vmatpush.bf16.msrb.mxu1 %v7890_v0  ;;  %v2863_v59 = vpop.f32.mrf.mxu2 }
 0x2df   :  { %3450 = vmatpush.bf16.msrb.mxu2 %v7891_v10 }
 0x2e0   :  { %3463 = vmatpush.bf16.msrb.mxu3 %v7892_v57 }
 0x2e1   :  { %3426 = vmatpush.bf16.msrb.mxu0 %v7893_v8  ;;  %3439 = vmatpush.bf16.msrb.mxu1 %v7894_v19 }
 0x2e3   :  { %3451 = vmatpush.bf16.msrb.mxu2 %v7019_v15  ;;  %v2876_v15 = vpop.f32.mrf.mxu3 }
 0x2e4   :  { %3464 = vmatpush.bf16.msrb.mxu3 %v7895_v38  ;;  %v5514_v15 = vmov 0  }
 0x2e5   :  { %3427 = vmatpush.bf16.msrb.mxu0 %v7025_v30  ;;  %3440 = vmatpush.bf16.msrb.mxu1 %v7028_v54  ;;  %v7896_v30 = vperm.slane %v6298_v27, 3 }
 0x2e6   :  { %5342 = vset.pattern.permute.xlu0 %v5514_v15 }
 0x2e7   :  { %3452 = vmatpush.bf16.msrb.mxu2 %v7031_v17  ;;  %v2836_v54 = vadd.f32 %v2835_v47, %v7896_v30  ;;  %v456_v30 = vld [vmem:[#allocation2] sm:$0x1] }
 0x2e8   :  { %3465 = vmatpush.bf16.msrb.mxu3 %v7034_v11  ;;  %3477 = vperm.xlu0 %5342, %v456_v30  }
 0x2e9   :  { %3428 = vmatpush.bf16.msrb.mxu0 %v7037_v2  ;;  %3441 = vmatpush.bf16.msrb.mxu1 %v7040_v35  ;;  %v2849_v11 = vadd.f32 %v2848_v7, %v2836_v54  ;;  %v2887_v17 = vpop.f32.mrf.mxu0 }
 0x2eb   :  { %3453 = vmatpush.bf16.msrb.mxu2 %v7043_v63  ;;  %v2862_v2 = vadd.f32 %v2861_v62, %v2849_v11  ;;  %v2900_v35 = vpop.f32.mrf.mxu1  ;;  %v455_v62 = vld [vmem:[%s7157_s7] sm:$0x3]  ;;  %s5515_s7 = smov [#allocation12]  }
 0x2ec   :  { %3429 = vmatmul.bf16.vlgmr.msrb.gmra.mxu0 %v2934_v1  ;;  %3466 = vmatpush.bf16.msrb.mxu3 %v7046_v36  ;;  %v3482_v38 = vperm.slane %v455_v62, 0  ;;  %v3483_v59 = vperm.slane %v455_v62, 1  ;;  %s3617_s19 = sshll.u32 %s5515_s7, 4  ;;  %s3618_s19 = int_to_ptr.vmem [resolvable:$true] %s3617_s19 }
 0x2ed   :  { %3442 = vmatmul.bf16.vlgmr.msrb.gmra.mxu1 %v2935_v31  ;;  %v2875_v53 = vadd.f32 %v2874_v6, %v2862_v2 }
 0x2ef   :  { %3454 = vmatpush.bf16.msrb.mxu2 %v7053_v28  ;;  %v2888_v63 = vadd.f32 %v2887_v17, %v2875_v53 }
 0x2f0   :  { %3467 = vmatpush.bf16.msrb.mxu3 %v7057_v58  ;;  %v7139_v58 = vld [vmem:[%s7156_s6] sm:$0x3] }
 0x2f1   :  { %v2889_v25 = vpop.f32.mrf.mxu0  ;;  %v2901_v24 = vadd.f32 %v2900_v35, %v2888_v63  ;;  %v2939_v3 = vperm.slane %v7139_v58, 0  ;;  %v2940_v29 = vperm.slane %v7139_v58, 1 }
 0x2f2   :  { %3455 = vmatmul.bf16.vlgmr.msrb.gmra.mxu2 %v2936_v41 }
 0x2f3   :  { %v2902_v50 = vpop.f32.mrf.mxu1 }
 0x2f5   :  { %v2913_v36 = vpop.f32.mrf.mxu2 }
 0x2f6   :  { %v2914_v4 = vadd.f32 %v2913_v36, %v2901_v24  ;;  %v2926_v49 = vpop.f32.mrf.mxu3 }
 0x2f8   :  { %v2927_v60 = vadd.f32 %v2926_v49, %v2914_v4 }
 0x2fa   :  { %v2933_v28 = vmax.f32 %v2927_v60, 0.0 }
 0x2fc   :  { %v2937_v46 = vpack.c.bf16 %v2933_v28, %v2933_v28 }
 0x2fd   :  { %v2915_v27 = vpop.f32.mrf.mxu2 }
 0x2fe   :  { %v2928_v48 = vpop.f32.mrf.mxu3  ;;  %3416 = vmatmul.bf16.vlgmr.msra.gmra.mxu3 %v2937_v46 }
 0x309   :  { %v3272_v44 = vpop.f32.mrf.mxu0 }
 0x30a   :  { %v3273_v43 = vadd.f32 %v3272_v44, %v2939_v3 }
 0x30b   :  { %v3285_v23 = vpop.f32.mrf.mxu1 }
 0x30c   :  { %v3286_v13 = vadd.f32 %v3285_v23, %v3273_v43 }
 0x30e   :  { %3468 = vmatmul.bf16.vlgmr.msrb.gmra.mxu3 %v2937_v46 }
 0x311   :  { %v3274_v9 = vpop.f32.mrf.mxu0 }
 0x313   :  { %v3287_v14 = vpop.f32.mrf.mxu1 }
 0x315   :  { %v3298_v34 = vpop.f32.mrf.mxu2 }
 0x316   :  { %v3299_v52 = vadd.f32 %v3298_v34, %v3286_v13  ;;  %v3311_v1 = vpop.f32.mrf.mxu3 }
 0x318   :  { %v3312_v31 = vadd.f32 %v3311_v1, %v3299_v52 }
 0x31a   :  { %v3367_v55 = vmax.f32 %v3312_v31, 0.0 }
 0x31c   :  { %3501 = vmatpush.xpose.msra.mxu0 %v3367_v55 }
 0x31d   :  { %v3300_v42 = vpop.f32.mrf.mxu2 }
 0x31e   :  { %v3313_v37 = vpop.f32.mrf.mxu3 }
 0x31f   :  { %3502 = vmatmul.f32.vlgmr.msra.gmra.mxu0 %v3482_v38 }
 0x329   :  { %v3324_v39 = vpop.f32.mrf.mxu0 }
 0x32a   :  { %v3325_v41 = vadd.f32 %v3324_v39, %v2940_v29 }
 0x32b   :  { %v3337_v51 = vpop.f32.mrf.mxu1 }
 0x32c   :  { %v3338_v5 = vadd.f32 %v3337_v51, %v3325_v41 }
 0x331   :  { %v3326_v61 = vpop.f32.mrf.mxu0 }
 0x333   :  { %v3339_v16 = vpop.f32.mrf.mxu1 }
 0x335   :  { %v3350_v33 = vpop.f32.mrf.mxu2 }
 0x336   :  { %v3351_v40 = vadd.f32 %v3350_v33, %v3338_v5  ;;  %v3363_v18 = vpop.f32.mrf.mxu3 }
 0x338   :  { %v3364_v47 = vadd.f32 %v3363_v18, %v3351_v40 }
 0x33a   :  { %v3368_v32 = vmax.f32 %v3364_v47, 0.0 }
 0x33c   :  { %3521 = vmatpush.xpose.msra.mxu1 %v3368_v32 }
 0x33d   :  { %v3352_v7 = vpop.f32.mrf.mxu2 }
 0x33e   :  { %v3365_v56 = vpop.f32.mrf.mxu3 }
 0x33f   :  { %3522 = vmatmul.f32.vlgmr.msra.gmra.mxu1 %v3483_v59 }
 0x349   :  { %v3378_v21 = vpop.f32.mrf.mxu0 }
 0x34a   :  { %v3379_v54 = vadd.f32 %v3378_v21, %v2939_v3 }
 0x34b   :  { %v3391_v22 = vpop.f32.mrf.mxu1 }
 0x34c   :  { %v3392_v11 = vadd.f32 %v3391_v22, %v3379_v54 }
 0x351   :  { %v3380_v12 = vpop.f32.mrf.mxu0 }
 0x353   :  { %v3393_v45 = vpop.f32.mrf.mxu1 }
 0x355   :  { %v3404_v0 = vpop.f32.mrf.mxu2 }
 0x356   :  { %v3405_v17 = vadd.f32 %v3404_v0, %v3392_v11 }
 0x35a   :  { %v3478_v28 = vpop.permute.xlu0 %3477 }
 0x35b   :  { %v3480_v46 = vperm.slane %v3478_v28, 0 }
 0x35d   :  { %v3406_v10 = vpop.f32.mrf.mxu2 }
 0x369   :  { %v3430_v20 = vpop.f32.mrf.mxu0 }
 0x36a   :  { %v3443_v57 = vpop.f32.mrf.mxu1  ;;  %v3431_v25 = vadd.f32 %v3430_v20, %v2940_v29 }
 0x36c   :  { %v3444_v50 = vadd.f32 %v3443_v57, %v3431_v25 }
 0x371   :  { %v3432_v26 = vpop.f32.mrf.mxu0 }
 0x372   :  { %v3445_v8 = vpop.f32.mrf.mxu1 }
 0x375   :  { %v3456_v19 = vpop.f32.mrf.mxu2 }
 0x376   :  { %v3457_v24 = vadd.f32 %v3456_v19, %v3444_v50 }
 0x37d   :  { %v3458_v6 = vpop.f32.mrf.mxu2 }
 0x381   :  { %v3417_v2 = vpop.f32.mrf.mxu3 }
 0x382   :  { %v3418_v35 = vadd.f32 %v3417_v2, %v3405_v17 }
 0x384   :  { %v3473_v53 = vmax.f32 %v3418_v35, 0.0 }
 0x386   :  { %3562 = vmatpush.xpose.msra.mxu2 %v3473_v53 }
 0x389   :  { %v3419_v63 = vpop.f32.mrf.mxu3  ;;  %3563 = vmatmul.f32.vlgmr.msra.gmra.mxu2 %v3482_v38 }
 0x391   :  { %v3469_v36 = vpop.f32.mrf.mxu3 }
 0x392   :  { %v3470_v4 = vadd.f32 %v3469_v36, %v3457_v24 }
 0x394   :  { %v3474_v49 = vmax.f32 %v3470_v4, 0.0 }
 0x396   :  { %3582 = vmatpush.xpose.msra.mxu3 %v3474_v49 }
 0x399   :  { %v3471_v60 = vpop.f32.mrf.mxu3  ;;  %3583 = vmatmul.f32.vlgmr.msra.gmra.mxu3 %v3483_v59 }
 0x39c   :  { %v3503_v27 = vpop.f32.mrf.mxu0 }
 0x39d   :  { %v3504_v48 = vadd.f32 %v3503_v27, %v3480_v46 }
 0x3bc   :  { %v3523_v58 = vpop.f32.mrf.mxu1 }
 0x3bd   :  { %v3524_v44 = vadd.f32 %v3523_v58, %v3504_v48 }
 0x3bf   :  { %v4991_v23 = vmul.f32 -1.442695, %v3524_v44 }
 0x3c1   :  { %5343 = vpow2.f32 %v4991_v23 }
 0x3c7   :  { %v5344_v3 = vpop.eup %5343 }
 0x3c8   :  { %v3529_v43 = vadd.f32 1.0, %v5344_v3 }
 0x3ca   :  { %5345 = vrcp.f32 %v3529_v43  ;;  %v3541_v52 = vand.u32 2147483648, %v3529_v43  ;;  %vm3535_vm1 = vweird.f32 %v3529_v43  ;;  %v3539_v31 = vand.u32 2147483647, %v3529_v43 }
 0x3cc   :  { %v3542_v55 = vor.u32 1.1754944e-38, %v3541_v52  ;;  %vm3540_vm4 = vcmp.eq.f32.partialorder %v3539_v31, 8.507059e+37 }
 0x3d0   :  { %v5346_v9 = vpop.eup %5345 }
 0x3d1   :  { %v3531_v14 = vmul.f32 %v5346_v9, %v3529_v43  ;;  %vm3536_vm2 = vweird.f32 %v5346_v9 }
 0x3d2   :  { %vm3537_vm3 = vmor %vm3535_vm1, %vm3536_vm2 }
 0x3d3   :  { %v3532_v13 = vsub.f32 1.0, %v3531_v14 }
 0x3d5   :  { %v3533_v34 = vmul.f32 %v5346_v9, %v3532_v13 }
 0x3d7   :  { %v3534_v1 = vadd.f32 %v5346_v9, %v3533_v34 }
 0x3d9   :  { %v3538_v42 = vsel %vm3537_vm3, %v5346_v9, %v3534_v1 }
 0x3da   :  { %v3543_v37 = vsel %vm3540_vm4, %v3542_v55, %v3538_v42 }
 0x3db   :  { %3546 = vst.msk [vmem:[#allocation12] sm:$0x1] %vm3545_vm5, %v3543_v37 }
 0x40c   :  { %v3564_v39 = vpop.f32.mrf.mxu2 }
 0x40d   :  { %v3565_v51 = vadd.f32 %v3564_v39, %v3480_v46 }
 0x41c   :  { %v3584_v29 = vpop.f32.mrf.mxu3 }
 0x41d   :  { %v3585_v41 = vadd.f32 %v3584_v29, %v3565_v51 }
 0x41f   :  { %v4992_v61 = vmul.f32 -1.442695, %v3585_v41 }
 0x421   :  { %5347 = vpow2.f32 %v4992_v61 }
 0x427   :  { %v5348_v16 = vpop.eup %5347 }
 0x428   :  { %v3590_v5 = vadd.f32 1.0, %v5348_v16 }
 0x42a   :  { %5349 = vrcp.f32 %v3590_v5  ;;  %v3602_v47 = vand.u32 2147483648, %v3590_v5  ;;  %v3600_v7 = vand.u32 2147483647, %v3590_v5  ;;  %vm3596_vm7 = vweird.f32 %v3590_v5 }
 0x42c   :  { %v3603_v21 = vor.u32 1.1754944e-38, %v3602_v47  ;;  %vm3601_vm9 = vcmp.eq.f32.partialorder %v3600_v7, 8.507059e+37 }
 0x430   :  { %v5350_v33 = vpop.eup %5349 }
 0x431   :  { %v3592_v40 = vmul.f32 %v5350_v33, %v3590_v5  ;;  %vm3597_vm6 = vweird.f32 %v5350_v33 }
 0x432   :  { %vm3598_vm8 = vmor %vm3596_vm7, %vm3597_vm6 }
 0x433   :  { %v3593_v18 = vsub.f32 1.0, %v3592_v40 }
 0x435   :  { %v3594_v32 = vmul.f32 %v5350_v33, %v3593_v18 }
 0x437   :  { %v3595_v56 = vadd.f32 %v5350_v33, %v3594_v32 }
 0x439   :  { %v3599_v22 = vsel %vm3598_vm8, %v5350_v33, %v3595_v56 }
 0x43a   :  { %v3604_v12 = vsel %vm3601_vm9, %v3603_v21, %v3599_v22 }
 0x43b   :  { %3607 = vrot.lane.b32.xlu0 %v3604_v12, %s5511_s10 }
 0x4ad   :  { %v3608_v45 = vpop.permute.xlu0 %3607 }
 0x4ae   :  { %3611 = vst.msk [vmem:[#allocation12] sm:$0x1] %vm3610_vm10, %v3608_v45 }
 0x4af   :  { %3622 = dma.vmem_to_hbm [thread:$0]  %s3618_s19, 16, %s3620_s21, [#allocation5]  }
 0x4b0   :  { %5501 = dma.done.wait [#allocation5], 16  }
 0x4b1   :  { %5502 = vsyncadd [#allocation5], 4294967280 }
 0x4b2   :  { %3627 = vsyncpa [#allocation4], 1 }
 0x4b3   :  { %3628 = vsyncpa [#allocation7], 1 }
 0x4b4   :  { %3629 = vsyncpa [#allocation10], 1 }
 0x4b5   :  { %3630 = vsyncpa [#allocation5], 1 }

</bundles_post_ra>
